<compile_context>
chip_gen: v7x
topology: tpu7x:2x2x1
jax: 0.10.0
libtpu: 0.0.40
codegen_flags: <defaults>
</compile_context>

<pallas_src>
import math

import jax
import jax.numpy as jnp
from jax.experimental import pallas as pl
from jax.experimental.pallas import tpu as pltpu


# ----------------------------- config (small) -----------------------------
VOCAB = 64
HIDDEN = 32
N_HEADS = 2
HEAD_DIM = HIDDEN // N_HEADS
FFN = 64
MAX_POS = 16
EPS = 1e-12
NEG_INF = -1e9
ATT_SCALE = 1.0 / math.sqrt(HEAD_DIM)

N_DATA = 5  # enc_ids, dec_ids, labels, enc_mask, dec_mask


def _param_order():
    keys = []
    for side in ("enc_", "dec_"):
        keys += [side + s for s in ("word_emb", "pos_emb", "type_row",
                                    "emb_ln_g", "emb_ln_b")]
    for pre in ("enc_attn_", "dec_self_"):
        keys += [pre + s for s in ("wqkv", "bqkv", "wo", "bo", "ln_g", "ln_b")]
    keys += ["dec_cross_" + s for s in ("wq", "bq", "wkv", "bkv",
                                        "wo", "bo", "ln_g", "ln_b")]
    for pre in ("enc_ffn_", "dec_ffn_"):
        keys += [pre + s for s in ("w1", "b1", "w2", "b2", "ln_g", "ln_b")]
    keys += ["lm_tr_w", "lm_tr_b", "lm_ln_g", "lm_ln_b", "lm_bias"]
    return tuple(keys)


PARAM_ORDER = _param_order()


# ----------------------- in-kernel helpers (on values) -----------------------
def _bf16(x):
    return x.astype(jnp.bfloat16)


def _mm(a, b):
    # bf16 MXU matmul, fp32 accumulation
    return jnp.dot(_bf16(a), _bf16(b), preferred_element_type=jnp.float32)


def _mm_tb(a, b):
    # a @ b.T without materializing a transpose (MXU trans_b path)
    return jax.lax.dot_general(_bf16(a), _bf16(b),
                               (((1,), (1,)), ((), ())),
                               preferred_element_type=jnp.float32)


def _ln(x, g, b):
    mean = jnp.mean(x, axis=-1, keepdims=True)
    var = jnp.mean((x - mean) ** 2, axis=-1, keepdims=True)
    return (x - mean) * jax.lax.rsqrt(var + EPS) * g + b


def _gelu(x):
    # TODO(synk): HF BERT default is exact erf-gelu; tanh approximation used here.
    return 0.5 * x * (1.0 + jnp.tanh(0.7978845608028654 *
                                     (x + 0.044715 * x * x * x)))


def _softmax(s):
    s = s - jnp.max(s, axis=-1, keepdims=True)
    p = jnp.exp(s)
    return p * pl.reciprocal(jnp.sum(p, axis=-1, keepdims=True), approx=True)


def _embed(ids_col, emb):
    """Word-embedding gather as an in-kernel one-hot MXU matmul.

    ids_col: (S, 1) int32; emb: (V, H).  Keeps the table in one VMEM copy
    (shared with the tied LM head for the decoder).  bf16 rounding of the
    table values is acceptable for this synthetic model.
    """
    S = ids_col.shape[0]
    V = emb.shape[0]
    onehot = (jax.lax.broadcasted_iota(jnp.int32, (S, V), 1) == ids_col)
    return _mm(onehot.astype(jnp.float32), emb)


def _mha(q, k, v, wo, bo, add_mask):
    """Multi-head attention with merge_heads fused into the output projection.

    q:(Sq,H) k,v:(Sk,H) fp32; wo:(H,H); bo:(1,H); add_mask broadcastable to
    (Sq,Sk).  Returns the output-projected context (Sq,H) fp32.
    """
    out = bo
    for h in range(N_HEADS):
        sl = slice(h * HEAD_DIM, (h + 1) * HEAD_DIM)
        s = _mm_tb(q[:, sl], k[:, sl]) * ATT_SCALE + add_mask
        p = _softmax(s)
        ctx = _mm(p, v[:, sl])                        # (Sq, Dh)
        out = out + _mm(ctx, wo[sl, :])               # fused merge_heads + out-proj
    return out


# ----------------------------- fused Pallas kernel -----------------------------
def _bert2bert_kernel(*refs):
    enc_ids_ref, dec_ids_ref, lab_ref, emsk_ref, dmsk_ref = refs[:N_DATA]
    loss_ref = refs[-1]
    # Every weight is loaded exactly once into VMEM values, keyed by name.
    W = {k: r[...] for k, r in zip(PARAM_ORDER, refs[N_DATA:-1])}

    H = HIDDEN
    B = enc_ids_ref.shape[0]
    Sd = dec_ids_ref.shape[1]

    def encoder(b):
        x = _embed(enc_ids_ref[b], W["enc_word_emb"])
        x = x + W["enc_pos_emb"] + W["enc_type_row"]
        x = _ln(x, W["enc_emb_ln_g"], W["enc_emb_ln_b"])

        # additive key-padding mask built in-kernel from the (1, Se) row mask
        add_mask = (1.0 - emsk_ref[b]) * NEG_INF              # (1, Se)

        qkv = _mm(x, W["enc_attn_wqkv"]) + W["enc_attn_bqkv"]
        attn = _mha(qkv[:, :H], qkv[:, H:2 * H], qkv[:, 2 * H:],
                    W["enc_attn_wo"], W["enc_attn_bo"], add_mask)
        x = _ln(x + attn, W["enc_attn_ln_g"], W["enc_attn_ln_b"])

        h = _gelu(_mm(x, W["enc_ffn_w1"]) + W["enc_ffn_b1"])
        h = _mm(h, W["enc_ffn_w2"]) + W["enc_ffn_b2"]
        return _ln(x + h, W["enc_ffn_ln_g"], W["enc_ffn_ln_b"])

    def decoder(b, henc):
        x = _embed(dec_ids_ref[b], W["dec_word_emb"])
        x = x + W["dec_pos_emb"] + W["dec_type_row"]
        x = _ln(x, W["dec_emb_ln_g"], W["dec_emb_ln_b"])

        # decoder self-attn mask: causal AND key-not-padded, built in-kernel
        row = jax.lax.broadcasted_iota(jnp.int32, (Sd, Sd), 0)
        col = jax.lax.broadcasted_iota(jnp.int32, (Sd, Sd), 1)
        allowed = (col <= row) & (dmsk_ref[b] > 0.5)          # (Sd,Sd) & (1,Sd)
        self_mask = jnp.where(allowed, 0.0, NEG_INF)
        cross_mask = (1.0 - emsk_ref[b]) * NEG_INF            # (1, Se)

        # masked self-attention (fused QKV)
        qkv = _mm(x, W["dec_self_wqkv"]) + W["dec_self_bqkv"]
        attn = _mha(qkv[:, :H], qkv[:, H:2 * H], qkv[:, 2 * H:],
                    W["dec_self_wo"], W["dec_self_bo"], self_mask)
        x = _ln(x + attn, W["dec_self_ln_g"], W["dec_self_ln_b"])

        # cross-attention (fused K|V projection of the encoder output)
        q = _mm(x, W["dec_cross_wq"]) + W["dec_cross_bq"]
        kv = _mm(henc, W["dec_cross_wkv"]) + W["dec_cross_bkv"]
        attn = _mha(q, kv[:, :H], kv[:, H:],
                    W["dec_cross_wo"], W["dec_cross_bo"], cross_mask)
        x = _ln(x + attn, W["dec_cross_ln_g"], W["dec_cross_ln_b"])

        h = _gelu(_mm(x, W["dec_ffn_w1"]) + W["dec_ffn_b1"])
        h = _mm(h, W["dec_ffn_w2"]) + W["dec_ffn_b2"]
        return _ln(x + h, W["dec_ffn_ln_g"], W["dec_ffn_ln_b"])

    def lm_ce_sum(b, hdec):
        h = _gelu(_mm(hdec, W["lm_tr_w"]) + W["lm_tr_b"])
        h = _ln(h, W["lm_ln_g"], W["lm_ln_b"])
        # tied-embedding logits: h @ emb.T + bias -- logits never leave VMEM
        logits = _mm_tb(h, W["dec_word_emb"]) + W["lm_bias"]  # (Sd, V)
        labels = lab_ref[b]                                   # (Sd, 1) int32
        m = jnp.max(logits, axis=-1, keepdims=True)
        lse = jnp.log(jnp.sum(jnp.exp(logits - m), axis=-1, keepdims=True)) + m
        onehot = jax.lax.broadcasted_iota(jnp.int32, logits.shape, 1) == labels
        tgt = jnp.sum(jnp.where(onehot, logits, 0.0), axis=-1, keepdims=True)
        return jnp.sum(lse - tgt)

    # B=2: static in-kernel batch loop (no per-grid-step pipeline overhead).
    total = 0.0
    for b in range(B):
        henc = encoder(b)
        hdec = decoder(b, henc)
        total = total + lm_ce_sum(b, hdec)

    # TODO(synk): like the reference (lm_labels passed raw, no -100), padded
    #             decoder positions are included in the mean loss.
    loss_ref[0, 0] = total / float(B * Sd)


# ----------------------------- pallas_call wrapper -----------------------------
def bert2bert_forward(p, enc_batch, enc_mask, dec_batch, dec_mask):
    B, Se = enc_batch.shape
    # Same input slicing as the PyTorch module
    dec_input = dec_batch[:, :-1]
    dec_labels = dec_batch[:, 1:]
    dec_m = dec_mask[:, :-1]
    Sd = dec_input.shape[1]

    enc_ids = enc_batch.astype(jnp.int32).reshape(B, Se, 1)
    dec_ids = dec_input.astype(jnp.int32).reshape(B, Sd, 1)
    labels = dec_labels.astype(jnp.int32).reshape(B, Sd, 1)
    emsk = enc_mask.astype(jnp.float32).reshape(B, 1, Se)
    dmsk = dec_m.astype(jnp.float32).reshape(B, 1, Sd)

    w = dict(p)
    w["enc_pos_emb"] = p["enc_pos_emb"][:Se]      # static trace-time slice
    w["dec_pos_emb"] = p["dec_pos_emb"][:Sd]
    weights = tuple(w[k] for k in PARAM_ORDER)

    args = (enc_ids, dec_ids, labels, emsk, dmsk) + weights

    # Rough cost hints so XLA schedules neighbouring ops around the fused call.
    H, F, V, NH, DH = HIDDEN, FFN, VOCAB, N_HEADS, HEAD_DIM
    flops = 2 * B * (
        Se * V * H + Se * H * 3 * H + NH * 2 * Se * Se * DH + Se * H * H
        + 2 * Se * H * F
        + Sd * V * H + Sd * H * 3 * H + NH * 2 * Sd * Sd * DH + Sd * H * H
        + Sd * H * H + Se * H * 2 * H + NH * 2 * Sd * Se * DH + Sd * H * H
        + 2 * Sd * H * F
        + Sd * H * H + Sd * H * V)
    trans = B * (NH * (Se * Se + Sd * Sd + Sd * Se) + (Se + 2 * Sd) * F + Sd * V)
    nbytes = sum(int(a.size) * a.dtype.itemsize for a in args) + 4

    loss = pl.pallas_call(
        _bert2bert_kernel,
        out_shape=jax.ShapeDtypeStruct((1, 1), jnp.float32),
        in_specs=[pl.BlockSpec(memory_space=pltpu.MemorySpace.VMEM)] * len(args),
        out_specs=pl.BlockSpec(memory_space=pltpu.MemorySpace.SMEM),
        cost_estimate=pl.CostEstimate(flops=flops, transcendentals=trans,
                                      bytes_accessed=nbytes),
    )(*args)
    return loss[0, 0]


# ----------------------------- params -----------------------------
def init_params(key):
    p = {}
    idx = [0]
    H, F, V = HIDDEN, FFN, VOCAB

    def nrm(shape, dtype=jnp.float32):
        idx[0] += 1
        w = jax.random.normal(jax.random.fold_in(key, idx[0]), shape,
                              jnp.float32) * 0.02
        return w.astype(dtype)

    def zeros(shape):
        return jnp.zeros(shape, jnp.float32)

    def ones(shape):
        return jnp.ones(shape, jnp.float32)

    for side in ("enc_", "dec_"):
        p[side + "word_emb"] = nrm((V, H))            # fp32 table (gather + tied LM head)
        p[side + "pos_emb"] = nrm((MAX_POS, H))
        p[side + "type_row"] = nrm((1, H))            # token-type-0 row
        p[side + "emb_ln_g"] = ones((1, H))
        p[side + "emb_ln_b"] = zeros((1, H))

    def add_attn(pre, fused_kv=False):
        if fused_kv:                                   # cross-attn: Q from dec, K|V from enc
            p[pre + "wq"] = nrm((H, H), jnp.bfloat16)
            p[pre + "bq"] = zeros((1, H))
            p[pre + "wkv"] = nrm((H, 2 * H), jnp.bfloat16)
            p[pre + "bkv"] = zeros((1, 2 * H))
        else:                                          # self-attn: fused Q|K|V
            p[pre + "wqkv"] = nrm((H, 3 * H), jnp.bfloat16)
            p[pre + "bqkv"] = zeros((1, 3 * H))
        p[pre + "wo"] = nrm((H, H), jnp.bfloat16)
        p[pre + "bo"] = zeros((1, H))
        p[pre + "ln_g"] = ones((1, H))
        p[pre + "ln_b"] = zeros((1, H))

    def add_ffn(pre):
        p[pre + "w1"] = nrm((H, F), jnp.bfloat16)
        p[pre + "b1"] = zeros((1, F))
        p[pre + "w2"] = nrm((F, H), jnp.bfloat16)
        p[pre + "b2"] = zeros((1, H))
        p[pre + "ln_g"] = ones((1, H))
        p[pre + "ln_b"] = zeros((1, H))

    add_attn("enc_attn_")
    add_ffn("enc_ffn_")
    add_attn("dec_self_")
    add_attn("dec_cross_", fused_kv=True)
    add_ffn("dec_ffn_")

    # LM head (BERT cls transform; decoder weights tied to dec word embeddings,
    # shared as the single dec_word_emb VMEM copy inside the kernel)
    p["lm_tr_w"] = nrm((H, H), jnp.bfloat16)
    p["lm_tr_b"] = zeros((1, H))
    p["lm_ln_g"] = ones((1, H))
    p["lm_ln_b"] = zeros((1, H))
    p["lm_bias"] = zeros((1, V))

    assert set(p.keys()) == set(PARAM_ORDER)
    return p


# ----------------------------- model class -----------------------------
class Bert2Bert:
    """Forward-only JAX/Pallas analogue of the PyTorch Bert2Bert module."""

    def __init__(self):
        self.params = init_params(jax.random.PRNGKey(0))
        self._fwd = jax.jit(bert2bert_forward)

    def forward(self, batch):
        enc_batch, enc_mask, dec_batch, dec_mask = batch
        loss = self._fwd(self.params, enc_batch, enc_mask, dec_batch, dec_mask)
        loss = jax.block_until_ready(loss)
        loss_value = float(loss)
        return loss_value, math.exp(min(loss_value, 600)), loss


# ----------------------------- demo -----------------------------
if __name__ == "__main__":
    key = jax.random.PRNGKey(0)
    k1, k2 = jax.random.split(key)

    B, SE, SD = 2, 8, 8
    enc_batch = jax.random.randint(k1, (B, SE), 0, VOCAB, dtype=jnp.int32)
    dec_batch = jax.random.randint(k2, (B, SD), 0, VOCAB, dtype=jnp.int32)
    enc_mask = jnp.array([[1, 1, 1, 1, 1, 1, 1, 1],
                          [1, 1, 1, 1, 1, 1, 0, 0]], jnp.float32)
    dec_mask = jnp.array([[1, 1, 1, 1, 1, 1, 1, 1],
                          [1, 1, 1, 1, 1, 0, 0, 0]], jnp.float32)

    model = Bert2Bert()
    loss_value, ppl, loss = model.forward((enc_batch, enc_mask, dec_batch, dec_mask))
    jax.block_until_ready(loss)
    assert math.isfinite(loss_value) and math.isfinite(ppl)
    print("KERNEL_OK")
</pallas_src>

<mosaic_0001>
module attributes {stable_mosaic.version = 11 : i64} {
  func.func @_bert2bert_kernel(%arg0: memref<2x8x1xi32, #tpu.memory_space<vmem>>, %arg1: memref<2x7x1xi32, #tpu.memory_space<vmem>>, %arg2: memref<2x7x1xi32, #tpu.memory_space<vmem>>, %arg3: memref<2x1x8xf32, #tpu.memory_space<vmem>>, %arg4: memref<2x1x7xf32, #tpu.memory_space<vmem>>, %arg5: memref<64x32xf32, #tpu.memory_space<vmem>>, %arg6: memref<8x32xf32, #tpu.memory_space<vmem>>, %arg7: memref<1x32xf32, #tpu.memory_space<vmem>>, %arg8: memref<1x32xf32, #tpu.memory_space<vmem>>, %arg9: memref<1x32xf32, #tpu.memory_space<vmem>>, %arg10: memref<64x32xf32, #tpu.memory_space<vmem>>, %arg11: memref<7x32xf32, #tpu.memory_space<vmem>>, %arg12: memref<1x32xf32, #tpu.memory_space<vmem>>, %arg13: memref<1x32xf32, #tpu.memory_space<vmem>>, %arg14: memref<1x32xf32, #tpu.memory_space<vmem>>, %arg15: memref<32x96xbf16, #tpu.memory_space<vmem>>, %arg16: memref<1x96xf32, #tpu.memory_space<vmem>>, %arg17: memref<32x32xbf16, #tpu.memory_space<vmem>>, %arg18: memref<1x32xf32, #tpu.memory_space<vmem>>, %arg19: memref<1x32xf32, #tpu.memory_space<vmem>>, %arg20: memref<1x32xf32, #tpu.memory_space<vmem>>, %arg21: memref<32x96xbf16, #tpu.memory_space<vmem>>, %arg22: memref<1x96xf32, #tpu.memory_space<vmem>>, %arg23: memref<32x32xbf16, #tpu.memory_space<vmem>>, %arg24: memref<1x32xf32, #tpu.memory_space<vmem>>, %arg25: memref<1x32xf32, #tpu.memory_space<vmem>>, %arg26: memref<1x32xf32, #tpu.memory_space<vmem>>, %arg27: memref<32x32xbf16, #tpu.memory_space<vmem>>, %arg28: memref<1x32xf32, #tpu.memory_space<vmem>>, %arg29: memref<32x64xbf16, #tpu.memory_space<vmem>>, %arg30: memref<1x64xf32, #tpu.memory_space<vmem>>, %arg31: memref<32x32xbf16, #tpu.memory_space<vmem>>, %arg32: memref<1x32xf32, #tpu.memory_space<vmem>>, %arg33: memref<1x32xf32, #tpu.memory_space<vmem>>, %arg34: memref<1x32xf32, #tpu.memory_space<vmem>>, %arg35: memref<32x64xbf16, #tpu.memory_space<vmem>>, %arg36: memref<1x64xf32, #tpu.memory_space<vmem>>, %arg37: memref<64x32xbf16, #tpu.memory_space<vmem>>, %arg38: memref<1x32xf32, #tpu.memory_space<vmem>>, %arg39: memref<1x32xf32, #tpu.memory_space<vmem>>, %arg40: memref<1x32xf32, #tpu.memory_space<vmem>>, %arg41: memref<32x64xbf16, #tpu.memory_space<vmem>>, %arg42: memref<1x64xf32, #tpu.memory_space<vmem>>, %arg43: memref<64x32xbf16, #tpu.memory_space<vmem>>, %arg44: memref<1x32xf32, #tpu.memory_space<vmem>>, %arg45: memref<1x32xf32, #tpu.memory_space<vmem>>, %arg46: memref<1x32xf32, #tpu.memory_space<vmem>>, %arg47: memref<32x32xbf16, #tpu.memory_space<vmem>>, %arg48: memref<1x32xf32, #tpu.memory_space<vmem>>, %arg49: memref<1x32xf32, #tpu.memory_space<vmem>>, %arg50: memref<1x32xf32, #tpu.memory_space<vmem>>, %arg51: memref<1x64xf32, #tpu.memory_space<vmem>>, %arg52: memref<1x1xf32, #tpu.memory_space<smem>>) attributes {dimension_semantics = [], scalar_prefetch = 0 : i64, scratch_operands = 0 : i64, tpu.core_type = #tpu.core_type<tc>} {
    %c0 = arith.constant 0 : index
    %c0_0 = arith.constant 0 : index
    %0 = vector.load %arg5[%c0, %c0_0] : memref<64x32xf32, #tpu.memory_space<vmem>>, vector<64x32xf32>
    %c0_1 = arith.constant 0 : index
    %c0_2 = arith.constant 0 : index
    %1 = vector.load %arg6[%c0_1, %c0_2] : memref<8x32xf32, #tpu.memory_space<vmem>>, vector<8x32xf32>
    %c0_3 = arith.constant 0 : index
    %c0_4 = arith.constant 0 : index
    %2 = vector.load %arg7[%c0_3, %c0_4] : memref<1x32xf32, #tpu.memory_space<vmem>>, vector<1x32xf32>
    %c0_5 = arith.constant 0 : index
    %c0_6 = arith.constant 0 : index
    %3 = vector.load %arg8[%c0_5, %c0_6] : memref<1x32xf32, #tpu.memory_space<vmem>>, vector<1x32xf32>
    %c0_7 = arith.constant 0 : index
    %c0_8 = arith.constant 0 : index
    %4 = vector.load %arg9[%c0_7, %c0_8] : memref<1x32xf32, #tpu.memory_space<vmem>>, vector<1x32xf32>
    %c0_9 = arith.constant 0 : index
    %c0_10 = arith.constant 0 : index
    %5 = vector.load %arg10[%c0_9, %c0_10] : memref<64x32xf32, #tpu.memory_space<vmem>>, vector<64x32xf32>
    %c0_11 = arith.constant 0 : index
    %c0_12 = arith.constant 0 : index
    %6 = vector.load %arg11[%c0_11, %c0_12] : memref<7x32xf32, #tpu.memory_space<vmem>>, vector<7x32xf32>
    %c0_13 = arith.constant 0 : index
    %c0_14 = arith.constant 0 : index
    %7 = vector.load %arg12[%c0_13, %c0_14] : memref<1x32xf32, #tpu.memory_space<vmem>>, vector<1x32xf32>
    %c0_15 = arith.constant 0 : index
    %c0_16 = arith.constant 0 : index
    %8 = vector.load %arg13[%c0_15, %c0_16] : memref<1x32xf32, #tpu.memory_space<vmem>>, vector<1x32xf32>
    %c0_17 = arith.constant 0 : index
    %c0_18 = arith.constant 0 : index
    %9 = vector.load %arg14[%c0_17, %c0_18] : memref<1x32xf32, #tpu.memory_space<vmem>>, vector<1x32xf32>
    %c0_19 = arith.constant 0 : index
    %c0_20 = arith.constant 0 : index
    %10 = vector.load %arg15[%c0_19, %c0_20] : memref<32x96xbf16, #tpu.memory_space<vmem>>, vector<32x96xbf16>
    %c0_21 = arith.constant 0 : index
    %c0_22 = arith.constant 0 : index
    %11 = vector.load %arg16[%c0_21, %c0_22] : memref<1x96xf32, #tpu.memory_space<vmem>>, vector<1x96xf32>
    %c0_23 = arith.constant 0 : index
    %c0_24 = arith.constant 0 : index
    %12 = vector.load %arg17[%c0_23, %c0_24] : memref<32x32xbf16, #tpu.memory_space<vmem>>, vector<32x32xbf16>
    %c0_25 = arith.constant 0 : index
    %c0_26 = arith.constant 0 : index
    %13 = vector.load %arg18[%c0_25, %c0_26] : memref<1x32xf32, #tpu.memory_space<vmem>>, vector<1x32xf32>
    %c0_27 = arith.constant 0 : index
    %c0_28 = arith.constant 0 : index
    %14 = vector.load %arg19[%c0_27, %c0_28] : memref<1x32xf32, #tpu.memory_space<vmem>>, vector<1x32xf32>
    %c0_29 = arith.constant 0 : index
    %c0_30 = arith.constant 0 : index
    %15 = vector.load %arg20[%c0_29, %c0_30] : memref<1x32xf32, #tpu.memory_space<vmem>>, vector<1x32xf32>
    %c0_31 = arith.constant 0 : index
    %c0_32 = arith.constant 0 : index
    %16 = vector.load %arg21[%c0_31, %c0_32] : memref<32x96xbf16, #tpu.memory_space<vmem>>, vector<32x96xbf16>
    %c0_33 = arith.constant 0 : index
    %c0_34 = arith.constant 0 : index
    %17 = vector.load %arg22[%c0_33, %c0_34] : memref<1x96xf32, #tpu.memory_space<vmem>>, vector<1x96xf32>
    %c0_35 = arith.constant 0 : index
    %c0_36 = arith.constant 0 : index
    %18 = vector.load %arg23[%c0_35, %c0_36] : memref<32x32xbf16, #tpu.memory_space<vmem>>, vector<32x32xbf16>
    %c0_37 = arith.constant 0 : index
    %c0_38 = arith.constant 0 : index
    %19 = vector.load %arg24[%c0_37, %c0_38] : memref<1x32xf32, #tpu.memory_space<vmem>>, vector<1x32xf32>
    %c0_39 = arith.constant 0 : index
    %c0_40 = arith.constant 0 : index
    %20 = vector.load %arg25[%c0_39, %c0_40] : memref<1x32xf32, #tpu.memory_space<vmem>>, vector<1x32xf32>
    %c0_41 = arith.constant 0 : index
    %c0_42 = arith.constant 0 : index
    %21 = vector.load %arg26[%c0_41, %c0_42] : memref<1x32xf32, #tpu.memory_space<vmem>>, vector<1x32xf32>
    %c0_43 = arith.constant 0 : index
    %c0_44 = arith.constant 0 : index
    %22 = vector.load %arg27[%c0_43, %c0_44] : memref<32x32xbf16, #tpu.memory_space<vmem>>, vector<32x32xbf16>
    %c0_45 = arith.constant 0 : index
    %c0_46 = arith.constant 0 : index
    %23 = vector.load %arg28[%c0_45, %c0_46] : memref<1x32xf32, #tpu.memory_space<vmem>>, vector<1x32xf32>
    %c0_47 = arith.constant 0 : index
    %c0_48 = arith.constant 0 : index
    %24 = vector.load %arg29[%c0_47, %c0_48] : memref<32x64xbf16, #tpu.memory_space<vmem>>, vector<32x64xbf16>
    %c0_49 = arith.constant 0 : index
    %c0_50 = arith.constant 0 : index
    %25 = vector.load %arg30[%c0_49, %c0_50] : memref<1x64xf32, #tpu.memory_space<vmem>>, vector<1x64xf32>
    %c0_51 = arith.constant 0 : index
    %c0_52 = arith.constant 0 : index
    %26 = vector.load %arg31[%c0_51, %c0_52] : memref<32x32xbf16, #tpu.memory_space<vmem>>, vector<32x32xbf16>
    %c0_53 = arith.constant 0 : index
    %c0_54 = arith.constant 0 : index
    %27 = vector.load %arg32[%c0_53, %c0_54] : memref<1x32xf32, #tpu.memory_space<vmem>>, vector<1x32xf32>
    %c0_55 = arith.constant 0 : index
    %c0_56 = arith.constant 0 : index
    %28 = vector.load %arg33[%c0_55, %c0_56] : memref<1x32xf32, #tpu.memory_space<vmem>>, vector<1x32xf32>
    %c0_57 = arith.constant 0 : index
    %c0_58 = arith.constant 0 : index
    %29 = vector.load %arg34[%c0_57, %c0_58] : memref<1x32xf32, #tpu.memory_space<vmem>>, vector<1x32xf32>
    %c0_59 = arith.constant 0 : index
    %c0_60 = arith.constant 0 : index
    %30 = vector.load %arg35[%c0_59, %c0_60] : memref<32x64xbf16, #tpu.memory_space<vmem>>, vector<32x64xbf16>
    %c0_61 = arith.constant 0 : index
    %c0_62 = arith.constant 0 : index
    %31 = vector.load %arg36[%c0_61, %c0_62] : memref<1x64xf32, #tpu.memory_space<vmem>>, vector<1x64xf32>
    %c0_63 = arith.constant 0 : index
    %c0_64 = arith.constant 0 : index
    %32 = vector.load %arg37[%c0_63, %c0_64] : memref<64x32xbf16, #tpu.memory_space<vmem>>, vector<64x32xbf16>
    %c0_65 = arith.constant 0 : index
    %c0_66 = arith.constant 0 : index
    %33 = vector.load %arg38[%c0_65, %c0_66] : memref<1x32xf32, #tpu.memory_space<vmem>>, vector<1x32xf32>
    %c0_67 = arith.constant 0 : index
    %c0_68 = arith.constant 0 : index
    %34 = vector.load %arg39[%c0_67, %c0_68] : memref<1x32xf32, #tpu.memory_space<vmem>>, vector<1x32xf32>
    %c0_69 = arith.constant 0 : index
    %c0_70 = arith.constant 0 : index
    %35 = vector.load %arg40[%c0_69, %c0_70] : memref<1x32xf32, #tpu.memory_space<vmem>>, vector<1x32xf32>
    %c0_71 = arith.constant 0 : index
    %c0_72 = arith.constant 0 : index
    %36 = vector.load %arg41[%c0_71, %c0_72] : memref<32x64xbf16, #tpu.memory_space<vmem>>, vector<32x64xbf16>
    %c0_73 = arith.constant 0 : index
    %c0_74 = arith.constant 0 : index
    %37 = vector.load %arg42[%c0_73, %c0_74] : memref<1x64xf32, #tpu.memory_space<vmem>>, vector<1x64xf32>
    %c0_75 = arith.constant 0 : index
    %c0_76 = arith.constant 0 : index
    %38 = vector.load %arg43[%c0_75, %c0_76] : memref<64x32xbf16, #tpu.memory_space<vmem>>, vector<64x32xbf16>
    %c0_77 = arith.constant 0 : index
    %c0_78 = arith.constant 0 : index
    %39 = vector.load %arg44[%c0_77, %c0_78] : memref<1x32xf32, #tpu.memory_space<vmem>>, vector<1x32xf32>
    %c0_79 = arith.constant 0 : index
    %c0_80 = arith.constant 0 : index
    %40 = vector.load %arg45[%c0_79, %c0_80] : memref<1x32xf32, #tpu.memory_space<vmem>>, vector<1x32xf32>
    %c0_81 = arith.constant 0 : index
    %c0_82 = arith.constant 0 : index
    %41 = vector.load %arg46[%c0_81, %c0_82] : memref<1x32xf32, #tpu.memory_space<vmem>>, vector<1x32xf32>
    %c0_83 = arith.constant 0 : index
    %c0_84 = arith.constant 0 : index
    %42 = vector.load %arg47[%c0_83, %c0_84] : memref<32x32xbf16, #tpu.memory_space<vmem>>, vector<32x32xbf16>
    %c0_85 = arith.constant 0 : index
    %c0_86 = arith.constant 0 : index
    %43 = vector.load %arg48[%c0_85, %c0_86] : memref<1x32xf32, #tpu.memory_space<vmem>>, vector<1x32xf32>
    %c0_87 = arith.constant 0 : index
    %c0_88 = arith.constant 0 : index
    %44 = vector.load %arg49[%c0_87, %c0_88] : memref<1x32xf32, #tpu.memory_space<vmem>>, vector<1x32xf32>
    %c0_89 = arith.constant 0 : index
    %c0_90 = arith.constant 0 : index
    %45 = vector.load %arg50[%c0_89, %c0_90] : memref<1x32xf32, #tpu.memory_space<vmem>>, vector<1x32xf32>
    %c0_91 = arith.constant 0 : index
    %c0_92 = arith.constant 0 : index
    %46 = vector.load %arg51[%c0_91, %c0_92] : memref<1x64xf32, #tpu.memory_space<vmem>>, vector<1x64xf32>
    %c0_93 = arith.constant 0 : index
    %c0_94 = arith.constant 0 : index
    %c0_95 = arith.constant 0 : index
    %47 = vector.load %arg0[%c0_93, %c0_94, %c0_95] : memref<2x8x1xi32, #tpu.memory_space<vmem>>, vector<1x8x1xi32>
    %48 = vector.shape_cast %47 : vector<1x8x1xi32> to vector<8x1xi32>
    %49 = tpu.iota {dimensions = array<i32: 1>} : vector<8x64xi32>
    %50 = vector.broadcast %48 : vector<8x1xi32> to vector<8x64xi32>
    %51 = arith.cmpi eq, %49, %50 : vector<8x64xi32>
    %52 = arith.extui %51 : vector<8x64xi1> to vector<8x64xi32>
    %53 = arith.sitofp %52 : vector<8x64xi32> to vector<8x64xf32>
    %54 = arith.truncf %53 : vector<8x64xf32> to vector<8x64xbf16>
    %55 = arith.truncf %0 : vector<64x32xf32> to vector<64x32xbf16>
    %cst = arith.constant dense<0.000000e+00> : vector<8x32xf32>
    %56 = tpu.matmul %54, %55, %cst {dimension_numbers = #tpu.dot_dimension_numbers<[1], [0], [0], [1], [0, 0, 1, 1], [], []>} : vector<8x64xbf16>, vector<64x32xbf16>, vector<8x32xf32> -> vector<8x32xf32>
    %57 = arith.addf %56, %1 : vector<8x32xf32>
    %58 = vector.broadcast %2 : vector<1x32xf32> to vector<8x32xf32>
    %59 = arith.addf %57, %58 : vector<8x32xf32>
    %cst_96 = arith.constant dense<0.000000e+00> : vector<8xf32>
    %60 = vector.multi_reduction <add>, %59, %cst_96 [1] : vector<8x32xf32> to vector<8xf32>
    %61 = vector.shape_cast %60 : vector<8xf32> to vector<8x1xf32>
    %cst_97 = arith.constant 3.200000e+01 : f32
    %62 = vector.broadcast %cst_97 : f32 to vector<8x1xf32>
    %63 = arith.divf %61, %62 : vector<8x1xf32>
    %64 = vector.broadcast %63 : vector<8x1xf32> to vector<8x32xf32>
    %65 = arith.subf %59, %64 : vector<8x32xf32>
    %66 = arith.mulf %65, %65 : vector<8x32xf32>
    %cst_98 = arith.constant dense<0.000000e+00> : vector<8xf32>
    %67 = vector.multi_reduction <add>, %66, %cst_98 [1] : vector<8x32xf32> to vector<8xf32>
    %68 = vector.shape_cast %67 : vector<8xf32> to vector<8x1xf32>
    %cst_99 = arith.constant 3.200000e+01 : f32
    %69 = vector.broadcast %cst_99 : f32 to vector<8x1xf32>
    %70 = arith.divf %68, %69 : vector<8x1xf32>
    %71 = vector.broadcast %63 : vector<8x1xf32> to vector<8x32xf32>
    %72 = arith.subf %59, %71 : vector<8x32xf32>
    %cst_100 = arith.constant 9.99999996E-13 : f32
    %73 = vector.broadcast %cst_100 : f32 to vector<8x1xf32>
    %74 = arith.addf %70, %73 : vector<8x1xf32>
    %75 = math.rsqrt %74 : vector<8x1xf32>
    %76 = vector.broadcast %75 : vector<8x1xf32> to vector<8x32xf32>
    %77 = arith.mulf %72, %76 : vector<8x32xf32>
    %78 = vector.broadcast %3 : vector<1x32xf32> to vector<8x32xf32>
    %79 = arith.mulf %77, %78 : vector<8x32xf32>
    %80 = vector.broadcast %4 : vector<1x32xf32> to vector<8x32xf32>
    %81 = arith.addf %79, %80 : vector<8x32xf32>
    %c0_101 = arith.constant 0 : index
    %c0_102 = arith.constant 0 : index
    %c0_103 = arith.constant 0 : index
    %82 = vector.load %arg3[%c0_101, %c0_102, %c0_103] : memref<2x1x8xf32, #tpu.memory_space<vmem>>, vector<1x1x8xf32>
    %83 = vector.shape_cast %82 : vector<1x1x8xf32> to vector<1x8xf32>
    %cst_104 = arith.constant 1.000000e+00 : f32
    %84 = vector.broadcast %cst_104 : f32 to vector<1x8xf32>
    %85 = arith.subf %84, %83 : vector<1x8xf32>
    %cst_105 = arith.constant -1.000000e+09 : f32
    %86 = vector.broadcast %cst_105 : f32 to vector<1x8xf32>
    %87 = arith.mulf %85, %86 : vector<1x8xf32>
    %88 = arith.truncf %81 : vector<8x32xf32> to vector<8x32xbf16>
    %cst_106 = arith.constant dense<0.000000e+00> : vector<8x96xf32>
    %89 = tpu.matmul %88, %10, %cst_106 {dimension_numbers = #tpu.dot_dimension_numbers<[1], [0], [0], [1], [0, 0, 1, 1], [], []>} : vector<8x32xbf16>, vector<32x96xbf16>, vector<8x96xf32> -> vector<8x96xf32>
    %90 = vector.broadcast %11 : vector<1x96xf32> to vector<8x96xf32>
    %91 = arith.addf %89, %90 : vector<8x96xf32>
    %92 = vector.extract_strided_slice %91 {offsets = [0, 0], sizes = [8, 32], strides = [1, 1]} : vector<8x96xf32> to vector<8x32xf32>
    %93 = vector.extract_strided_slice %91 {offsets = [0, 32], sizes = [8, 32], strides = [1, 1]} : vector<8x96xf32> to vector<8x32xf32>
    %94 = vector.extract_strided_slice %91 {offsets = [0, 64], sizes = [8, 32], strides = [1, 1]} : vector<8x96xf32> to vector<8x32xf32>
    %95 = vector.extract_strided_slice %92 {offsets = [0, 0], sizes = [8, 16], strides = [1, 1]} : vector<8x32xf32> to vector<8x16xf32>
    %96 = vector.extract_strided_slice %93 {offsets = [0, 0], sizes = [8, 16], strides = [1, 1]} : vector<8x32xf32> to vector<8x16xf32>
    %97 = arith.truncf %95 : vector<8x16xf32> to vector<8x16xbf16>
    %98 = arith.truncf %96 : vector<8x16xf32> to vector<8x16xbf16>
    %cst_107 = arith.constant dense<0.000000e+00> : vector<8x8xf32>
    %99 = tpu.matmul %97, %98, %cst_107 {dimension_numbers = #tpu.dot_dimension_numbers<[1], [1], [0], [0], [0, 0, 1, 0], [], []>} : vector<8x16xbf16>, vector<8x16xbf16>, vector<8x8xf32> -> vector<8x8xf32>
    %cst_108 = arith.constant 2.500000e-01 : f32
    %100 = vector.broadcast %cst_108 : f32 to vector<8x8xf32>
    %101 = arith.mulf %99, %100 : vector<8x8xf32>
    %102 = vector.broadcast %87 : vector<1x8xf32> to vector<8x8xf32>
    %103 = arith.addf %101, %102 : vector<8x8xf32>
    %cst_109 = arith.constant dense<0xFF800000> : vector<8xf32>
    %104 = vector.multi_reduction <maximumf>, %103, %cst_109 [1] : vector<8x8xf32> to vector<8xf32>
    %105 = vector.shape_cast %104 : vector<8xf32> to vector<8x1xf32>
    %106 = vector.broadcast %105 : vector<8x1xf32> to vector<8x8xf32>
    %107 = arith.subf %103, %106 : vector<8x8xf32>
    %108 = math.exp %107 : vector<8x8xf32>
    %cst_110 = arith.constant dense<0.000000e+00> : vector<8xf32>
    %109 = vector.multi_reduction <add>, %108, %cst_110 [1] : vector<8x8xf32> to vector<8xf32>
    %110 = vector.shape_cast %109 : vector<8xf32> to vector<8x1xf32>
    %111 = tpu.reciprocal %110 {approx = true} : vector<8x1xf32> -> vector<8x1xf32>
    %112 = vector.broadcast %111 : vector<8x1xf32> to vector<8x8xf32>
    %113 = arith.mulf %108, %112 : vector<8x8xf32>
    %114 = vector.extract_strided_slice %94 {offsets = [0, 0], sizes = [8, 16], strides = [1, 1]} : vector<8x32xf32> to vector<8x16xf32>
    %115 = arith.truncf %113 : vector<8x8xf32> to vector<8x8xbf16>
    %116 = arith.truncf %114 : vector<8x16xf32> to vector<8x16xbf16>
    %cst_111 = arith.constant dense<0.000000e+00> : vector<8x16xf32>
    %117 = tpu.matmul %115, %116, %cst_111 {dimension_numbers = #tpu.dot_dimension_numbers<[1], [0], [0], [1], [0, 0, 1, 1], [], []>} : vector<8x8xbf16>, vector<8x16xbf16>, vector<8x16xf32> -> vector<8x16xf32>
    %118 = vector.extract_strided_slice %12 {offsets = [0, 0], sizes = [16, 32], strides = [1, 1]} : vector<32x32xbf16> to vector<16x32xbf16>
    %119 = arith.truncf %117 : vector<8x16xf32> to vector<8x16xbf16>
    %cst_112 = arith.constant dense<0.000000e+00> : vector<8x32xf32>
    %120 = tpu.matmul %119, %118, %cst_112 {dimension_numbers = #tpu.dot_dimension_numbers<[1], [0], [0], [1], [0, 0, 1, 1], [], []>} : vector<8x16xbf16>, vector<16x32xbf16>, vector<8x32xf32> -> vector<8x32xf32>
    %121 = vector.broadcast %13 : vector<1x32xf32> to vector<8x32xf32>
    %122 = arith.addf %121, %120 : vector<8x32xf32>
    %123 = vector.extract_strided_slice %92 {offsets = [0, 16], sizes = [8, 16], strides = [1, 1]} : vector<8x32xf32> to vector<8x16xf32>
    %124 = vector.extract_strided_slice %93 {offsets = [0, 16], sizes = [8, 16], strides = [1, 1]} : vector<8x32xf32> to vector<8x16xf32>
    %125 = arith.truncf %123 : vector<8x16xf32> to vector<8x16xbf16>
    %126 = arith.truncf %124 : vector<8x16xf32> to vector<8x16xbf16>
    %cst_113 = arith.constant dense<0.000000e+00> : vector<8x8xf32>
    %127 = tpu.matmul %125, %126, %cst_113 {dimension_numbers = #tpu.dot_dimension_numbers<[1], [1], [0], [0], [0, 0, 1, 0], [], []>} : vector<8x16xbf16>, vector<8x16xbf16>, vector<8x8xf32> -> vector<8x8xf32>
    %cst_114 = arith.constant 2.500000e-01 : f32
    %128 = vector.broadcast %cst_114 : f32 to vector<8x8xf32>
    %129 = arith.mulf %127, %128 : vector<8x8xf32>
    %130 = vector.broadcast %87 : vector<1x8xf32> to vector<8x8xf32>
    %131 = arith.addf %129, %130 : vector<8x8xf32>
    %cst_115 = arith.constant dense<0xFF800000> : vector<8xf32>
    %132 = vector.multi_reduction <maximumf>, %131, %cst_115 [1] : vector<8x8xf32> to vector<8xf32>
    %133 = vector.shape_cast %132 : vector<8xf32> to vector<8x1xf32>
    %134 = vector.broadcast %133 : vector<8x1xf32> to vector<8x8xf32>
    %135 = arith.subf %131, %134 : vector<8x8xf32>
    %136 = math.exp %135 : vector<8x8xf32>
    %cst_116 = arith.constant dense<0.000000e+00> : vector<8xf32>
    %137 = vector.multi_reduction <add>, %136, %cst_116 [1] : vector<8x8xf32> to vector<8xf32>
    %138 = vector.shape_cast %137 : vector<8xf32> to vector<8x1xf32>
    %139 = tpu.reciprocal %138 {approx = true} : vector<8x1xf32> -> vector<8x1xf32>
    %140 = vector.broadcast %139 : vector<8x1xf32> to vector<8x8xf32>
    %141 = arith.mulf %136, %140 : vector<8x8xf32>
    %142 = vector.extract_strided_slice %94 {offsets = [0, 16], sizes = [8, 16], strides = [1, 1]} : vector<8x32xf32> to vector<8x16xf32>
    %143 = arith.truncf %141 : vector<8x8xf32> to vector<8x8xbf16>
    %144 = arith.truncf %142 : vector<8x16xf32> to vector<8x16xbf16>
    %cst_117 = arith.constant dense<0.000000e+00> : vector<8x16xf32>
    %145 = tpu.matmul %143, %144, %cst_117 {dimension_numbers = #tpu.dot_dimension_numbers<[1], [0], [0], [1], [0, 0, 1, 1], [], []>} : vector<8x8xbf16>, vector<8x16xbf16>, vector<8x16xf32> -> vector<8x16xf32>
    %146 = vector.extract_strided_slice %12 {offsets = [16, 0], sizes = [16, 32], strides = [1, 1]} : vector<32x32xbf16> to vector<16x32xbf16>
    %147 = arith.truncf %145 : vector<8x16xf32> to vector<8x16xbf16>
    %cst_118 = arith.constant dense<0.000000e+00> : vector<8x32xf32>
    %148 = tpu.matmul %147, %146, %cst_118 {dimension_numbers = #tpu.dot_dimension_numbers<[1], [0], [0], [1], [0, 0, 1, 1], [], []>} : vector<8x16xbf16>, vector<16x32xbf16>, vector<8x32xf32> -> vector<8x32xf32>
    %149 = arith.addf %122, %148 : vector<8x32xf32>
    %150 = arith.addf %81, %149 : vector<8x32xf32>
    %cst_119 = arith.constant dense<0.000000e+00> : vector<8xf32>
    %151 = vector.multi_reduction <add>, %150, %cst_119 [1] : vector<8x32xf32> to vector<8xf32>
    %152 = vector.shape_cast %151 : vector<8xf32> to vector<8x1xf32>
    %cst_120 = arith.constant 3.200000e+01 : f32
    %153 = vector.broadcast %cst_120 : f32 to vector<8x1xf32>
    %154 = arith.divf %152, %153 : vector<8x1xf32>
    %155 = vector.broadcast %154 : vector<8x1xf32> to vector<8x32xf32>
    %156 = arith.subf %150, %155 : vector<8x32xf32>
    %157 = arith.mulf %156, %156 : vector<8x32xf32>
    %cst_121 = arith.constant dense<0.000000e+00> : vector<8xf32>
    %158 = vector.multi_reduction <add>, %157, %cst_121 [1] : vector<8x32xf32> to vector<8xf32>
    %159 = vector.shape_cast %158 : vector<8xf32> to vector<8x1xf32>
    %cst_122 = arith.constant 3.200000e+01 : f32
    %160 = vector.broadcast %cst_122 : f32 to vector<8x1xf32>
    %161 = arith.divf %159, %160 : vector<8x1xf32>
    %162 = vector.broadcast %154 : vector<8x1xf32> to vector<8x32xf32>
    %163 = arith.subf %150, %162 : vector<8x32xf32>
    %cst_123 = arith.constant 9.99999996E-13 : f32
    %164 = vector.broadcast %cst_123 : f32 to vector<8x1xf32>
    %165 = arith.addf %161, %164 : vector<8x1xf32>
    %166 = math.rsqrt %165 : vector<8x1xf32>
    %167 = vector.broadcast %166 : vector<8x1xf32> to vector<8x32xf32>
    %168 = arith.mulf %163, %167 : vector<8x32xf32>
    %169 = vector.broadcast %14 : vector<1x32xf32> to vector<8x32xf32>
    %170 = arith.mulf %168, %169 : vector<8x32xf32>
    %171 = vector.broadcast %15 : vector<1x32xf32> to vector<8x32xf32>
    %172 = arith.addf %170, %171 : vector<8x32xf32>
    %173 = arith.truncf %172 : vector<8x32xf32> to vector<8x32xbf16>
    %cst_124 = arith.constant dense<0.000000e+00> : vector<8x64xf32>
    %174 = tpu.matmul %173, %30, %cst_124 {dimension_numbers = #tpu.dot_dimension_numbers<[1], [0], [0], [1], [0, 0, 1, 1], [], []>} : vector<8x32xbf16>, vector<32x64xbf16>, vector<8x64xf32> -> vector<8x64xf32>
    %175 = vector.broadcast %31 : vector<1x64xf32> to vector<8x64xf32>
    %176 = arith.addf %174, %175 : vector<8x64xf32>
    %cst_125 = arith.constant 5.000000e-01 : f32
    %177 = vector.broadcast %cst_125 : f32 to vector<8x64xf32>
    %178 = arith.mulf %177, %176 : vector<8x64xf32>
    %cst_126 = arith.constant 4.471500e-02 : f32
    %179 = vector.broadcast %cst_126 : f32 to vector<8x64xf32>
    %180 = arith.mulf %179, %176 : vector<8x64xf32>
    %181 = arith.mulf %180, %176 : vector<8x64xf32>
    %182 = arith.mulf %181, %176 : vector<8x64xf32>
    %183 = arith.addf %176, %182 : vector<8x64xf32>
    %cst_127 = arith.constant 0.797884583 : f32
    %184 = vector.broadcast %cst_127 : f32 to vector<8x64xf32>
    %185 = arith.mulf %184, %183 : vector<8x64xf32>
    %186 = math.tanh %185 : vector<8x64xf32>
    %cst_128 = arith.constant 1.000000e+00 : f32
    %187 = vector.broadcast %cst_128 : f32 to vector<8x64xf32>
    %188 = arith.addf %187, %186 : vector<8x64xf32>
    %189 = arith.mulf %178, %188 : vector<8x64xf32>
    %190 = arith.truncf %189 : vector<8x64xf32> to vector<8x64xbf16>
    %cst_129 = arith.constant dense<0.000000e+00> : vector<8x32xf32>
    %191 = tpu.matmul %190, %32, %cst_129 {dimension_numbers = #tpu.dot_dimension_numbers<[1], [0], [0], [1], [0, 0, 1, 1], [], []>} : vector<8x64xbf16>, vector<64x32xbf16>, vector<8x32xf32> -> vector<8x32xf32>
    %192 = vector.broadcast %33 : vector<1x32xf32> to vector<8x32xf32>
    %193 = arith.addf %191, %192 : vector<8x32xf32>
    %194 = arith.addf %172, %193 : vector<8x32xf32>
    %cst_130 = arith.constant dense<0.000000e+00> : vector<8xf32>
    %195 = vector.multi_reduction <add>, %194, %cst_130 [1] : vector<8x32xf32> to vector<8xf32>
    %196 = vector.shape_cast %195 : vector<8xf32> to vector<8x1xf32>
    %cst_131 = arith.constant 3.200000e+01 : f32
    %197 = vector.broadcast %cst_131 : f32 to vector<8x1xf32>
    %198 = arith.divf %196, %197 : vector<8x1xf32>
    %199 = vector.broadcast %198 : vector<8x1xf32> to vector<8x32xf32>
    %200 = arith.subf %194, %199 : vector<8x32xf32>
    %201 = arith.mulf %200, %200 : vector<8x32xf32>
    %cst_132 = arith.constant dense<0.000000e+00> : vector<8xf32>
    %202 = vector.multi_reduction <add>, %201, %cst_132 [1] : vector<8x32xf32> to vector<8xf32>
    %203 = vector.shape_cast %202 : vector<8xf32> to vector<8x1xf32>
    %cst_133 = arith.constant 3.200000e+01 : f32
    %204 = vector.broadcast %cst_133 : f32 to vector<8x1xf32>
    %205 = arith.divf %203, %204 : vector<8x1xf32>
    %206 = vector.broadcast %198 : vector<8x1xf32> to vector<8x32xf32>
    %207 = arith.subf %194, %206 : vector<8x32xf32>
    %cst_134 = arith.constant 9.99999996E-13 : f32
    %208 = vector.broadcast %cst_134 : f32 to vector<8x1xf32>
    %209 = arith.addf %205, %208 : vector<8x1xf32>
    %210 = math.rsqrt %209 : vector<8x1xf32>
    %211 = vector.broadcast %210 : vector<8x1xf32> to vector<8x32xf32>
    %212 = arith.mulf %207, %211 : vector<8x32xf32>
    %213 = vector.broadcast %34 : vector<1x32xf32> to vector<8x32xf32>
    %214 = arith.mulf %212, %213 : vector<8x32xf32>
    %215 = vector.broadcast %35 : vector<1x32xf32> to vector<8x32xf32>
    %216 = arith.addf %214, %215 : vector<8x32xf32>
    %c0_135 = arith.constant 0 : index
    %c0_136 = arith.constant 0 : index
    %c0_137 = arith.constant 0 : index
    %217 = vector.load %arg1[%c0_135, %c0_136, %c0_137] : memref<2x7x1xi32, #tpu.memory_space<vmem>>, vector<1x7x1xi32>
    %218 = vector.shape_cast %217 : vector<1x7x1xi32> to vector<7x1xi32>
    %219 = tpu.iota {dimensions = array<i32: 1>} : vector<7x64xi32>
    %220 = vector.broadcast %218 : vector<7x1xi32> to vector<7x64xi32>
    %221 = arith.cmpi eq, %219, %220 : vector<7x64xi32>
    %222 = arith.extui %221 : vector<7x64xi1> to vector<7x64xi32>
    %223 = arith.sitofp %222 : vector<7x64xi32> to vector<7x64xf32>
    %224 = arith.truncf %223 : vector<7x64xf32> to vector<7x64xbf16>
    %225 = arith.truncf %5 : vector<64x32xf32> to vector<64x32xbf16>
    %cst_138 = arith.constant dense<0.000000e+00> : vector<7x32xf32>
    %226 = tpu.matmul %224, %225, %cst_138 {dimension_numbers = #tpu.dot_dimension_numbers<[1], [0], [0], [1], [0, 0, 1, 1], [], []>} : vector<7x64xbf16>, vector<64x32xbf16>, vector<7x32xf32> -> vector<7x32xf32>
    %227 = arith.addf %226, %6 : vector<7x32xf32>
    %228 = vector.broadcast %7 : vector<1x32xf32> to vector<7x32xf32>
    %229 = arith.addf %227, %228 : vector<7x32xf32>
    %cst_139 = arith.constant dense<0.000000e+00> : vector<7xf32>
    %230 = vector.multi_reduction <add>, %229, %cst_139 [1] : vector<7x32xf32> to vector<7xf32>
    %231 = vector.shape_cast %230 : vector<7xf32> to vector<7x1xf32>
    %cst_140 = arith.constant 3.200000e+01 : f32
    %232 = vector.broadcast %cst_140 : f32 to vector<7x1xf32>
    %233 = arith.divf %231, %232 : vector<7x1xf32>
    %234 = vector.broadcast %233 : vector<7x1xf32> to vector<7x32xf32>
    %235 = arith.subf %229, %234 : vector<7x32xf32>
    %236 = arith.mulf %235, %235 : vector<7x32xf32>
    %cst_141 = arith.constant dense<0.000000e+00> : vector<7xf32>
    %237 = vector.multi_reduction <add>, %236, %cst_141 [1] : vector<7x32xf32> to vector<7xf32>
    %238 = vector.shape_cast %237 : vector<7xf32> to vector<7x1xf32>
    %cst_142 = arith.constant 3.200000e+01 : f32
    %239 = vector.broadcast %cst_142 : f32 to vector<7x1xf32>
    %240 = arith.divf %238, %239 : vector<7x1xf32>
    %241 = vector.broadcast %233 : vector<7x1xf32> to vector<7x32xf32>
    %242 = arith.subf %229, %241 : vector<7x32xf32>
    %cst_143 = arith.constant 9.99999996E-13 : f32
    %243 = vector.broadcast %cst_143 : f32 to vector<7x1xf32>
    %244 = arith.addf %240, %243 : vector<7x1xf32>
    %245 = math.rsqrt %244 : vector<7x1xf32>
    %246 = vector.broadcast %245 : vector<7x1xf32> to vector<7x32xf32>
    %247 = arith.mulf %242, %246 : vector<7x32xf32>
    %248 = vector.broadcast %8 : vector<1x32xf32> to vector<7x32xf32>
    %249 = arith.mulf %247, %248 : vector<7x32xf32>
    %250 = vector.broadcast %9 : vector<1x32xf32> to vector<7x32xf32>
    %251 = arith.addf %249, %250 : vector<7x32xf32>
    %252 = tpu.iota {dimensions = array<i32: 0>} : vector<7x7xi32>
    %253 = tpu.iota {dimensions = array<i32: 1>} : vector<7x7xi32>
    %254 = arith.cmpi sle, %253, %252 : vector<7x7xi32>
    %c0_144 = arith.constant 0 : index
    %c0_145 = arith.constant 0 : index
    %c0_146 = arith.constant 0 : index
    %255 = vector.load %arg4[%c0_144, %c0_145, %c0_146] : memref<2x1x7xf32, #tpu.memory_space<vmem>>, vector<1x1x7xf32>
    %256 = vector.shape_cast %255 : vector<1x1x7xf32> to vector<1x7xf32>
    %cst_147 = arith.constant 5.000000e-01 : f32
    %257 = vector.broadcast %cst_147 : f32 to vector<1x7xf32>
    %258 = arith.cmpf ogt, %256, %257 : vector<1x7xf32>
    %259 = vector.broadcast %258 : vector<1x7xi1> to vector<7x7xi1>
    %260 = arith.andi %254, %259 : vector<7x7xi1>
    %cst_148 = arith.constant 0.000000e+00 : f32
    %cst_149 = arith.constant -1.000000e+09 : f32
    %261 = vector.broadcast %cst_148 : f32 to vector<7x7xf32>
    %262 = vector.broadcast %cst_149 : f32 to vector<7x7xf32>
    %263 = arith.select %260, %261, %262 : vector<7x7xi1>, vector<7x7xf32>
    %c0_150 = arith.constant 0 : index
    %c0_151 = arith.constant 0 : index
    %c0_152 = arith.constant 0 : index
    %264 = vector.load %arg3[%c0_150, %c0_151, %c0_152] : memref<2x1x8xf32, #tpu.memory_space<vmem>>, vector<1x1x8xf32>
    %265 = vector.shape_cast %264 : vector<1x1x8xf32> to vector<1x8xf32>
    %cst_153 = arith.constant 1.000000e+00 : f32
    %266 = vector.broadcast %cst_153 : f32 to vector<1x8xf32>
    %267 = arith.subf %266, %265 : vector<1x8xf32>
    %cst_154 = arith.constant -1.000000e+09 : f32
    %268 = vector.broadcast %cst_154 : f32 to vector<1x8xf32>
    %269 = arith.mulf %267, %268 : vector<1x8xf32>
    %270 = arith.truncf %251 : vector<7x32xf32> to vector<7x32xbf16>
    %cst_155 = arith.constant dense<0.000000e+00> : vector<7x96xf32>
    %271 = tpu.matmul %270, %16, %cst_155 {dimension_numbers = #tpu.dot_dimension_numbers<[1], [0], [0], [1], [0, 0, 1, 1], [], []>} : vector<7x32xbf16>, vector<32x96xbf16>, vector<7x96xf32> -> vector<7x96xf32>
    %272 = vector.broadcast %17 : vector<1x96xf32> to vector<7x96xf32>
    %273 = arith.addf %271, %272 : vector<7x96xf32>
    %274 = vector.extract_strided_slice %273 {offsets = [0, 0], sizes = [7, 32], strides = [1, 1]} : vector<7x96xf32> to vector<7x32xf32>
    %275 = vector.extract_strided_slice %273 {offsets = [0, 32], sizes = [7, 32], strides = [1, 1]} : vector<7x96xf32> to vector<7x32xf32>
    %276 = vector.extract_strided_slice %273 {offsets = [0, 64], sizes = [7, 32], strides = [1, 1]} : vector<7x96xf32> to vector<7x32xf32>
    %277 = vector.extract_strided_slice %274 {offsets = [0, 0], sizes = [7, 16], strides = [1, 1]} : vector<7x32xf32> to vector<7x16xf32>
    %278 = vector.extract_strided_slice %275 {offsets = [0, 0], sizes = [7, 16], strides = [1, 1]} : vector<7x32xf32> to vector<7x16xf32>
    %279 = arith.truncf %277 : vector<7x16xf32> to vector<7x16xbf16>
    %280 = arith.truncf %278 : vector<7x16xf32> to vector<7x16xbf16>
    %cst_156 = arith.constant dense<0.000000e+00> : vector<7x7xf32>
    %281 = tpu.matmul %279, %280, %cst_156 {dimension_numbers = #tpu.dot_dimension_numbers<[1], [1], [0], [0], [0, 0, 1, 0], [], []>} : vector<7x16xbf16>, vector<7x16xbf16>, vector<7x7xf32> -> vector<7x7xf32>
    %cst_157 = arith.constant 2.500000e-01 : f32
    %282 = vector.broadcast %cst_157 : f32 to vector<7x7xf32>
    %283 = arith.mulf %281, %282 : vector<7x7xf32>
    %284 = arith.addf %283, %263 : vector<7x7xf32>
    %cst_158 = arith.constant dense<0xFF800000> : vector<7xf32>
    %285 = vector.multi_reduction <maximumf>, %284, %cst_158 [1] : vector<7x7xf32> to vector<7xf32>
    %286 = vector.shape_cast %285 : vector<7xf32> to vector<7x1xf32>
    %287 = vector.broadcast %286 : vector<7x1xf32> to vector<7x7xf32>
    %288 = arith.subf %284, %287 : vector<7x7xf32>
    %289 = math.exp %288 : vector<7x7xf32>
    %cst_159 = arith.constant dense<0.000000e+00> : vector<7xf32>
    %290 = vector.multi_reduction <add>, %289, %cst_159 [1] : vector<7x7xf32> to vector<7xf32>
    %291 = vector.shape_cast %290 : vector<7xf32> to vector<7x1xf32>
    %292 = tpu.reciprocal %291 {approx = true} : vector<7x1xf32> -> vector<7x1xf32>
    %293 = vector.broadcast %292 : vector<7x1xf32> to vector<7x7xf32>
    %294 = arith.mulf %289, %293 : vector<7x7xf32>
    %295 = vector.extract_strided_slice %276 {offsets = [0, 0], sizes = [7, 16], strides = [1, 1]} : vector<7x32xf32> to vector<7x16xf32>
    %296 = arith.truncf %294 : vector<7x7xf32> to vector<7x7xbf16>
    %297 = arith.truncf %295 : vector<7x16xf32> to vector<7x16xbf16>
    %cst_160 = arith.constant dense<0.000000e+00> : vector<7x16xf32>
    %298 = tpu.matmul %296, %297, %cst_160 {dimension_numbers = #tpu.dot_dimension_numbers<[1], [0], [0], [1], [0, 0, 1, 1], [], []>} : vector<7x7xbf16>, vector<7x16xbf16>, vector<7x16xf32> -> vector<7x16xf32>
    %299 = vector.extract_strided_slice %18 {offsets = [0, 0], sizes = [16, 32], strides = [1, 1]} : vector<32x32xbf16> to vector<16x32xbf16>
    %300 = arith.truncf %298 : vector<7x16xf32> to vector<7x16xbf16>
    %cst_161 = arith.constant dense<0.000000e+00> : vector<7x32xf32>
    %301 = tpu.matmul %300, %299, %cst_161 {dimension_numbers = #tpu.dot_dimension_numbers<[1], [0], [0], [1], [0, 0, 1, 1], [], []>} : vector<7x16xbf16>, vector<16x32xbf16>, vector<7x32xf32> -> vector<7x32xf32>
    %302 = vector.broadcast %19 : vector<1x32xf32> to vector<7x32xf32>
    %303 = arith.addf %302, %301 : vector<7x32xf32>
    %304 = vector.extract_strided_slice %274 {offsets = [0, 16], sizes = [7, 16], strides = [1, 1]} : vector<7x32xf32> to vector<7x16xf32>
    %305 = vector.extract_strided_slice %275 {offsets = [0, 16], sizes = [7, 16], strides = [1, 1]} : vector<7x32xf32> to vector<7x16xf32>
    %306 = arith.truncf %304 : vector<7x16xf32> to vector<7x16xbf16>
    %307 = arith.truncf %305 : vector<7x16xf32> to vector<7x16xbf16>
    %cst_162 = arith.constant dense<0.000000e+00> : vector<7x7xf32>
    %308 = tpu.matmul %306, %307, %cst_162 {dimension_numbers = #tpu.dot_dimension_numbers<[1], [1], [0], [0], [0, 0, 1, 0], [], []>} : vector<7x16xbf16>, vector<7x16xbf16>, vector<7x7xf32> -> vector<7x7xf32>
    %cst_163 = arith.constant 2.500000e-01 : f32
    %309 = vector.broadcast %cst_163 : f32 to vector<7x7xf32>
    %310 = arith.mulf %308, %309 : vector<7x7xf32>
    %311 = arith.addf %310, %263 : vector<7x7xf32>
    %cst_164 = arith.constant dense<0xFF800000> : vector<7xf32>
    %312 = vector.multi_reduction <maximumf>, %311, %cst_164 [1] : vector<7x7xf32> to vector<7xf32>
    %313 = vector.shape_cast %312 : vector<7xf32> to vector<7x1xf32>
    %314 = vector.broadcast %313 : vector<7x1xf32> to vector<7x7xf32>
    %315 = arith.subf %311, %314 : vector<7x7xf32>
    %316 = math.exp %315 : vector<7x7xf32>
    %cst_165 = arith.constant dense<0.000000e+00> : vector<7xf32>
    %317 = vector.multi_reduction <add>, %316, %cst_165 [1] : vector<7x7xf32> to vector<7xf32>
    %318 = vector.shape_cast %317 : vector<7xf32> to vector<7x1xf32>
    %319 = tpu.reciprocal %318 {approx = true} : vector<7x1xf32> -> vector<7x1xf32>
    %320 = vector.broadcast %319 : vector<7x1xf32> to vector<7x7xf32>
    %321 = arith.mulf %316, %320 : vector<7x7xf32>
    %322 = vector.extract_strided_slice %276 {offsets = [0, 16], sizes = [7, 16], strides = [1, 1]} : vector<7x32xf32> to vector<7x16xf32>
    %323 = arith.truncf %321 : vector<7x7xf32> to vector<7x7xbf16>
    %324 = arith.truncf %322 : vector<7x16xf32> to vector<7x16xbf16>
    %cst_166 = arith.constant dense<0.000000e+00> : vector<7x16xf32>
    %325 = tpu.matmul %323, %324, %cst_166 {dimension_numbers = #tpu.dot_dimension_numbers<[1], [0], [0], [1], [0, 0, 1, 1], [], []>} : vector<7x7xbf16>, vector<7x16xbf16>, vector<7x16xf32> -> vector<7x16xf32>
    %326 = vector.extract_strided_slice %18 {offsets = [16, 0], sizes = [16, 32], strides = [1, 1]} : vector<32x32xbf16> to vector<16x32xbf16>
    %327 = arith.truncf %325 : vector<7x16xf32> to vector<7x16xbf16>
    %cst_167 = arith.constant dense<0.000000e+00> : vector<7x32xf32>
    %328 = tpu.matmul %327, %326, %cst_167 {dimension_numbers = #tpu.dot_dimension_numbers<[1], [0], [0], [1], [0, 0, 1, 1], [], []>} : vector<7x16xbf16>, vector<16x32xbf16>, vector<7x32xf32> -> vector<7x32xf32>
    %329 = arith.addf %303, %328 : vector<7x32xf32>
    %330 = arith.addf %251, %329 : vector<7x32xf32>
    %cst_168 = arith.constant dense<0.000000e+00> : vector<7xf32>
    %331 = vector.multi_reduction <add>, %330, %cst_168 [1] : vector<7x32xf32> to vector<7xf32>
    %332 = vector.shape_cast %331 : vector<7xf32> to vector<7x1xf32>
    %cst_169 = arith.constant 3.200000e+01 : f32
    %333 = vector.broadcast %cst_169 : f32 to vector<7x1xf32>
    %334 = arith.divf %332, %333 : vector<7x1xf32>
    %335 = vector.broadcast %334 : vector<7x1xf32> to vector<7x32xf32>
    %336 = arith.subf %330, %335 : vector<7x32xf32>
    %337 = arith.mulf %336, %336 : vector<7x32xf32>
    %cst_170 = arith.constant dense<0.000000e+00> : vector<7xf32>
    %338 = vector.multi_reduction <add>, %337, %cst_170 [1] : vector<7x32xf32> to vector<7xf32>
    %339 = vector.shape_cast %338 : vector<7xf32> to vector<7x1xf32>
    %cst_171 = arith.constant 3.200000e+01 : f32
    %340 = vector.broadcast %cst_171 : f32 to vector<7x1xf32>
    %341 = arith.divf %339, %340 : vector<7x1xf32>
    %342 = vector.broadcast %334 : vector<7x1xf32> to vector<7x32xf32>
    %343 = arith.subf %330, %342 : vector<7x32xf32>
    %cst_172 = arith.constant 9.99999996E-13 : f32
    %344 = vector.broadcast %cst_172 : f32 to vector<7x1xf32>
    %345 = arith.addf %341, %344 : vector<7x1xf32>
    %346 = math.rsqrt %345 : vector<7x1xf32>
    %347 = vector.broadcast %346 : vector<7x1xf32> to vector<7x32xf32>
    %348 = arith.mulf %343, %347 : vector<7x32xf32>
    %349 = vector.broadcast %20 : vector<1x32xf32> to vector<7x32xf32>
    %350 = arith.mulf %348, %349 : vector<7x32xf32>
    %351 = vector.broadcast %21 : vector<1x32xf32> to vector<7x32xf32>
    %352 = arith.addf %350, %351 : vector<7x32xf32>
    %353 = arith.truncf %352 : vector<7x32xf32> to vector<7x32xbf16>
    %cst_173 = arith.constant dense<0.000000e+00> : vector<7x32xf32>
    %354 = tpu.matmul %353, %22, %cst_173 {dimension_numbers = #tpu.dot_dimension_numbers<[1], [0], [0], [1], [0, 0, 1, 1], [], []>} : vector<7x32xbf16>, vector<32x32xbf16>, vector<7x32xf32> -> vector<7x32xf32>
    %355 = vector.broadcast %23 : vector<1x32xf32> to vector<7x32xf32>
    %356 = arith.addf %354, %355 : vector<7x32xf32>
    %357 = arith.truncf %216 : vector<8x32xf32> to vector<8x32xbf16>
    %cst_174 = arith.constant dense<0.000000e+00> : vector<8x64xf32>
    %358 = tpu.matmul %357, %24, %cst_174 {dimension_numbers = #tpu.dot_dimension_numbers<[1], [0], [0], [1], [0, 0, 1, 1], [], []>} : vector<8x32xbf16>, vector<32x64xbf16>, vector<8x64xf32> -> vector<8x64xf32>
    %359 = vector.broadcast %25 : vector<1x64xf32> to vector<8x64xf32>
    %360 = arith.addf %358, %359 : vector<8x64xf32>
    %361 = vector.extract_strided_slice %360 {offsets = [0, 0], sizes = [8, 32], strides = [1, 1]} : vector<8x64xf32> to vector<8x32xf32>
    %362 = vector.extract_strided_slice %360 {offsets = [0, 32], sizes = [8, 32], strides = [1, 1]} : vector<8x64xf32> to vector<8x32xf32>
    %363 = vector.extract_strided_slice %356 {offsets = [0, 0], sizes = [7, 16], strides = [1, 1]} : vector<7x32xf32> to vector<7x16xf32>
    %364 = vector.extract_strided_slice %361 {offsets = [0, 0], sizes = [8, 16], strides = [1, 1]} : vector<8x32xf32> to vector<8x16xf32>
    %365 = arith.truncf %363 : vector<7x16xf32> to vector<7x16xbf16>
    %366 = arith.truncf %364 : vector<8x16xf32> to vector<8x16xbf16>
    %cst_175 = arith.constant dense<0.000000e+00> : vector<7x8xf32>
    %367 = tpu.matmul %365, %366, %cst_175 {dimension_numbers = #tpu.dot_dimension_numbers<[1], [1], [0], [0], [0, 0, 1, 0], [], []>} : vector<7x16xbf16>, vector<8x16xbf16>, vector<7x8xf32> -> vector<7x8xf32>
    %cst_176 = arith.constant 2.500000e-01 : f32
    %368 = vector.broadcast %cst_176 : f32 to vector<7x8xf32>
    %369 = arith.mulf %367, %368 : vector<7x8xf32>
    %370 = vector.broadcast %269 : vector<1x8xf32> to vector<7x8xf32>
    %371 = arith.addf %369, %370 : vector<7x8xf32>
    %cst_177 = arith.constant dense<0xFF800000> : vector<7xf32>
    %372 = vector.multi_reduction <maximumf>, %371, %cst_177 [1] : vector<7x8xf32> to vector<7xf32>
    %373 = vector.shape_cast %372 : vector<7xf32> to vector<7x1xf32>
    %374 = vector.broadcast %373 : vector<7x1xf32> to vector<7x8xf32>
    %375 = arith.subf %371, %374 : vector<7x8xf32>
    %376 = math.exp %375 : vector<7x8xf32>
    %cst_178 = arith.constant dense<0.000000e+00> : vector<7xf32>
    %377 = vector.multi_reduction <add>, %376, %cst_178 [1] : vector<7x8xf32> to vector<7xf32>
    %378 = vector.shape_cast %377 : vector<7xf32> to vector<7x1xf32>
    %379 = tpu.reciprocal %378 {approx = true} : vector<7x1xf32> -> vector<7x1xf32>
    %380 = vector.broadcast %379 : vector<7x1xf32> to vector<7x8xf32>
    %381 = arith.mulf %376, %380 : vector<7x8xf32>
    %382 = vector.extract_strided_slice %362 {offsets = [0, 0], sizes = [8, 16], strides = [1, 1]} : vector<8x32xf32> to vector<8x16xf32>
    %383 = arith.truncf %381 : vector<7x8xf32> to vector<7x8xbf16>
    %384 = arith.truncf %382 : vector<8x16xf32> to vector<8x16xbf16>
    %cst_179 = arith.constant dense<0.000000e+00> : vector<7x16xf32>
    %385 = tpu.matmul %383, %384, %cst_179 {dimension_numbers = #tpu.dot_dimension_numbers<[1], [0], [0], [1], [0, 0, 1, 1], [], []>} : vector<7x8xbf16>, vector<8x16xbf16>, vector<7x16xf32> -> vector<7x16xf32>
    %386 = vector.extract_strided_slice %26 {offsets = [0, 0], sizes = [16, 32], strides = [1, 1]} : vector<32x32xbf16> to vector<16x32xbf16>
    %387 = arith.truncf %385 : vector<7x16xf32> to vector<7x16xbf16>
    %cst_180 = arith.constant dense<0.000000e+00> : vector<7x32xf32>
    %388 = tpu.matmul %387, %386, %cst_180 {dimension_numbers = #tpu.dot_dimension_numbers<[1], [0], [0], [1], [0, 0, 1, 1], [], []>} : vector<7x16xbf16>, vector<16x32xbf16>, vector<7x32xf32> -> vector<7x32xf32>
    %389 = vector.broadcast %27 : vector<1x32xf32> to vector<7x32xf32>
    %390 = arith.addf %389, %388 : vector<7x32xf32>
    %391 = vector.extract_strided_slice %356 {offsets = [0, 16], sizes = [7, 16], strides = [1, 1]} : vector<7x32xf32> to vector<7x16xf32>
    %392 = vector.extract_strided_slice %361 {offsets = [0, 16], sizes = [8, 16], strides = [1, 1]} : vector<8x32xf32> to vector<8x16xf32>
    %393 = arith.truncf %391 : vector<7x16xf32> to vector<7x16xbf16>
    %394 = arith.truncf %392 : vector<8x16xf32> to vector<8x16xbf16>
    %cst_181 = arith.constant dense<0.000000e+00> : vector<7x8xf32>
    %395 = tpu.matmul %393, %394, %cst_181 {dimension_numbers = #tpu.dot_dimension_numbers<[1], [1], [0], [0], [0, 0, 1, 0], [], []>} : vector<7x16xbf16>, vector<8x16xbf16>, vector<7x8xf32> -> vector<7x8xf32>
    %cst_182 = arith.constant 2.500000e-01 : f32
    %396 = vector.broadcast %cst_182 : f32 to vector<7x8xf32>
    %397 = arith.mulf %395, %396 : vector<7x8xf32>
    %398 = vector.broadcast %269 : vector<1x8xf32> to vector<7x8xf32>
    %399 = arith.addf %397, %398 : vector<7x8xf32>
    %cst_183 = arith.constant dense<0xFF800000> : vector<7xf32>
    %400 = vector.multi_reduction <maximumf>, %399, %cst_183 [1] : vector<7x8xf32> to vector<7xf32>
    %401 = vector.shape_cast %400 : vector<7xf32> to vector<7x1xf32>
    %402 = vector.broadcast %401 : vector<7x1xf32> to vector<7x8xf32>
    %403 = arith.subf %399, %402 : vector<7x8xf32>
    %404 = math.exp %403 : vector<7x8xf32>
    %cst_184 = arith.constant dense<0.000000e+00> : vector<7xf32>
    %405 = vector.multi_reduction <add>, %404, %cst_184 [1] : vector<7x8xf32> to vector<7xf32>
    %406 = vector.shape_cast %405 : vector<7xf32> to vector<7x1xf32>
    %407 = tpu.reciprocal %406 {approx = true} : vector<7x1xf32> -> vector<7x1xf32>
    %408 = vector.broadcast %407 : vector<7x1xf32> to vector<7x8xf32>
    %409 = arith.mulf %404, %408 : vector<7x8xf32>
    %410 = vector.extract_strided_slice %362 {offsets = [0, 16], sizes = [8, 16], strides = [1, 1]} : vector<8x32xf32> to vector<8x16xf32>
    %411 = arith.truncf %409 : vector<7x8xf32> to vector<7x8xbf16>
    %412 = arith.truncf %410 : vector<8x16xf32> to vector<8x16xbf16>
    %cst_185 = arith.constant dense<0.000000e+00> : vector<7x16xf32>
    %413 = tpu.matmul %411, %412, %cst_185 {dimension_numbers = #tpu.dot_dimension_numbers<[1], [0], [0], [1], [0, 0, 1, 1], [], []>} : vector<7x8xbf16>, vector<8x16xbf16>, vector<7x16xf32> -> vector<7x16xf32>
    %414 = vector.extract_strided_slice %26 {offsets = [16, 0], sizes = [16, 32], strides = [1, 1]} : vector<32x32xbf16> to vector<16x32xbf16>
    %415 = arith.truncf %413 : vector<7x16xf32> to vector<7x16xbf16>
    %cst_186 = arith.constant dense<0.000000e+00> : vector<7x32xf32>
    %416 = tpu.matmul %415, %414, %cst_186 {dimension_numbers = #tpu.dot_dimension_numbers<[1], [0], [0], [1], [0, 0, 1, 1], [], []>} : vector<7x16xbf16>, vector<16x32xbf16>, vector<7x32xf32> -> vector<7x32xf32>
    %417 = arith.addf %390, %416 : vector<7x32xf32>
    %418 = arith.addf %352, %417 : vector<7x32xf32>
    %cst_187 = arith.constant dense<0.000000e+00> : vector<7xf32>
    %419 = vector.multi_reduction <add>, %418, %cst_187 [1] : vector<7x32xf32> to vector<7xf32>
    %420 = vector.shape_cast %419 : vector<7xf32> to vector<7x1xf32>
    %cst_188 = arith.constant 3.200000e+01 : f32
    %421 = vector.broadcast %cst_188 : f32 to vector<7x1xf32>
    %422 = arith.divf %420, %421 : vector<7x1xf32>
    %423 = vector.broadcast %422 : vector<7x1xf32> to vector<7x32xf32>
    %424 = arith.subf %418, %423 : vector<7x32xf32>
    %425 = arith.mulf %424, %424 : vector<7x32xf32>
    %cst_189 = arith.constant dense<0.000000e+00> : vector<7xf32>
    %426 = vector.multi_reduction <add>, %425, %cst_189 [1] : vector<7x32xf32> to vector<7xf32>
    %427 = vector.shape_cast %426 : vector<7xf32> to vector<7x1xf32>
    %cst_190 = arith.constant 3.200000e+01 : f32
    %428 = vector.broadcast %cst_190 : f32 to vector<7x1xf32>
    %429 = arith.divf %427, %428 : vector<7x1xf32>
    %430 = vector.broadcast %422 : vector<7x1xf32> to vector<7x32xf32>
    %431 = arith.subf %418, %430 : vector<7x32xf32>
    %cst_191 = arith.constant 9.99999996E-13 : f32
    %432 = vector.broadcast %cst_191 : f32 to vector<7x1xf32>
    %433 = arith.addf %429, %432 : vector<7x1xf32>
    %434 = math.rsqrt %433 : vector<7x1xf32>
    %435 = vector.broadcast %434 : vector<7x1xf32> to vector<7x32xf32>
    %436 = arith.mulf %431, %435 : vector<7x32xf32>
    %437 = vector.broadcast %28 : vector<1x32xf32> to vector<7x32xf32>
    %438 = arith.mulf %436, %437 : vector<7x32xf32>
    %439 = vector.broadcast %29 : vector<1x32xf32> to vector<7x32xf32>
    %440 = arith.addf %438, %439 : vector<7x32xf32>
    %441 = arith.truncf %440 : vector<7x32xf32> to vector<7x32xbf16>
    %cst_192 = arith.constant dense<0.000000e+00> : vector<7x64xf32>
    %442 = tpu.matmul %441, %36, %cst_192 {dimension_numbers = #tpu.dot_dimension_numbers<[1], [0], [0], [1], [0, 0, 1, 1], [], []>} : vector<7x32xbf16>, vector<32x64xbf16>, vector<7x64xf32> -> vector<7x64xf32>
    %443 = vector.broadcast %37 : vector<1x64xf32> to vector<7x64xf32>
    %444 = arith.addf %442, %443 : vector<7x64xf32>
    %cst_193 = arith.constant 5.000000e-01 : f32
    %445 = vector.broadcast %cst_193 : f32 to vector<7x64xf32>
    %446 = arith.mulf %445, %444 : vector<7x64xf32>
    %cst_194 = arith.constant 4.471500e-02 : f32
    %447 = vector.broadcast %cst_194 : f32 to vector<7x64xf32>
    %448 = arith.mulf %447, %444 : vector<7x64xf32>
    %449 = arith.mulf %448, %444 : vector<7x64xf32>
    %450 = arith.mulf %449, %444 : vector<7x64xf32>
    %451 = arith.addf %444, %450 : vector<7x64xf32>
    %cst_195 = arith.constant 0.797884583 : f32
    %452 = vector.broadcast %cst_195 : f32 to vector<7x64xf32>
    %453 = arith.mulf %452, %451 : vector<7x64xf32>
    %454 = math.tanh %453 : vector<7x64xf32>
    %cst_196 = arith.constant 1.000000e+00 : f32
    %455 = vector.broadcast %cst_196 : f32 to vector<7x64xf32>
    %456 = arith.addf %455, %454 : vector<7x64xf32>
    %457 = arith.mulf %446, %456 : vector<7x64xf32>
    %458 = arith.truncf %457 : vector<7x64xf32> to vector<7x64xbf16>
    %cst_197 = arith.constant dense<0.000000e+00> : vector<7x32xf32>
    %459 = tpu.matmul %458, %38, %cst_197 {dimension_numbers = #tpu.dot_dimension_numbers<[1], [0], [0], [1], [0, 0, 1, 1], [], []>} : vector<7x64xbf16>, vector<64x32xbf16>, vector<7x32xf32> -> vector<7x32xf32>
    %460 = vector.broadcast %39 : vector<1x32xf32> to vector<7x32xf32>
    %461 = arith.addf %459, %460 : vector<7x32xf32>
    %462 = arith.addf %440, %461 : vector<7x32xf32>
    %cst_198 = arith.constant dense<0.000000e+00> : vector<7xf32>
    %463 = vector.multi_reduction <add>, %462, %cst_198 [1] : vector<7x32xf32> to vector<7xf32>
    %464 = vector.shape_cast %463 : vector<7xf32> to vector<7x1xf32>
    %cst_199 = arith.constant 3.200000e+01 : f32
    %465 = vector.broadcast %cst_199 : f32 to vector<7x1xf32>
    %466 = arith.divf %464, %465 : vector<7x1xf32>
    %467 = vector.broadcast %466 : vector<7x1xf32> to vector<7x32xf32>
    %468 = arith.subf %462, %467 : vector<7x32xf32>
    %469 = arith.mulf %468, %468 : vector<7x32xf32>
    %cst_200 = arith.constant dense<0.000000e+00> : vector<7xf32>
    %470 = vector.multi_reduction <add>, %469, %cst_200 [1] : vector<7x32xf32> to vector<7xf32>
    %471 = vector.shape_cast %470 : vector<7xf32> to vector<7x1xf32>
    %cst_201 = arith.constant 3.200000e+01 : f32
    %472 = vector.broadcast %cst_201 : f32 to vector<7x1xf32>
    %473 = arith.divf %471, %472 : vector<7x1xf32>
    %474 = vector.broadcast %466 : vector<7x1xf32> to vector<7x32xf32>
    %475 = arith.subf %462, %474 : vector<7x32xf32>
    %cst_202 = arith.constant 9.99999996E-13 : f32
    %476 = vector.broadcast %cst_202 : f32 to vector<7x1xf32>
    %477 = arith.addf %473, %476 : vector<7x1xf32>
    %478 = math.rsqrt %477 : vector<7x1xf32>
    %479 = vector.broadcast %478 : vector<7x1xf32> to vector<7x32xf32>
    %480 = arith.mulf %475, %479 : vector<7x32xf32>
    %481 = vector.broadcast %40 : vector<1x32xf32> to vector<7x32xf32>
    %482 = arith.mulf %480, %481 : vector<7x32xf32>
    %483 = vector.broadcast %41 : vector<1x32xf32> to vector<7x32xf32>
    %484 = arith.addf %482, %483 : vector<7x32xf32>
    %485 = arith.truncf %484 : vector<7x32xf32> to vector<7x32xbf16>
    %cst_203 = arith.constant dense<0.000000e+00> : vector<7x32xf32>
    %486 = tpu.matmul %485, %42, %cst_203 {dimension_numbers = #tpu.dot_dimension_numbers<[1], [0], [0], [1], [0, 0, 1, 1], [], []>} : vector<7x32xbf16>, vector<32x32xbf16>, vector<7x32xf32> -> vector<7x32xf32>
    %487 = vector.broadcast %43 : vector<1x32xf32> to vector<7x32xf32>
    %488 = arith.addf %486, %487 : vector<7x32xf32>
    %cst_204 = arith.constant 5.000000e-01 : f32
    %489 = vector.broadcast %cst_204 : f32 to vector<7x32xf32>
    %490 = arith.mulf %489, %488 : vector<7x32xf32>
    %cst_205 = arith.constant 4.471500e-02 : f32
    %491 = vector.broadcast %cst_205 : f32 to vector<7x32xf32>
    %492 = arith.mulf %491, %488 : vector<7x32xf32>
    %493 = arith.mulf %492, %488 : vector<7x32xf32>
    %494 = arith.mulf %493, %488 : vector<7x32xf32>
    %495 = arith.addf %488, %494 : vector<7x32xf32>
    %cst_206 = arith.constant 0.797884583 : f32
    %496 = vector.broadcast %cst_206 : f32 to vector<7x32xf32>
    %497 = arith.mulf %496, %495 : vector<7x32xf32>
    %498 = math.tanh %497 : vector<7x32xf32>
    %cst_207 = arith.constant 1.000000e+00 : f32
    %499 = vector.broadcast %cst_207 : f32 to vector<7x32xf32>
    %500 = arith.addf %499, %498 : vector<7x32xf32>
    %501 = arith.mulf %490, %500 : vector<7x32xf32>
    %cst_208 = arith.constant dense<0.000000e+00> : vector<7xf32>
    %502 = vector.multi_reduction <add>, %501, %cst_208 [1] : vector<7x32xf32> to vector<7xf32>
    %503 = vector.shape_cast %502 : vector<7xf32> to vector<7x1xf32>
    %cst_209 = arith.constant 3.200000e+01 : f32
    %504 = vector.broadcast %cst_209 : f32 to vector<7x1xf32>
    %505 = arith.divf %503, %504 : vector<7x1xf32>
    %506 = vector.broadcast %505 : vector<7x1xf32> to vector<7x32xf32>
    %507 = arith.subf %501, %506 : vector<7x32xf32>
    %508 = arith.mulf %507, %507 : vector<7x32xf32>
    %cst_210 = arith.constant dense<0.000000e+00> : vector<7xf32>
    %509 = vector.multi_reduction <add>, %508, %cst_210 [1] : vector<7x32xf32> to vector<7xf32>
    %510 = vector.shape_cast %509 : vector<7xf32> to vector<7x1xf32>
    %cst_211 = arith.constant 3.200000e+01 : f32
    %511 = vector.broadcast %cst_211 : f32 to vector<7x1xf32>
    %512 = arith.divf %510, %511 : vector<7x1xf32>
    %513 = vector.broadcast %505 : vector<7x1xf32> to vector<7x32xf32>
    %514 = arith.subf %501, %513 : vector<7x32xf32>
    %cst_212 = arith.constant 9.99999996E-13 : f32
    %515 = vector.broadcast %cst_212 : f32 to vector<7x1xf32>
    %516 = arith.addf %512, %515 : vector<7x1xf32>
    %517 = math.rsqrt %516 : vector<7x1xf32>
    %518 = vector.broadcast %517 : vector<7x1xf32> to vector<7x32xf32>
    %519 = arith.mulf %514, %518 : vector<7x32xf32>
    %520 = vector.broadcast %44 : vector<1x32xf32> to vector<7x32xf32>
    %521 = arith.mulf %519, %520 : vector<7x32xf32>
    %522 = vector.broadcast %45 : vector<1x32xf32> to vector<7x32xf32>
    %523 = arith.addf %521, %522 : vector<7x32xf32>
    %524 = arith.truncf %523 : vector<7x32xf32> to vector<7x32xbf16>
    %525 = arith.truncf %5 : vector<64x32xf32> to vector<64x32xbf16>
    %cst_213 = arith.constant dense<0.000000e+00> : vector<7x64xf32>
    %526 = tpu.matmul %524, %525, %cst_213 {dimension_numbers = #tpu.dot_dimension_numbers<[1], [1], [0], [0], [0, 0, 1, 0], [], []>} : vector<7x32xbf16>, vector<64x32xbf16>, vector<7x64xf32> -> vector<7x64xf32>
    %527 = vector.broadcast %46 : vector<1x64xf32> to vector<7x64xf32>
    %528 = arith.addf %526, %527 : vector<7x64xf32>
    %c0_214 = arith.constant 0 : index
    %c0_215 = arith.constant 0 : index
    %c0_216 = arith.constant 0 : index
    %529 = vector.load %arg2[%c0_214, %c0_215, %c0_216] : memref<2x7x1xi32, #tpu.memory_space<vmem>>, vector<1x7x1xi32>
    %530 = vector.shape_cast %529 : vector<1x7x1xi32> to vector<7x1xi32>
    %cst_217 = arith.constant dense<0xFF800000> : vector<7xf32>
    %531 = vector.multi_reduction <maximumf>, %528, %cst_217 [1] : vector<7x64xf32> to vector<7xf32>
    %532 = vector.shape_cast %531 : vector<7xf32> to vector<7x1xf32>
    %533 = vector.broadcast %532 : vector<7x1xf32> to vector<7x64xf32>
    %534 = arith.subf %528, %533 : vector<7x64xf32>
    %535 = math.exp %534 : vector<7x64xf32>
    %cst_218 = arith.constant dense<0.000000e+00> : vector<7xf32>
    %536 = vector.multi_reduction <add>, %535, %cst_218 [1] : vector<7x64xf32> to vector<7xf32>
    %537 = vector.shape_cast %536 : vector<7xf32> to vector<7x1xf32>
    %538 = math.log %537 : vector<7x1xf32>
    %539 = arith.addf %538, %532 : vector<7x1xf32>
    %540 = tpu.iota {dimensions = array<i32: 1>} : vector<7x64xi32>
    %541 = vector.broadcast %530 : vector<7x1xi32> to vector<7x64xi32>
    %542 = arith.cmpi eq, %540, %541 : vector<7x64xi32>
    %cst_219 = arith.constant 0.000000e+00 : f32
    %543 = vector.broadcast %cst_219 : f32 to vector<7x64xf32>
    %544 = arith.select %542, %528, %543 : vector<7x64xi1>, vector<7x64xf32>
    %cst_220 = arith.constant dense<0.000000e+00> : vector<7xf32>
    %545 = vector.multi_reduction <add>, %544, %cst_220 [1] : vector<7x64xf32> to vector<7xf32>
    %546 = vector.shape_cast %545 : vector<7xf32> to vector<7x1xf32>
    %547 = arith.subf %539, %546 : vector<7x1xf32>
    %548 = vector.shape_cast %547 : vector<7x1xf32> to vector<1x7x1xf32>
    %cst_221 = arith.constant dense<0.000000e+00> : vector<1xf32>
    %549 = vector.multi_reduction <add>, %548, %cst_221 [1, 2] : vector<1x7x1xf32> to vector<1xf32>
    %550 = vector.shape_cast %549 : vector<1xf32> to vector<1x1x1xf32>
    %551 = vector.extract %550[0, 0, 0] : f32 from vector<1x1x1xf32>
    %cst_222 = arith.constant 0.000000e+00 : f32
    %552 = arith.addf %cst_222, %551 : f32
    %c1 = arith.constant 1 : index
    %c0_223 = arith.constant 0 : index
    %c0_224 = arith.constant 0 : index
    %553 = vector.load %arg0[%c1, %c0_223, %c0_224] : memref<2x8x1xi32, #tpu.memory_space<vmem>>, vector<1x8x1xi32>
    %554 = vector.shape_cast %553 : vector<1x8x1xi32> to vector<8x1xi32>
    %555 = tpu.iota {dimensions = array<i32: 1>} : vector<8x64xi32>
    %556 = vector.broadcast %554 : vector<8x1xi32> to vector<8x64xi32>
    %557 = arith.cmpi eq, %555, %556 : vector<8x64xi32>
    %558 = arith.extui %557 : vector<8x64xi1> to vector<8x64xi32>
    %559 = arith.sitofp %558 : vector<8x64xi32> to vector<8x64xf32>
    %560 = arith.truncf %559 : vector<8x64xf32> to vector<8x64xbf16>
    %561 = arith.truncf %0 : vector<64x32xf32> to vector<64x32xbf16>
    %cst_225 = arith.constant dense<0.000000e+00> : vector<8x32xf32>
    %562 = tpu.matmul %560, %561, %cst_225 {dimension_numbers = #tpu.dot_dimension_numbers<[1], [0], [0], [1], [0, 0, 1, 1], [], []>} : vector<8x64xbf16>, vector<64x32xbf16>, vector<8x32xf32> -> vector<8x32xf32>
    %563 = arith.addf %562, %1 : vector<8x32xf32>
    %564 = vector.broadcast %2 : vector<1x32xf32> to vector<8x32xf32>
    %565 = arith.addf %563, %564 : vector<8x32xf32>
    %cst_226 = arith.constant dense<0.000000e+00> : vector<8xf32>
    %566 = vector.multi_reduction <add>, %565, %cst_226 [1] : vector<8x32xf32> to vector<8xf32>
    %567 = vector.shape_cast %566 : vector<8xf32> to vector<8x1xf32>
    %cst_227 = arith.constant 3.200000e+01 : f32
    %568 = vector.broadcast %cst_227 : f32 to vector<8x1xf32>
    %569 = arith.divf %567, %568 : vector<8x1xf32>
    %570 = vector.broadcast %569 : vector<8x1xf32> to vector<8x32xf32>
    %571 = arith.subf %565, %570 : vector<8x32xf32>
    %572 = arith.mulf %571, %571 : vector<8x32xf32>
    %cst_228 = arith.constant dense<0.000000e+00> : vector<8xf32>
    %573 = vector.multi_reduction <add>, %572, %cst_228 [1] : vector<8x32xf32> to vector<8xf32>
    %574 = vector.shape_cast %573 : vector<8xf32> to vector<8x1xf32>
    %cst_229 = arith.constant 3.200000e+01 : f32
    %575 = vector.broadcast %cst_229 : f32 to vector<8x1xf32>
    %576 = arith.divf %574, %575 : vector<8x1xf32>
    %577 = vector.broadcast %569 : vector<8x1xf32> to vector<8x32xf32>
    %578 = arith.subf %565, %577 : vector<8x32xf32>
    %cst_230 = arith.constant 9.99999996E-13 : f32
    %579 = vector.broadcast %cst_230 : f32 to vector<8x1xf32>
    %580 = arith.addf %576, %579 : vector<8x1xf32>
    %581 = math.rsqrt %580 : vector<8x1xf32>
    %582 = vector.broadcast %581 : vector<8x1xf32> to vector<8x32xf32>
    %583 = arith.mulf %578, %582 : vector<8x32xf32>
    %584 = vector.broadcast %3 : vector<1x32xf32> to vector<8x32xf32>
    %585 = arith.mulf %583, %584 : vector<8x32xf32>
    %586 = vector.broadcast %4 : vector<1x32xf32> to vector<8x32xf32>
    %587 = arith.addf %585, %586 : vector<8x32xf32>
    %c1_231 = arith.constant 1 : index
    %c0_232 = arith.constant 0 : index
    %c0_233 = arith.constant 0 : index
    %588 = vector.load %arg3[%c1_231, %c0_232, %c0_233] : memref<2x1x8xf32, #tpu.memory_space<vmem>>, vector<1x1x8xf32>
    %589 = vector.shape_cast %588 : vector<1x1x8xf32> to vector<1x8xf32>
    %cst_234 = arith.constant 1.000000e+00 : f32
    %590 = vector.broadcast %cst_234 : f32 to vector<1x8xf32>
    %591 = arith.subf %590, %589 : vector<1x8xf32>
    %cst_235 = arith.constant -1.000000e+09 : f32
    %592 = vector.broadcast %cst_235 : f32 to vector<1x8xf32>
    %593 = arith.mulf %591, %592 : vector<1x8xf32>
    %594 = arith.truncf %587 : vector<8x32xf32> to vector<8x32xbf16>
    %cst_236 = arith.constant dense<0.000000e+00> : vector<8x96xf32>
    %595 = tpu.matmul %594, %10, %cst_236 {dimension_numbers = #tpu.dot_dimension_numbers<[1], [0], [0], [1], [0, 0, 1, 1], [], []>} : vector<8x32xbf16>, vector<32x96xbf16>, vector<8x96xf32> -> vector<8x96xf32>
    %596 = vector.broadcast %11 : vector<1x96xf32> to vector<8x96xf32>
    %597 = arith.addf %595, %596 : vector<8x96xf32>
    %598 = vector.extract_strided_slice %597 {offsets = [0, 0], sizes = [8, 32], strides = [1, 1]} : vector<8x96xf32> to vector<8x32xf32>
    %599 = vector.extract_strided_slice %597 {offsets = [0, 32], sizes = [8, 32], strides = [1, 1]} : vector<8x96xf32> to vector<8x32xf32>
    %600 = vector.extract_strided_slice %597 {offsets = [0, 64], sizes = [8, 32], strides = [1, 1]} : vector<8x96xf32> to vector<8x32xf32>
    %601 = vector.extract_strided_slice %598 {offsets = [0, 0], sizes = [8, 16], strides = [1, 1]} : vector<8x32xf32> to vector<8x16xf32>
    %602 = vector.extract_strided_slice %599 {offsets = [0, 0], sizes = [8, 16], strides = [1, 1]} : vector<8x32xf32> to vector<8x16xf32>
    %603 = arith.truncf %601 : vector<8x16xf32> to vector<8x16xbf16>
    %604 = arith.truncf %602 : vector<8x16xf32> to vector<8x16xbf16>
    %cst_237 = arith.constant dense<0.000000e+00> : vector<8x8xf32>
    %605 = tpu.matmul %603, %604, %cst_237 {dimension_numbers = #tpu.dot_dimension_numbers<[1], [1], [0], [0], [0, 0, 1, 0], [], []>} : vector<8x16xbf16>, vector<8x16xbf16>, vector<8x8xf32> -> vector<8x8xf32>
    %cst_238 = arith.constant 2.500000e-01 : f32
    %606 = vector.broadcast %cst_238 : f32 to vector<8x8xf32>
    %607 = arith.mulf %605, %606 : vector<8x8xf32>
    %608 = vector.broadcast %593 : vector<1x8xf32> to vector<8x8xf32>
    %609 = arith.addf %607, %608 : vector<8x8xf32>
    %cst_239 = arith.constant dense<0xFF800000> : vector<8xf32>
    %610 = vector.multi_reduction <maximumf>, %609, %cst_239 [1] : vector<8x8xf32> to vector<8xf32>
    %611 = vector.shape_cast %610 : vector<8xf32> to vector<8x1xf32>
    %612 = vector.broadcast %611 : vector<8x1xf32> to vector<8x8xf32>
    %613 = arith.subf %609, %612 : vector<8x8xf32>
    %614 = math.exp %613 : vector<8x8xf32>
    %cst_240 = arith.constant dense<0.000000e+00> : vector<8xf32>
    %615 = vector.multi_reduction <add>, %614, %cst_240 [1] : vector<8x8xf32> to vector<8xf32>
    %616 = vector.shape_cast %615 : vector<8xf32> to vector<8x1xf32>
    %617 = tpu.reciprocal %616 {approx = true} : vector<8x1xf32> -> vector<8x1xf32>
    %618 = vector.broadcast %617 : vector<8x1xf32> to vector<8x8xf32>
    %619 = arith.mulf %614, %618 : vector<8x8xf32>
    %620 = vector.extract_strided_slice %600 {offsets = [0, 0], sizes = [8, 16], strides = [1, 1]} : vector<8x32xf32> to vector<8x16xf32>
    %621 = arith.truncf %619 : vector<8x8xf32> to vector<8x8xbf16>
    %622 = arith.truncf %620 : vector<8x16xf32> to vector<8x16xbf16>
    %cst_241 = arith.constant dense<0.000000e+00> : vector<8x16xf32>
    %623 = tpu.matmul %621, %622, %cst_241 {dimension_numbers = #tpu.dot_dimension_numbers<[1], [0], [0], [1], [0, 0, 1, 1], [], []>} : vector<8x8xbf16>, vector<8x16xbf16>, vector<8x16xf32> -> vector<8x16xf32>
    %624 = vector.extract_strided_slice %12 {offsets = [0, 0], sizes = [16, 32], strides = [1, 1]} : vector<32x32xbf16> to vector<16x32xbf16>
    %625 = arith.truncf %623 : vector<8x16xf32> to vector<8x16xbf16>
    %cst_242 = arith.constant dense<0.000000e+00> : vector<8x32xf32>
    %626 = tpu.matmul %625, %624, %cst_242 {dimension_numbers = #tpu.dot_dimension_numbers<[1], [0], [0], [1], [0, 0, 1, 1], [], []>} : vector<8x16xbf16>, vector<16x32xbf16>, vector<8x32xf32> -> vector<8x32xf32>
    %627 = vector.broadcast %13 : vector<1x32xf32> to vector<8x32xf32>
    %628 = arith.addf %627, %626 : vector<8x32xf32>
    %629 = vector.extract_strided_slice %598 {offsets = [0, 16], sizes = [8, 16], strides = [1, 1]} : vector<8x32xf32> to vector<8x16xf32>
    %630 = vector.extract_strided_slice %599 {offsets = [0, 16], sizes = [8, 16], strides = [1, 1]} : vector<8x32xf32> to vector<8x16xf32>
    %631 = arith.truncf %629 : vector<8x16xf32> to vector<8x16xbf16>
    %632 = arith.truncf %630 : vector<8x16xf32> to vector<8x16xbf16>
    %cst_243 = arith.constant dense<0.000000e+00> : vector<8x8xf32>
    %633 = tpu.matmul %631, %632, %cst_243 {dimension_numbers = #tpu.dot_dimension_numbers<[1], [1], [0], [0], [0, 0, 1, 0], [], []>} : vector<8x16xbf16>, vector<8x16xbf16>, vector<8x8xf32> -> vector<8x8xf32>
    %cst_244 = arith.constant 2.500000e-01 : f32
    %634 = vector.broadcast %cst_244 : f32 to vector<8x8xf32>
    %635 = arith.mulf %633, %634 : vector<8x8xf32>
    %636 = vector.broadcast %593 : vector<1x8xf32> to vector<8x8xf32>
    %637 = arith.addf %635, %636 : vector<8x8xf32>
    %cst_245 = arith.constant dense<0xFF800000> : vector<8xf32>
    %638 = vector.multi_reduction <maximumf>, %637, %cst_245 [1] : vector<8x8xf32> to vector<8xf32>
    %639 = vector.shape_cast %638 : vector<8xf32> to vector<8x1xf32>
    %640 = vector.broadcast %639 : vector<8x1xf32> to vector<8x8xf32>
    %641 = arith.subf %637, %640 : vector<8x8xf32>
    %642 = math.exp %641 : vector<8x8xf32>
    %cst_246 = arith.constant dense<0.000000e+00> : vector<8xf32>
    %643 = vector.multi_reduction <add>, %642, %cst_246 [1] : vector<8x8xf32> to vector<8xf32>
    %644 = vector.shape_cast %643 : vector<8xf32> to vector<8x1xf32>
    %645 = tpu.reciprocal %644 {approx = true} : vector<8x1xf32> -> vector<8x1xf32>
    %646 = vector.broadcast %645 : vector<8x1xf32> to vector<8x8xf32>
    %647 = arith.mulf %642, %646 : vector<8x8xf32>
    %648 = vector.extract_strided_slice %600 {offsets = [0, 16], sizes = [8, 16], strides = [1, 1]} : vector<8x32xf32> to vector<8x16xf32>
    %649 = arith.truncf %647 : vector<8x8xf32> to vector<8x8xbf16>
    %650 = arith.truncf %648 : vector<8x16xf32> to vector<8x16xbf16>
    %cst_247 = arith.constant dense<0.000000e+00> : vector<8x16xf32>
    %651 = tpu.matmul %649, %650, %cst_247 {dimension_numbers = #tpu.dot_dimension_numbers<[1], [0], [0], [1], [0, 0, 1, 1], [], []>} : vector<8x8xbf16>, vector<8x16xbf16>, vector<8x16xf32> -> vector<8x16xf32>
    %652 = vector.extract_strided_slice %12 {offsets = [16, 0], sizes = [16, 32], strides = [1, 1]} : vector<32x32xbf16> to vector<16x32xbf16>
    %653 = arith.truncf %651 : vector<8x16xf32> to vector<8x16xbf16>
    %cst_248 = arith.constant dense<0.000000e+00> : vector<8x32xf32>
    %654 = tpu.matmul %653, %652, %cst_248 {dimension_numbers = #tpu.dot_dimension_numbers<[1], [0], [0], [1], [0, 0, 1, 1], [], []>} : vector<8x16xbf16>, vector<16x32xbf16>, vector<8x32xf32> -> vector<8x32xf32>
    %655 = arith.addf %628, %654 : vector<8x32xf32>
    %656 = arith.addf %587, %655 : vector<8x32xf32>
    %cst_249 = arith.constant dense<0.000000e+00> : vector<8xf32>
    %657 = vector.multi_reduction <add>, %656, %cst_249 [1] : vector<8x32xf32> to vector<8xf32>
    %658 = vector.shape_cast %657 : vector<8xf32> to vector<8x1xf32>
    %cst_250 = arith.constant 3.200000e+01 : f32
    %659 = vector.broadcast %cst_250 : f32 to vector<8x1xf32>
    %660 = arith.divf %658, %659 : vector<8x1xf32>
    %661 = vector.broadcast %660 : vector<8x1xf32> to vector<8x32xf32>
    %662 = arith.subf %656, %661 : vector<8x32xf32>
    %663 = arith.mulf %662, %662 : vector<8x32xf32>
    %cst_251 = arith.constant dense<0.000000e+00> : vector<8xf32>
    %664 = vector.multi_reduction <add>, %663, %cst_251 [1] : vector<8x32xf32> to vector<8xf32>
    %665 = vector.shape_cast %664 : vector<8xf32> to vector<8x1xf32>
    %cst_252 = arith.constant 3.200000e+01 : f32
    %666 = vector.broadcast %cst_252 : f32 to vector<8x1xf32>
    %667 = arith.divf %665, %666 : vector<8x1xf32>
    %668 = vector.broadcast %660 : vector<8x1xf32> to vector<8x32xf32>
    %669 = arith.subf %656, %668 : vector<8x32xf32>
    %cst_253 = arith.constant 9.99999996E-13 : f32
    %670 = vector.broadcast %cst_253 : f32 to vector<8x1xf32>
    %671 = arith.addf %667, %670 : vector<8x1xf32>
    %672 = math.rsqrt %671 : vector<8x1xf32>
    %673 = vector.broadcast %672 : vector<8x1xf32> to vector<8x32xf32>
    %674 = arith.mulf %669, %673 : vector<8x32xf32>
    %675 = vector.broadcast %14 : vector<1x32xf32> to vector<8x32xf32>
    %676 = arith.mulf %674, %675 : vector<8x32xf32>
    %677 = vector.broadcast %15 : vector<1x32xf32> to vector<8x32xf32>
    %678 = arith.addf %676, %677 : vector<8x32xf32>
    %679 = arith.truncf %678 : vector<8x32xf32> to vector<8x32xbf16>
    %cst_254 = arith.constant dense<0.000000e+00> : vector<8x64xf32>
    %680 = tpu.matmul %679, %30, %cst_254 {dimension_numbers = #tpu.dot_dimension_numbers<[1], [0], [0], [1], [0, 0, 1, 1], [], []>} : vector<8x32xbf16>, vector<32x64xbf16>, vector<8x64xf32> -> vector<8x64xf32>
    %681 = vector.broadcast %31 : vector<1x64xf32> to vector<8x64xf32>
    %682 = arith.addf %680, %681 : vector<8x64xf32>
    %cst_255 = arith.constant 5.000000e-01 : f32
    %683 = vector.broadcast %cst_255 : f32 to vector<8x64xf32>
    %684 = arith.mulf %683, %682 : vector<8x64xf32>
    %cst_256 = arith.constant 4.471500e-02 : f32
    %685 = vector.broadcast %cst_256 : f32 to vector<8x64xf32>
    %686 = arith.mulf %685, %682 : vector<8x64xf32>
    %687 = arith.mulf %686, %682 : vector<8x64xf32>
    %688 = arith.mulf %687, %682 : vector<8x64xf32>
    %689 = arith.addf %682, %688 : vector<8x64xf32>
    %cst_257 = arith.constant 0.797884583 : f32
    %690 = vector.broadcast %cst_257 : f32 to vector<8x64xf32>
    %691 = arith.mulf %690, %689 : vector<8x64xf32>
    %692 = math.tanh %691 : vector<8x64xf32>
    %cst_258 = arith.constant 1.000000e+00 : f32
    %693 = vector.broadcast %cst_258 : f32 to vector<8x64xf32>
    %694 = arith.addf %693, %692 : vector<8x64xf32>
    %695 = arith.mulf %684, %694 : vector<8x64xf32>
    %696 = arith.truncf %695 : vector<8x64xf32> to vector<8x64xbf16>
    %cst_259 = arith.constant dense<0.000000e+00> : vector<8x32xf32>
    %697 = tpu.matmul %696, %32, %cst_259 {dimension_numbers = #tpu.dot_dimension_numbers<[1], [0], [0], [1], [0, 0, 1, 1], [], []>} : vector<8x64xbf16>, vector<64x32xbf16>, vector<8x32xf32> -> vector<8x32xf32>
    %698 = vector.broadcast %33 : vector<1x32xf32> to vector<8x32xf32>
    %699 = arith.addf %697, %698 : vector<8x32xf32>
    %700 = arith.addf %678, %699 : vector<8x32xf32>
    %cst_260 = arith.constant dense<0.000000e+00> : vector<8xf32>
    %701 = vector.multi_reduction <add>, %700, %cst_260 [1] : vector<8x32xf32> to vector<8xf32>
    %702 = vector.shape_cast %701 : vector<8xf32> to vector<8x1xf32>
    %cst_261 = arith.constant 3.200000e+01 : f32
    %703 = vector.broadcast %cst_261 : f32 to vector<8x1xf32>
    %704 = arith.divf %702, %703 : vector<8x1xf32>
    %705 = vector.broadcast %704 : vector<8x1xf32> to vector<8x32xf32>
    %706 = arith.subf %700, %705 : vector<8x32xf32>
    %707 = arith.mulf %706, %706 : vector<8x32xf32>
    %cst_262 = arith.constant dense<0.000000e+00> : vector<8xf32>
    %708 = vector.multi_reduction <add>, %707, %cst_262 [1] : vector<8x32xf32> to vector<8xf32>
    %709 = vector.shape_cast %708 : vector<8xf32> to vector<8x1xf32>
    %cst_263 = arith.constant 3.200000e+01 : f32
    %710 = vector.broadcast %cst_263 : f32 to vector<8x1xf32>
    %711 = arith.divf %709, %710 : vector<8x1xf32>
    %712 = vector.broadcast %704 : vector<8x1xf32> to vector<8x32xf32>
    %713 = arith.subf %700, %712 : vector<8x32xf32>
    %cst_264 = arith.constant 9.99999996E-13 : f32
    %714 = vector.broadcast %cst_264 : f32 to vector<8x1xf32>
    %715 = arith.addf %711, %714 : vector<8x1xf32>
    %716 = math.rsqrt %715 : vector<8x1xf32>
    %717 = vector.broadcast %716 : vector<8x1xf32> to vector<8x32xf32>
    %718 = arith.mulf %713, %717 : vector<8x32xf32>
    %719 = vector.broadcast %34 : vector<1x32xf32> to vector<8x32xf32>
    %720 = arith.mulf %718, %719 : vector<8x32xf32>
    %721 = vector.broadcast %35 : vector<1x32xf32> to vector<8x32xf32>
    %722 = arith.addf %720, %721 : vector<8x32xf32>
    %c1_265 = arith.constant 1 : index
    %c0_266 = arith.constant 0 : index
    %c0_267 = arith.constant 0 : index
    %723 = vector.load %arg1[%c1_265, %c0_266, %c0_267] : memref<2x7x1xi32, #tpu.memory_space<vmem>>, vector<1x7x1xi32>
    %724 = vector.shape_cast %723 : vector<1x7x1xi32> to vector<7x1xi32>
    %725 = tpu.iota {dimensions = array<i32: 1>} : vector<7x64xi32>
    %726 = vector.broadcast %724 : vector<7x1xi32> to vector<7x64xi32>
    %727 = arith.cmpi eq, %725, %726 : vector<7x64xi32>
    %728 = arith.extui %727 : vector<7x64xi1> to vector<7x64xi32>
    %729 = arith.sitofp %728 : vector<7x64xi32> to vector<7x64xf32>
    %730 = arith.truncf %729 : vector<7x64xf32> to vector<7x64xbf16>
    %731 = arith.truncf %5 : vector<64x32xf32> to vector<64x32xbf16>
    %cst_268 = arith.constant dense<0.000000e+00> : vector<7x32xf32>
    %732 = tpu.matmul %730, %731, %cst_268 {dimension_numbers = #tpu.dot_dimension_numbers<[1], [0], [0], [1], [0, 0, 1, 1], [], []>} : vector<7x64xbf16>, vector<64x32xbf16>, vector<7x32xf32> -> vector<7x32xf32>
    %733 = arith.addf %732, %6 : vector<7x32xf32>
    %734 = vector.broadcast %7 : vector<1x32xf32> to vector<7x32xf32>
    %735 = arith.addf %733, %734 : vector<7x32xf32>
    %cst_269 = arith.constant dense<0.000000e+00> : vector<7xf32>
    %736 = vector.multi_reduction <add>, %735, %cst_269 [1] : vector<7x32xf32> to vector<7xf32>
    %737 = vector.shape_cast %736 : vector<7xf32> to vector<7x1xf32>
    %cst_270 = arith.constant 3.200000e+01 : f32
    %738 = vector.broadcast %cst_270 : f32 to vector<7x1xf32>
    %739 = arith.divf %737, %738 : vector<7x1xf32>
    %740 = vector.broadcast %739 : vector<7x1xf32> to vector<7x32xf32>
    %741 = arith.subf %735, %740 : vector<7x32xf32>
    %742 = arith.mulf %741, %741 : vector<7x32xf32>
    %cst_271 = arith.constant dense<0.000000e+00> : vector<7xf32>
    %743 = vector.multi_reduction <add>, %742, %cst_271 [1] : vector<7x32xf32> to vector<7xf32>
    %744 = vector.shape_cast %743 : vector<7xf32> to vector<7x1xf32>
    %cst_272 = arith.constant 3.200000e+01 : f32
    %745 = vector.broadcast %cst_272 : f32 to vector<7x1xf32>
    %746 = arith.divf %744, %745 : vector<7x1xf32>
    %747 = vector.broadcast %739 : vector<7x1xf32> to vector<7x32xf32>
    %748 = arith.subf %735, %747 : vector<7x32xf32>
    %cst_273 = arith.constant 9.99999996E-13 : f32
    %749 = vector.broadcast %cst_273 : f32 to vector<7x1xf32>
    %750 = arith.addf %746, %749 : vector<7x1xf32>
    %751 = math.rsqrt %750 : vector<7x1xf32>
    %752 = vector.broadcast %751 : vector<7x1xf32> to vector<7x32xf32>
    %753 = arith.mulf %748, %752 : vector<7x32xf32>
    %754 = vector.broadcast %8 : vector<1x32xf32> to vector<7x32xf32>
    %755 = arith.mulf %753, %754 : vector<7x32xf32>
    %756 = vector.broadcast %9 : vector<1x32xf32> to vector<7x32xf32>
    %757 = arith.addf %755, %756 : vector<7x32xf32>
    %758 = tpu.iota {dimensions = array<i32: 0>} : vector<7x7xi32>
    %759 = tpu.iota {dimensions = array<i32: 1>} : vector<7x7xi32>
    %760 = arith.cmpi sle, %759, %758 : vector<7x7xi32>
    %c1_274 = arith.constant 1 : index
    %c0_275 = arith.constant 0 : index
    %c0_276 = arith.constant 0 : index
    %761 = vector.load %arg4[%c1_274, %c0_275, %c0_276] : memref<2x1x7xf32, #tpu.memory_space<vmem>>, vector<1x1x7xf32>
    %762 = vector.shape_cast %761 : vector<1x1x7xf32> to vector<1x7xf32>
    %cst_277 = arith.constant 5.000000e-01 : f32
    %763 = vector.broadcast %cst_277 : f32 to vector<1x7xf32>
    %764 = arith.cmpf ogt, %762, %763 : vector<1x7xf32>
    %765 = vector.broadcast %764 : vector<1x7xi1> to vector<7x7xi1>
    %766 = arith.andi %760, %765 : vector<7x7xi1>
    %cst_278 = arith.constant 0.000000e+00 : f32
    %cst_279 = arith.constant -1.000000e+09 : f32
    %767 = vector.broadcast %cst_278 : f32 to vector<7x7xf32>
    %768 = vector.broadcast %cst_279 : f32 to vector<7x7xf32>
    %769 = arith.select %766, %767, %768 : vector<7x7xi1>, vector<7x7xf32>
    %c1_280 = arith.constant 1 : index
    %c0_281 = arith.constant 0 : index
    %c0_282 = arith.constant 0 : index
    %770 = vector.load %arg3[%c1_280, %c0_281, %c0_282] : memref<2x1x8xf32, #tpu.memory_space<vmem>>, vector<1x1x8xf32>
    %771 = vector.shape_cast %770 : vector<1x1x8xf32> to vector<1x8xf32>
    %cst_283 = arith.constant 1.000000e+00 : f32
    %772 = vector.broadcast %cst_283 : f32 to vector<1x8xf32>
    %773 = arith.subf %772, %771 : vector<1x8xf32>
    %cst_284 = arith.constant -1.000000e+09 : f32
    %774 = vector.broadcast %cst_284 : f32 to vector<1x8xf32>
    %775 = arith.mulf %773, %774 : vector<1x8xf32>
    %776 = arith.truncf %757 : vector<7x32xf32> to vector<7x32xbf16>
    %cst_285 = arith.constant dense<0.000000e+00> : vector<7x96xf32>
    %777 = tpu.matmul %776, %16, %cst_285 {dimension_numbers = #tpu.dot_dimension_numbers<[1], [0], [0], [1], [0, 0, 1, 1], [], []>} : vector<7x32xbf16>, vector<32x96xbf16>, vector<7x96xf32> -> vector<7x96xf32>
    %778 = vector.broadcast %17 : vector<1x96xf32> to vector<7x96xf32>
    %779 = arith.addf %777, %778 : vector<7x96xf32>
    %780 = vector.extract_strided_slice %779 {offsets = [0, 0], sizes = [7, 32], strides = [1, 1]} : vector<7x96xf32> to vector<7x32xf32>
    %781 = vector.extract_strided_slice %779 {offsets = [0, 32], sizes = [7, 32], strides = [1, 1]} : vector<7x96xf32> to vector<7x32xf32>
    %782 = vector.extract_strided_slice %779 {offsets = [0, 64], sizes = [7, 32], strides = [1, 1]} : vector<7x96xf32> to vector<7x32xf32>
    %783 = vector.extract_strided_slice %780 {offsets = [0, 0], sizes = [7, 16], strides = [1, 1]} : vector<7x32xf32> to vector<7x16xf32>
    %784 = vector.extract_strided_slice %781 {offsets = [0, 0], sizes = [7, 16], strides = [1, 1]} : vector<7x32xf32> to vector<7x16xf32>
    %785 = arith.truncf %783 : vector<7x16xf32> to vector<7x16xbf16>
    %786 = arith.truncf %784 : vector<7x16xf32> to vector<7x16xbf16>
    %cst_286 = arith.constant dense<0.000000e+00> : vector<7x7xf32>
    %787 = tpu.matmul %785, %786, %cst_286 {dimension_numbers = #tpu.dot_dimension_numbers<[1], [1], [0], [0], [0, 0, 1, 0], [], []>} : vector<7x16xbf16>, vector<7x16xbf16>, vector<7x7xf32> -> vector<7x7xf32>
    %cst_287 = arith.constant 2.500000e-01 : f32
    %788 = vector.broadcast %cst_287 : f32 to vector<7x7xf32>
    %789 = arith.mulf %787, %788 : vector<7x7xf32>
    %790 = arith.addf %789, %769 : vector<7x7xf32>
    %cst_288 = arith.constant dense<0xFF800000> : vector<7xf32>
    %791 = vector.multi_reduction <maximumf>, %790, %cst_288 [1] : vector<7x7xf32> to vector<7xf32>
    %792 = vector.shape_cast %791 : vector<7xf32> to vector<7x1xf32>
    %793 = vector.broadcast %792 : vector<7x1xf32> to vector<7x7xf32>
    %794 = arith.subf %790, %793 : vector<7x7xf32>
    %795 = math.exp %794 : vector<7x7xf32>
    %cst_289 = arith.constant dense<0.000000e+00> : vector<7xf32>
    %796 = vector.multi_reduction <add>, %795, %cst_289 [1] : vector<7x7xf32> to vector<7xf32>
    %797 = vector.shape_cast %796 : vector<7xf32> to vector<7x1xf32>
    %798 = tpu.reciprocal %797 {approx = true} : vector<7x1xf32> -> vector<7x1xf32>
    %799 = vector.broadcast %798 : vector<7x1xf32> to vector<7x7xf32>
    %800 = arith.mulf %795, %799 : vector<7x7xf32>
    %801 = vector.extract_strided_slice %782 {offsets = [0, 0], sizes = [7, 16], strides = [1, 1]} : vector<7x32xf32> to vector<7x16xf32>
    %802 = arith.truncf %800 : vector<7x7xf32> to vector<7x7xbf16>
    %803 = arith.truncf %801 : vector<7x16xf32> to vector<7x16xbf16>
    %cst_290 = arith.constant dense<0.000000e+00> : vector<7x16xf32>
    %804 = tpu.matmul %802, %803, %cst_290 {dimension_numbers = #tpu.dot_dimension_numbers<[1], [0], [0], [1], [0, 0, 1, 1], [], []>} : vector<7x7xbf16>, vector<7x16xbf16>, vector<7x16xf32> -> vector<7x16xf32>
    %805 = vector.extract_strided_slice %18 {offsets = [0, 0], sizes = [16, 32], strides = [1, 1]} : vector<32x32xbf16> to vector<16x32xbf16>
    %806 = arith.truncf %804 : vector<7x16xf32> to vector<7x16xbf16>
    %cst_291 = arith.constant dense<0.000000e+00> : vector<7x32xf32>
    %807 = tpu.matmul %806, %805, %cst_291 {dimension_numbers = #tpu.dot_dimension_numbers<[1], [0], [0], [1], [0, 0, 1, 1], [], []>} : vector<7x16xbf16>, vector<16x32xbf16>, vector<7x32xf32> -> vector<7x32xf32>
    %808 = vector.broadcast %19 : vector<1x32xf32> to vector<7x32xf32>
    %809 = arith.addf %808, %807 : vector<7x32xf32>
    %810 = vector.extract_strided_slice %780 {offsets = [0, 16], sizes = [7, 16], strides = [1, 1]} : vector<7x32xf32> to vector<7x16xf32>
    %811 = vector.extract_strided_slice %781 {offsets = [0, 16], sizes = [7, 16], strides = [1, 1]} : vector<7x32xf32> to vector<7x16xf32>
    %812 = arith.truncf %810 : vector<7x16xf32> to vector<7x16xbf16>
    %813 = arith.truncf %811 : vector<7x16xf32> to vector<7x16xbf16>
    %cst_292 = arith.constant dense<0.000000e+00> : vector<7x7xf32>
    %814 = tpu.matmul %812, %813, %cst_292 {dimension_numbers = #tpu.dot_dimension_numbers<[1], [1], [0], [0], [0, 0, 1, 0], [], []>} : vector<7x16xbf16>, vector<7x16xbf16>, vector<7x7xf32> -> vector<7x7xf32>
    %cst_293 = arith.constant 2.500000e-01 : f32
    %815 = vector.broadcast %cst_293 : f32 to vector<7x7xf32>
    %816 = arith.mulf %814, %815 : vector<7x7xf32>
    %817 = arith.addf %816, %769 : vector<7x7xf32>
    %cst_294 = arith.constant dense<0xFF800000> : vector<7xf32>
    %818 = vector.multi_reduction <maximumf>, %817, %cst_294 [1] : vector<7x7xf32> to vector<7xf32>
    %819 = vector.shape_cast %818 : vector<7xf32> to vector<7x1xf32>
    %820 = vector.broadcast %819 : vector<7x1xf32> to vector<7x7xf32>
    %821 = arith.subf %817, %820 : vector<7x7xf32>
    %822 = math.exp %821 : vector<7x7xf32>
    %cst_295 = arith.constant dense<0.000000e+00> : vector<7xf32>
    %823 = vector.multi_reduction <add>, %822, %cst_295 [1] : vector<7x7xf32> to vector<7xf32>
    %824 = vector.shape_cast %823 : vector<7xf32> to vector<7x1xf32>
    %825 = tpu.reciprocal %824 {approx = true} : vector<7x1xf32> -> vector<7x1xf32>
    %826 = vector.broadcast %825 : vector<7x1xf32> to vector<7x7xf32>
    %827 = arith.mulf %822, %826 : vector<7x7xf32>
    %828 = vector.extract_strided_slice %782 {offsets = [0, 16], sizes = [7, 16], strides = [1, 1]} : vector<7x32xf32> to vector<7x16xf32>
    %829 = arith.truncf %827 : vector<7x7xf32> to vector<7x7xbf16>
    %830 = arith.truncf %828 : vector<7x16xf32> to vector<7x16xbf16>
    %cst_296 = arith.constant dense<0.000000e+00> : vector<7x16xf32>
    %831 = tpu.matmul %829, %830, %cst_296 {dimension_numbers = #tpu.dot_dimension_numbers<[1], [0], [0], [1], [0, 0, 1, 1], [], []>} : vector<7x7xbf16>, vector<7x16xbf16>, vector<7x16xf32> -> vector<7x16xf32>
    %832 = vector.extract_strided_slice %18 {offsets = [16, 0], sizes = [16, 32], strides = [1, 1]} : vector<32x32xbf16> to vector<16x32xbf16>
    %833 = arith.truncf %831 : vector<7x16xf32> to vector<7x16xbf16>
    %cst_297 = arith.constant dense<0.000000e+00> : vector<7x32xf32>
    %834 = tpu.matmul %833, %832, %cst_297 {dimension_numbers = #tpu.dot_dimension_numbers<[1], [0], [0], [1], [0, 0, 1, 1], [], []>} : vector<7x16xbf16>, vector<16x32xbf16>, vector<7x32xf32> -> vector<7x32xf32>
    %835 = arith.addf %809, %834 : vector<7x32xf32>
    %836 = arith.addf %757, %835 : vector<7x32xf32>
    %cst_298 = arith.constant dense<0.000000e+00> : vector<7xf32>
    %837 = vector.multi_reduction <add>, %836, %cst_298 [1] : vector<7x32xf32> to vector<7xf32>
    %838 = vector.shape_cast %837 : vector<7xf32> to vector<7x1xf32>
    %cst_299 = arith.constant 3.200000e+01 : f32
    %839 = vector.broadcast %cst_299 : f32 to vector<7x1xf32>
    %840 = arith.divf %838, %839 : vector<7x1xf32>
    %841 = vector.broadcast %840 : vector<7x1xf32> to vector<7x32xf32>
    %842 = arith.subf %836, %841 : vector<7x32xf32>
    %843 = arith.mulf %842, %842 : vector<7x32xf32>
    %cst_300 = arith.constant dense<0.000000e+00> : vector<7xf32>
    %844 = vector.multi_reduction <add>, %843, %cst_300 [1] : vector<7x32xf32> to vector<7xf32>
    %845 = vector.shape_cast %844 : vector<7xf32> to vector<7x1xf32>
    %cst_301 = arith.constant 3.200000e+01 : f32
    %846 = vector.broadcast %cst_301 : f32 to vector<7x1xf32>
    %847 = arith.divf %845, %846 : vector<7x1xf32>
    %848 = vector.broadcast %840 : vector<7x1xf32> to vector<7x32xf32>
    %849 = arith.subf %836, %848 : vector<7x32xf32>
    %cst_302 = arith.constant 9.99999996E-13 : f32
    %850 = vector.broadcast %cst_302 : f32 to vector<7x1xf32>
    %851 = arith.addf %847, %850 : vector<7x1xf32>
    %852 = math.rsqrt %851 : vector<7x1xf32>
    %853 = vector.broadcast %852 : vector<7x1xf32> to vector<7x32xf32>
    %854 = arith.mulf %849, %853 : vector<7x32xf32>
    %855 = vector.broadcast %20 : vector<1x32xf32> to vector<7x32xf32>
    %856 = arith.mulf %854, %855 : vector<7x32xf32>
    %857 = vector.broadcast %21 : vector<1x32xf32> to vector<7x32xf32>
    %858 = arith.addf %856, %857 : vector<7x32xf32>
    %859 = arith.truncf %858 : vector<7x32xf32> to vector<7x32xbf16>
    %cst_303 = arith.constant dense<0.000000e+00> : vector<7x32xf32>
    %860 = tpu.matmul %859, %22, %cst_303 {dimension_numbers = #tpu.dot_dimension_numbers<[1], [0], [0], [1], [0, 0, 1, 1], [], []>} : vector<7x32xbf16>, vector<32x32xbf16>, vector<7x32xf32> -> vector<7x32xf32>
    %861 = vector.broadcast %23 : vector<1x32xf32> to vector<7x32xf32>
    %862 = arith.addf %860, %861 : vector<7x32xf32>
    %863 = arith.truncf %722 : vector<8x32xf32> to vector<8x32xbf16>
    %cst_304 = arith.constant dense<0.000000e+00> : vector<8x64xf32>
    %864 = tpu.matmul %863, %24, %cst_304 {dimension_numbers = #tpu.dot_dimension_numbers<[1], [0], [0], [1], [0, 0, 1, 1], [], []>} : vector<8x32xbf16>, vector<32x64xbf16>, vector<8x64xf32> -> vector<8x64xf32>
    %865 = vector.broadcast %25 : vector<1x64xf32> to vector<8x64xf32>
    %866 = arith.addf %864, %865 : vector<8x64xf32>
    %867 = vector.extract_strided_slice %866 {offsets = [0, 0], sizes = [8, 32], strides = [1, 1]} : vector<8x64xf32> to vector<8x32xf32>
    %868 = vector.extract_strided_slice %866 {offsets = [0, 32], sizes = [8, 32], strides = [1, 1]} : vector<8x64xf32> to vector<8x32xf32>
    %869 = vector.extract_strided_slice %862 {offsets = [0, 0], sizes = [7, 16], strides = [1, 1]} : vector<7x32xf32> to vector<7x16xf32>
    %870 = vector.extract_strided_slice %867 {offsets = [0, 0], sizes = [8, 16], strides = [1, 1]} : vector<8x32xf32> to vector<8x16xf32>
    %871 = arith.truncf %869 : vector<7x16xf32> to vector<7x16xbf16>
    %872 = arith.truncf %870 : vector<8x16xf32> to vector<8x16xbf16>
    %cst_305 = arith.constant dense<0.000000e+00> : vector<7x8xf32>
    %873 = tpu.matmul %871, %872, %cst_305 {dimension_numbers = #tpu.dot_dimension_numbers<[1], [1], [0], [0], [0, 0, 1, 0], [], []>} : vector<7x16xbf16>, vector<8x16xbf16>, vector<7x8xf32> -> vector<7x8xf32>
    %cst_306 = arith.constant 2.500000e-01 : f32
    %874 = vector.broadcast %cst_306 : f32 to vector<7x8xf32>
    %875 = arith.mulf %873, %874 : vector<7x8xf32>
    %876 = vector.broadcast %775 : vector<1x8xf32> to vector<7x8xf32>
    %877 = arith.addf %875, %876 : vector<7x8xf32>
    %cst_307 = arith.constant dense<0xFF800000> : vector<7xf32>
    %878 = vector.multi_reduction <maximumf>, %877, %cst_307 [1] : vector<7x8xf32> to vector<7xf32>
    %879 = vector.shape_cast %878 : vector<7xf32> to vector<7x1xf32>
    %880 = vector.broadcast %879 : vector<7x1xf32> to vector<7x8xf32>
    %881 = arith.subf %877, %880 : vector<7x8xf32>
    %882 = math.exp %881 : vector<7x8xf32>
    %cst_308 = arith.constant dense<0.000000e+00> : vector<7xf32>
    %883 = vector.multi_reduction <add>, %882, %cst_308 [1] : vector<7x8xf32> to vector<7xf32>
    %884 = vector.shape_cast %883 : vector<7xf32> to vector<7x1xf32>
    %885 = tpu.reciprocal %884 {approx = true} : vector<7x1xf32> -> vector<7x1xf32>
    %886 = vector.broadcast %885 : vector<7x1xf32> to vector<7x8xf32>
    %887 = arith.mulf %882, %886 : vector<7x8xf32>
    %888 = vector.extract_strided_slice %868 {offsets = [0, 0], sizes = [8, 16], strides = [1, 1]} : vector<8x32xf32> to vector<8x16xf32>
    %889 = arith.truncf %887 : vector<7x8xf32> to vector<7x8xbf16>
    %890 = arith.truncf %888 : vector<8x16xf32> to vector<8x16xbf16>
    %cst_309 = arith.constant dense<0.000000e+00> : vector<7x16xf32>
    %891 = tpu.matmul %889, %890, %cst_309 {dimension_numbers = #tpu.dot_dimension_numbers<[1], [0], [0], [1], [0, 0, 1, 1], [], []>} : vector<7x8xbf16>, vector<8x16xbf16>, vector<7x16xf32> -> vector<7x16xf32>
    %892 = vector.extract_strided_slice %26 {offsets = [0, 0], sizes = [16, 32], strides = [1, 1]} : vector<32x32xbf16> to vector<16x32xbf16>
    %893 = arith.truncf %891 : vector<7x16xf32> to vector<7x16xbf16>
    %cst_310 = arith.constant dense<0.000000e+00> : vector<7x32xf32>
    %894 = tpu.matmul %893, %892, %cst_310 {dimension_numbers = #tpu.dot_dimension_numbers<[1], [0], [0], [1], [0, 0, 1, 1], [], []>} : vector<7x16xbf16>, vector<16x32xbf16>, vector<7x32xf32> -> vector<7x32xf32>
    %895 = vector.broadcast %27 : vector<1x32xf32> to vector<7x32xf32>
    %896 = arith.addf %895, %894 : vector<7x32xf32>
    %897 = vector.extract_strided_slice %862 {offsets = [0, 16], sizes = [7, 16], strides = [1, 1]} : vector<7x32xf32> to vector<7x16xf32>
    %898 = vector.extract_strided_slice %867 {offsets = [0, 16], sizes = [8, 16], strides = [1, 1]} : vector<8x32xf32> to vector<8x16xf32>
    %899 = arith.truncf %897 : vector<7x16xf32> to vector<7x16xbf16>
    %900 = arith.truncf %898 : vector<8x16xf32> to vector<8x16xbf16>
    %cst_311 = arith.constant dense<0.000000e+00> : vector<7x8xf32>
    %901 = tpu.matmul %899, %900, %cst_311 {dimension_numbers = #tpu.dot_dimension_numbers<[1], [1], [0], [0], [0, 0, 1, 0], [], []>} : vector<7x16xbf16>, vector<8x16xbf16>, vector<7x8xf32> -> vector<7x8xf32>
    %cst_312 = arith.constant 2.500000e-01 : f32
    %902 = vector.broadcast %cst_312 : f32 to vector<7x8xf32>
    %903 = arith.mulf %901, %902 : vector<7x8xf32>
    %904 = vector.broadcast %775 : vector<1x8xf32> to vector<7x8xf32>
    %905 = arith.addf %903, %904 : vector<7x8xf32>
    %cst_313 = arith.constant dense<0xFF800000> : vector<7xf32>
    %906 = vector.multi_reduction <maximumf>, %905, %cst_313 [1] : vector<7x8xf32> to vector<7xf32>
    %907 = vector.shape_cast %906 : vector<7xf32> to vector<7x1xf32>
    %908 = vector.broadcast %907 : vector<7x1xf32> to vector<7x8xf32>
    %909 = arith.subf %905, %908 : vector<7x8xf32>
    %910 = math.exp %909 : vector<7x8xf32>
    %cst_314 = arith.constant dense<0.000000e+00> : vector<7xf32>
    %911 = vector.multi_reduction <add>, %910, %cst_314 [1] : vector<7x8xf32> to vector<7xf32>
    %912 = vector.shape_cast %911 : vector<7xf32> to vector<7x1xf32>
    %913 = tpu.reciprocal %912 {approx = true} : vector<7x1xf32> -> vector<7x1xf32>
    %914 = vector.broadcast %913 : vector<7x1xf32> to vector<7x8xf32>
    %915 = arith.mulf %910, %914 : vector<7x8xf32>
    %916 = vector.extract_strided_slice %868 {offsets = [0, 16], sizes = [8, 16], strides = [1, 1]} : vector<8x32xf32> to vector<8x16xf32>
    %917 = arith.truncf %915 : vector<7x8xf32> to vector<7x8xbf16>
    %918 = arith.truncf %916 : vector<8x16xf32> to vector<8x16xbf16>
    %cst_315 = arith.constant dense<0.000000e+00> : vector<7x16xf32>
    %919 = tpu.matmul %917, %918, %cst_315 {dimension_numbers = #tpu.dot_dimension_numbers<[1], [0], [0], [1], [0, 0, 1, 1], [], []>} : vector<7x8xbf16>, vector<8x16xbf16>, vector<7x16xf32> -> vector<7x16xf32>
    %920 = vector.extract_strided_slice %26 {offsets = [16, 0], sizes = [16, 32], strides = [1, 1]} : vector<32x32xbf16> to vector<16x32xbf16>
    %921 = arith.truncf %919 : vector<7x16xf32> to vector<7x16xbf16>
    %cst_316 = arith.constant dense<0.000000e+00> : vector<7x32xf32>
    %922 = tpu.matmul %921, %920, %cst_316 {dimension_numbers = #tpu.dot_dimension_numbers<[1], [0], [0], [1], [0, 0, 1, 1], [], []>} : vector<7x16xbf16>, vector<16x32xbf16>, vector<7x32xf32> -> vector<7x32xf32>
    %923 = arith.addf %896, %922 : vector<7x32xf32>
    %924 = arith.addf %858, %923 : vector<7x32xf32>
    %cst_317 = arith.constant dense<0.000000e+00> : vector<7xf32>
    %925 = vector.multi_reduction <add>, %924, %cst_317 [1] : vector<7x32xf32> to vector<7xf32>
    %926 = vector.shape_cast %925 : vector<7xf32> to vector<7x1xf32>
    %cst_318 = arith.constant 3.200000e+01 : f32
    %927 = vector.broadcast %cst_318 : f32 to vector<7x1xf32>
    %928 = arith.divf %926, %927 : vector<7x1xf32>
    %929 = vector.broadcast %928 : vector<7x1xf32> to vector<7x32xf32>
    %930 = arith.subf %924, %929 : vector<7x32xf32>
    %931 = arith.mulf %930, %930 : vector<7x32xf32>
    %cst_319 = arith.constant dense<0.000000e+00> : vector<7xf32>
    %932 = vector.multi_reduction <add>, %931, %cst_319 [1] : vector<7x32xf32> to vector<7xf32>
    %933 = vector.shape_cast %932 : vector<7xf32> to vector<7x1xf32>
    %cst_320 = arith.constant 3.200000e+01 : f32
    %934 = vector.broadcast %cst_320 : f32 to vector<7x1xf32>
    %935 = arith.divf %933, %934 : vector<7x1xf32>
    %936 = vector.broadcast %928 : vector<7x1xf32> to vector<7x32xf32>
    %937 = arith.subf %924, %936 : vector<7x32xf32>
    %cst_321 = arith.constant 9.99999996E-13 : f32
    %938 = vector.broadcast %cst_321 : f32 to vector<7x1xf32>
    %939 = arith.addf %935, %938 : vector<7x1xf32>
    %940 = math.rsqrt %939 : vector<7x1xf32>
    %941 = vector.broadcast %940 : vector<7x1xf32> to vector<7x32xf32>
    %942 = arith.mulf %937, %941 : vector<7x32xf32>
    %943 = vector.broadcast %28 : vector<1x32xf32> to vector<7x32xf32>
    %944 = arith.mulf %942, %943 : vector<7x32xf32>
    %945 = vector.broadcast %29 : vector<1x32xf32> to vector<7x32xf32>
    %946 = arith.addf %944, %945 : vector<7x32xf32>
    %947 = arith.truncf %946 : vector<7x32xf32> to vector<7x32xbf16>
    %cst_322 = arith.constant dense<0.000000e+00> : vector<7x64xf32>
    %948 = tpu.matmul %947, %36, %cst_322 {dimension_numbers = #tpu.dot_dimension_numbers<[1], [0], [0], [1], [0, 0, 1, 1], [], []>} : vector<7x32xbf16>, vector<32x64xbf16>, vector<7x64xf32> -> vector<7x64xf32>
    %949 = vector.broadcast %37 : vector<1x64xf32> to vector<7x64xf32>
    %950 = arith.addf %948, %949 : vector<7x64xf32>
    %cst_323 = arith.constant 5.000000e-01 : f32
    %951 = vector.broadcast %cst_323 : f32 to vector<7x64xf32>
    %952 = arith.mulf %951, %950 : vector<7x64xf32>
    %cst_324 = arith.constant 4.471500e-02 : f32
    %953 = vector.broadcast %cst_324 : f32 to vector<7x64xf32>
    %954 = arith.mulf %953, %950 : vector<7x64xf32>
    %955 = arith.mulf %954, %950 : vector<7x64xf32>
    %956 = arith.mulf %955, %950 : vector<7x64xf32>
    %957 = arith.addf %950, %956 : vector<7x64xf32>
    %cst_325 = arith.constant 0.797884583 : f32
    %958 = vector.broadcast %cst_325 : f32 to vector<7x64xf32>
    %959 = arith.mulf %958, %957 : vector<7x64xf32>
    %960 = math.tanh %959 : vector<7x64xf32>
    %cst_326 = arith.constant 1.000000e+00 : f32
    %961 = vector.broadcast %cst_326 : f32 to vector<7x64xf32>
    %962 = arith.addf %961, %960 : vector<7x64xf32>
    %963 = arith.mulf %952, %962 : vector<7x64xf32>
    %964 = arith.truncf %963 : vector<7x64xf32> to vector<7x64xbf16>
    %cst_327 = arith.constant dense<0.000000e+00> : vector<7x32xf32>
    %965 = tpu.matmul %964, %38, %cst_327 {dimension_numbers = #tpu.dot_dimension_numbers<[1], [0], [0], [1], [0, 0, 1, 1], [], []>} : vector<7x64xbf16>, vector<64x32xbf16>, vector<7x32xf32> -> vector<7x32xf32>
    %966 = vector.broadcast %39 : vector<1x32xf32> to vector<7x32xf32>
    %967 = arith.addf %965, %966 : vector<7x32xf32>
    %968 = arith.addf %946, %967 : vector<7x32xf32>
    %cst_328 = arith.constant dense<0.000000e+00> : vector<7xf32>
    %969 = vector.multi_reduction <add>, %968, %cst_328 [1] : vector<7x32xf32> to vector<7xf32>
    %970 = vector.shape_cast %969 : vector<7xf32> to vector<7x1xf32>
    %cst_329 = arith.constant 3.200000e+01 : f32
    %971 = vector.broadcast %cst_329 : f32 to vector<7x1xf32>
    %972 = arith.divf %970, %971 : vector<7x1xf32>
    %973 = vector.broadcast %972 : vector<7x1xf32> to vector<7x32xf32>
    %974 = arith.subf %968, %973 : vector<7x32xf32>
    %975 = arith.mulf %974, %974 : vector<7x32xf32>
    %cst_330 = arith.constant dense<0.000000e+00> : vector<7xf32>
    %976 = vector.multi_reduction <add>, %975, %cst_330 [1] : vector<7x32xf32> to vector<7xf32>
    %977 = vector.shape_cast %976 : vector<7xf32> to vector<7x1xf32>
    %cst_331 = arith.constant 3.200000e+01 : f32
    %978 = vector.broadcast %cst_331 : f32 to vector<7x1xf32>
    %979 = arith.divf %977, %978 : vector<7x1xf32>
    %980 = vector.broadcast %972 : vector<7x1xf32> to vector<7x32xf32>
    %981 = arith.subf %968, %980 : vector<7x32xf32>
    %cst_332 = arith.constant 9.99999996E-13 : f32
    %982 = vector.broadcast %cst_332 : f32 to vector<7x1xf32>
    %983 = arith.addf %979, %982 : vector<7x1xf32>
    %984 = math.rsqrt %983 : vector<7x1xf32>
    %985 = vector.broadcast %984 : vector<7x1xf32> to vector<7x32xf32>
    %986 = arith.mulf %981, %985 : vector<7x32xf32>
    %987 = vector.broadcast %40 : vector<1x32xf32> to vector<7x32xf32>
    %988 = arith.mulf %986, %987 : vector<7x32xf32>
    %989 = vector.broadcast %41 : vector<1x32xf32> to vector<7x32xf32>
    %990 = arith.addf %988, %989 : vector<7x32xf32>
    %991 = arith.truncf %990 : vector<7x32xf32> to vector<7x32xbf16>
    %cst_333 = arith.constant dense<0.000000e+00> : vector<7x32xf32>
    %992 = tpu.matmul %991, %42, %cst_333 {dimension_numbers = #tpu.dot_dimension_numbers<[1], [0], [0], [1], [0, 0, 1, 1], [], []>} : vector<7x32xbf16>, vector<32x32xbf16>, vector<7x32xf32> -> vector<7x32xf32>
    %993 = vector.broadcast %43 : vector<1x32xf32> to vector<7x32xf32>
    %994 = arith.addf %992, %993 : vector<7x32xf32>
    %cst_334 = arith.constant 5.000000e-01 : f32
    %995 = vector.broadcast %cst_334 : f32 to vector<7x32xf32>
    %996 = arith.mulf %995, %994 : vector<7x32xf32>
    %cst_335 = arith.constant 4.471500e-02 : f32
    %997 = vector.broadcast %cst_335 : f32 to vector<7x32xf32>
    %998 = arith.mulf %997, %994 : vector<7x32xf32>
    %999 = arith.mulf %998, %994 : vector<7x32xf32>
    %1000 = arith.mulf %999, %994 : vector<7x32xf32>
    %1001 = arith.addf %994, %1000 : vector<7x32xf32>
    %cst_336 = arith.constant 0.797884583 : f32
    %1002 = vector.broadcast %cst_336 : f32 to vector<7x32xf32>
    %1003 = arith.mulf %1002, %1001 : vector<7x32xf32>
    %1004 = math.tanh %1003 : vector<7x32xf32>
    %cst_337 = arith.constant 1.000000e+00 : f32
    %1005 = vector.broadcast %cst_337 : f32 to vector<7x32xf32>
    %1006 = arith.addf %1005, %1004 : vector<7x32xf32>
    %1007 = arith.mulf %996, %1006 : vector<7x32xf32>
    %cst_338 = arith.constant dense<0.000000e+00> : vector<7xf32>
    %1008 = vector.multi_reduction <add>, %1007, %cst_338 [1] : vector<7x32xf32> to vector<7xf32>
    %1009 = vector.shape_cast %1008 : vector<7xf32> to vector<7x1xf32>
    %cst_339 = arith.constant 3.200000e+01 : f32
    %1010 = vector.broadcast %cst_339 : f32 to vector<7x1xf32>
    %1011 = arith.divf %1009, %1010 : vector<7x1xf32>
    %1012 = vector.broadcast %1011 : vector<7x1xf32> to vector<7x32xf32>
    %1013 = arith.subf %1007, %1012 : vector<7x32xf32>
    %1014 = arith.mulf %1013, %1013 : vector<7x32xf32>
    %cst_340 = arith.constant dense<0.000000e+00> : vector<7xf32>
    %1015 = vector.multi_reduction <add>, %1014, %cst_340 [1] : vector<7x32xf32> to vector<7xf32>
    %1016 = vector.shape_cast %1015 : vector<7xf32> to vector<7x1xf32>
    %cst_341 = arith.constant 3.200000e+01 : f32
    %1017 = vector.broadcast %cst_341 : f32 to vector<7x1xf32>
    %1018 = arith.divf %1016, %1017 : vector<7x1xf32>
    %1019 = vector.broadcast %1011 : vector<7x1xf32> to vector<7x32xf32>
    %1020 = arith.subf %1007, %1019 : vector<7x32xf32>
    %cst_342 = arith.constant 9.99999996E-13 : f32
    %1021 = vector.broadcast %cst_342 : f32 to vector<7x1xf32>
    %1022 = arith.addf %1018, %1021 : vector<7x1xf32>
    %1023 = math.rsqrt %1022 : vector<7x1xf32>
    %1024 = vector.broadcast %1023 : vector<7x1xf32> to vector<7x32xf32>
    %1025 = arith.mulf %1020, %1024 : vector<7x32xf32>
    %1026 = vector.broadcast %44 : vector<1x32xf32> to vector<7x32xf32>
    %1027 = arith.mulf %1025, %1026 : vector<7x32xf32>
    %1028 = vector.broadcast %45 : vector<1x32xf32> to vector<7x32xf32>
    %1029 = arith.addf %1027, %1028 : vector<7x32xf32>
    %1030 = arith.truncf %1029 : vector<7x32xf32> to vector<7x32xbf16>
    %1031 = arith.truncf %5 : vector<64x32xf32> to vector<64x32xbf16>
    %cst_343 = arith.constant dense<0.000000e+00> : vector<7x64xf32>
    %1032 = tpu.matmul %1030, %1031, %cst_343 {dimension_numbers = #tpu.dot_dimension_numbers<[1], [1], [0], [0], [0, 0, 1, 0], [], []>} : vector<7x32xbf16>, vector<64x32xbf16>, vector<7x64xf32> -> vector<7x64xf32>
    %1033 = vector.broadcast %46 : vector<1x64xf32> to vector<7x64xf32>
    %1034 = arith.addf %1032, %1033 : vector<7x64xf32>
    %c1_344 = arith.constant 1 : index
    %c0_345 = arith.constant 0 : index
    %c0_346 = arith.constant 0 : index
    %1035 = vector.load %arg2[%c1_344, %c0_345, %c0_346] : memref<2x7x1xi32, #tpu.memory_space<vmem>>, vector<1x7x1xi32>
    %1036 = vector.shape_cast %1035 : vector<1x7x1xi32> to vector<7x1xi32>
    %cst_347 = arith.constant dense<0xFF800000> : vector<7xf32>
    %1037 = vector.multi_reduction <maximumf>, %1034, %cst_347 [1] : vector<7x64xf32> to vector<7xf32>
    %1038 = vector.shape_cast %1037 : vector<7xf32> to vector<7x1xf32>
    %1039 = vector.broadcast %1038 : vector<7x1xf32> to vector<7x64xf32>
    %1040 = arith.subf %1034, %1039 : vector<7x64xf32>
    %1041 = math.exp %1040 : vector<7x64xf32>
    %cst_348 = arith.constant dense<0.000000e+00> : vector<7xf32>
    %1042 = vector.multi_reduction <add>, %1041, %cst_348 [1] : vector<7x64xf32> to vector<7xf32>
    %1043 = vector.shape_cast %1042 : vector<7xf32> to vector<7x1xf32>
    %1044 = math.log %1043 : vector<7x1xf32>
    %1045 = arith.addf %1044, %1038 : vector<7x1xf32>
    %1046 = tpu.iota {dimensions = array<i32: 1>} : vector<7x64xi32>
    %1047 = vector.broadcast %1036 : vector<7x1xi32> to vector<7x64xi32>
    %1048 = arith.cmpi eq, %1046, %1047 : vector<7x64xi32>
    %cst_349 = arith.constant 0.000000e+00 : f32
    %1049 = vector.broadcast %cst_349 : f32 to vector<7x64xf32>
    %1050 = arith.select %1048, %1034, %1049 : vector<7x64xi1>, vector<7x64xf32>
    %cst_350 = arith.constant dense<0.000000e+00> : vector<7xf32>
    %1051 = vector.multi_reduction <add>, %1050, %cst_350 [1] : vector<7x64xf32> to vector<7xf32>
    %1052 = vector.shape_cast %1051 : vector<7xf32> to vector<7x1xf32>
    %1053 = arith.subf %1045, %1052 : vector<7x1xf32>
    %1054 = vector.shape_cast %1053 : vector<7x1xf32> to vector<1x7x1xf32>
    %cst_351 = arith.constant dense<0.000000e+00> : vector<1xf32>
    %1055 = vector.multi_reduction <add>, %1054, %cst_351 [1, 2] : vector<1x7x1xf32> to vector<1xf32>
    %1056 = vector.shape_cast %1055 : vector<1xf32> to vector<1x1x1xf32>
    %1057 = vector.extract %1056[0, 0, 0] : f32 from vector<1x1x1xf32>
    %1058 = arith.addf %552, %1057 : f32
    %cst_352 = arith.constant 1.400000e+01 : f32
    %1059 = arith.divf %1058, %cst_352 : f32
    %c0_353 = arith.constant 0 : index
    %c0_354 = arith.constant 0 : index
    %1060 = memref.load %arg52[%c0_353, %c0_354] : memref<1x1xf32, #tpu.memory_space<smem>>
    memref.store %1059, %arg52[%c0_353, %c0_354] : memref<1x1xf32, #tpu.memory_space<smem>>
    return
  }
}

</mosaic_0001>

<bundles_post_ra>
// kernel: bert2bert_forward.1
= control target key start
LH: loop header
LB: loop body
LE: loop exit
PB: predicated region body
PF: predicated region fallthrough
CT: control target
= control target key end

     0   :  { %s5543_s6 = smov 1   ;;  %s5544_s10 = smov 2   ;;  %s6662_s0 = inlined_call_operand.smem [shape: u32[53], index: -1, kind: input, shape index: {}] }
   0x1   :  { %s5624_s5 = sld [smem:[%s6662_s0]]   ;;  %s5545_s14 = smov 3  }
   0x2   :  { %s5629_s9 = sld [smem:[%s6662_s0 + %s5543_s6]]   ;;  %s5546_s18 = smov 4  }
   0x3   :  { %s5634_s13 = sld [smem:[%s6662_s0 + %s5544_s10]]   ;;  %s5547_s22 = smov 5  }
   0x4   :  { %s5639_s17 = sld [smem:[%s6662_s0 + %s5545_s14]]   ;;  %s5548_s26 = smov 6  }
   0x5   :  { %s5644_s21 = sld [smem:[%s6662_s0 + %s5546_s18]]   ;;  %s5549_s30 = smov 7  }
   0x6   :  { %s5649_s25 = sld [smem:[%s6662_s0 + %s5547_s22]]   ;;  %s5550_s4 = smov 8  }
   0x7   :  { %s5654_s29 = sld [smem:[%s6662_s0 + %s5548_s26]]   ;;  %s5551_s10 = smov 9  }
   0x8   :  { %6712 = sst [smem:[#allocation27_spill]] %s5629_s9  ;;  %s5552_s15 = smov 10  }
   0x9   :  { %6713 = sst [smem:[#allocation28_spill]] %s5634_s13  ;;  %s5553_s20 = smov 11  }
   0xa   :  { %6714 = sst [smem:[#allocation29_spill]] %s5639_s17  ;;  %s5554_s26 = smov 12  }
   0xb   :  { %6715 = sst [smem:[#allocation30_spill]] %s5644_s21  ;;  %s5555_s1 = smov 13  }
   0xc   :  { %s5659_s3 = sld [smem:[%s6662_s0 + %s5549_s30]]   ;;  %s5556_s7 = smov 14  }
   0xd   :  { %s5664_s8 = sld [smem:[%s6662_s0 + %s5550_s4]]   ;;  %s5558_s22 = smov 16  }
   0xe   :  { %s5669_s14 = sld [smem:[%s6662_s0 + %s5551_s10]]   ;;  %s5559_s28 = smov 17  }
   0xf   :  { %s5674_s19 = sld [smem:[%s6662_s0 + %s5552_s15]]   ;;  %s5557_s15 = smov 15  }
  0x10   :  { %s5679_s24 = sld [smem:[%s6662_s0 + %s5553_s20]]  }
  0x11   :  { %s5684_s30 = sld [smem:[%s6662_s0 + %s5554_s26]]  }
  0x12   :  { %s5689_s6 = sld [smem:[%s6662_s0 + %s5555_s1]]  }
  0x13   :  { %s5694_s12 = sld [smem:[%s6662_s0 + %s5556_s7]]   ;;  %s5560_s7 = smov 18  }
  0x14   :  { %s5699_s20 = sld [smem:[%s6662_s0 + %s5557_s15]]   ;;  %s5561_s15 = smov 19  }
  0x15   :  { %6716 = sst [smem:[#allocation31_spill]] %s5674_s19 }
  0x16   :  { %6717 = sst [smem:[#allocation32_spill]] %s5679_s24 }
  0x17   :  { %6718 = sst [smem:[#allocation33_spill]] %s5684_s30 }
  0x18   :  { %6719 = sst [smem:[#allocation34_spill]] %s5689_s6 }
  0x19   :  { %6720 = sst [smem:[#allocation35_spill]] %s5694_s12 }
  0x1a   :  { %s5704_s27 = sld [smem:[%s6662_s0 + %s5558_s22]]   ;;  %s5562_s22 = smov 20  }
  0x1b   :  { %s5709_s4 = sld [smem:[%s6662_s0 + %s5559_s28]]   ;;  %s5563_s28 = smov 21  }
  0x1c   :  { %s5714_s13 = sld [smem:[%s6662_s0 + %s5560_s7]]   ;;  %s5564_s7 = smov 22  }
  0x1d   :  { %s5719_s21 = sld [smem:[%s6662_s0 + %s5561_s15]]   ;;  %s5565_s15 = smov 23  }
  0x1e   :  { %s5724_s12 = sld [smem:[%s6662_s0 + %s5562_s22]]   ;;  %s5566_s22 = smov 24  }
  0x1f   :  { %s5729_s6 = sld [smem:[%s6662_s0 + %s5563_s28]]   ;;  %s5567_s28 = smov 25  }
  0x20   :  { %6721 = sst [smem:[#allocation36_spill]] %s5704_s27 }
  0x21   :  { %6722 = sst [smem:[#allocation37_spill]] %s5709_s4 }
  0x22   :  { %6723 = sst [smem:[#allocation38_spill]] %s5714_s13 }
  0x23   :  { %6724 = sst [smem:[#allocation39_spill]] %s5719_s21 }
  0x24   :  { %6725 = sst [smem:[#allocation40_spill]] %s5724_s12 }
  0x25   :  { %6726 = sst [smem:[#allocation41_spill]] %s5729_s6 }
  0x26   :  { %s5734_s30 = sld [smem:[%s6662_s0 + %s5564_s7]]   ;;  %s5568_s7 = smov 26  }
  0x27   :  { %s5739_s24 = sld [smem:[%s6662_s0 + %s5565_s15]]   ;;  %s5569_s15 = smov 27  }
  0x28   :  { %s5744_s19 = sld [smem:[%s6662_s0 + %s5566_s22]]   ;;  %s5570_s22 = smov 28  }
  0x29   :  { %s5749_s6 = sld [smem:[%s6662_s0 + %s5567_s28]]   ;;  %s5571_s28 = smov 29  }
  0x2c   :  { %6727 = sst [smem:[#allocation42_spill]] %s5734_s30 }
  0x2d   :  { %6728 = sst [smem:[#allocation43_spill]] %s5739_s24 }
  0x2e   :  { %6729 = sst [smem:[#allocation44_spill]] %s5744_s19 }
  0x2f   :  { %6730 = sst [smem:[#allocation45_spill]] %s5749_s6 }
  0x30   :  { %s5754_s30 = sld [smem:[%s6662_s0 + %s5568_s7]]   ;;  %s5572_s7 = smov 30  }
  0x31   :  { %s5759_s24 = sld [smem:[%s6662_s0 + %s5569_s15]]   ;;  %s5573_s15 = smov 31  }
  0x32   :  { %s5764_s19 = sld [smem:[%s6662_s0 + %s5570_s22]]   ;;  %s5574_s22 = smov 32  }
  0x33   :  { %s5769_s6 = sld [smem:[%s6662_s0 + %s5571_s28]]   ;;  %s5575_s28 = smov 33  }
  0x36   :  { %6731 = sst [smem:[#allocation46_spill]] %s5754_s30 }
  0x37   :  { %6732 = sst [smem:[#allocation47_spill]] %s5759_s24 }
  0x38   :  { %6733 = sst [smem:[#allocation48_spill]] %s5764_s19 }
  0x39   :  { %6734 = sst [smem:[#allocation49_spill]] %s5769_s6 }
  0x3a   :  { %s5774_s30 = sld [smem:[%s6662_s0 + %s5572_s7]]   ;;  %s5576_s7 = smov 34  }
  0x3b   :  { %s5779_s24 = sld [smem:[%s6662_s0 + %s5573_s15]]   ;;  %s5577_s15 = smov 35  }
  0x3c   :  { %s5784_s19 = sld [smem:[%s6662_s0 + %s5574_s22]]   ;;  %s5578_s22 = smov 36  }
  0x3d   :  { %s5789_s6 = sld [smem:[%s6662_s0 + %s5575_s28]]   ;;  %s5579_s28 = smov 37  }
  0x40   :  { %6735 = sst [smem:[#allocation50_spill]] %s5774_s30 }
  0x41   :  { %6736 = sst [smem:[#allocation51_spill]] %s5779_s24 }
  0x42   :  { %6737 = sst [smem:[#allocation52_spill]] %s5784_s19 }
  0x43   :  { %6738 = sst [smem:[#allocation53_spill]] %s5789_s6 }
  0x44   :  { %s5794_s30 = sld [smem:[%s6662_s0 + %s5576_s7]]   ;;  %s5580_s7 = smov 38  }
  0x45   :  { %s5799_s24 = sld [smem:[%s6662_s0 + %s5577_s15]]   ;;  %s5581_s15 = smov 39  }
  0x46   :  { %s5804_s19 = sld [smem:[%s6662_s0 + %s5578_s22]]   ;;  %s5582_s22 = smov 40  }
  0x47   :  { %s5809_s6 = sld [smem:[%s6662_s0 + %s5579_s28]]   ;;  %s5583_s28 = smov 41  }
  0x48   :  { %s5819_s12 = sld [smem:[%s6662_s0 + %s5581_s15]]   ;;  %s5585_s15 = smov 43  }
  0x49   :  { %s5839_s21 = sld [smem:[%s6662_s0 + %s5585_s15]]   ;;  %s5589_s15 = smov 47  }
  0x4a   :  { %6739 = sst [smem:[#allocation54_spill]] %s5794_s30 }
  0x4b   :  { %6740 = sst [smem:[#allocation55_spill]] %s5799_s24 }
  0x4c   :  { %6741 = sst [smem:[#allocation56_spill]] %s5804_s19 }
  0x4d   :  { %6742 = sst [smem:[#allocation57_spill]] %s5809_s6 }
  0x4e   :  { %s5814_s30 = sld [smem:[%s6662_s0 + %s5580_s7]]   ;;  %s5584_s7 = smov 42  }
  0x4f   :  { %s5824_s19 = sld [smem:[%s6662_s0 + %s5582_s22]]   ;;  %s5586_s22 = smov 44  }
  0x50   :  { %s5829_s6 = sld [smem:[%s6662_s0 + %s5583_s28]]   ;;  %s5587_s28 = smov 45  }
  0x51   :  { %6745 = sst [smem:[#allocation60_spill]] %s5839_s21 }
  0x52   :  { %s5844_s24 = sld [smem:[%s6662_s0 + %s5586_s22]]   ;;  %s5590_s22 = smov 48  }
  0x53   :  { %s5859_s21 = sld [smem:[%s6662_s0 + %s5589_s15]]   ;;  %s5593_s15 = smov 51  }
  0x54   :  { %6743 = sst [smem:[#allocation58_spill]] %s5814_s30 }
  0x55   :  { %s5834_s30 = sld [smem:[%s6662_s0 + %s5584_s7]]   ;;  %s5588_s7 = smov 46  }
  0x56   :  { %6744 = sst [smem:[#allocation59_spill]] %s5829_s6 }
  0x57   :  { %s5849_s6 = sld [smem:[%s6662_s0 + %s5587_s28]]   ;;  %s5591_s28 = smov 49  }
  0x58   :  { %s5854_s13 = sld [smem:[%s6662_s0 + %s5588_s7]]   ;;  %s5592_s7 = smov 50  }
  0x59   :  { %6746 = sst [smem:[#allocation61_spill]] %s5859_s21 }
  0x5a   :  { %s5864_s9 = sld [smem:[%s6662_s0 + %s5590_s22]]   ;;  %s5594_s22 = smov 52  }
  0x5b   :  { %s5869_s4 = sld [smem:[%s6662_s0 + %s5591_s28]]  }
  0x5c   :  { %s5874_s17 = sld [smem:[%s6662_s0 + %s5592_s7]]  }
  0x5d   :  { %s5879_s21 = sld [smem:[%s6662_s0 + %s5593_s15]]  }
  0x5e   :  { %s5884_s27 = sld [smem:[%s6662_s0 + %s5594_s22]]  }
  0x64   :  { %6747 = sst [smem:[#allocation62_spill]] %s5884_s27 }
  0x65   :  { %110 = vsyncpa [#allocation3], 0 }
  0x66   :  { %111 = vsyncpa [#allocation6], 0 }
  0x67   :  { %112 = vsyncpa [#allocation9], 0 }
  0x68   :  { %113 = vsyncpa [#allocation12], 0 }
  0x69   :  { %114 = vsyncpa [#allocation15], 0 }
  0x6a   :  { %115 = vsyncpa [#allocation18], 0 }
  0x6b   :  { %116 = vsyncpa [#allocation4], 0  ;;  %s5595_s28 = smov [#allocation5]   ;;  %s5596_s2 = smov [#allocation8]  }
  0x6c   :  { %s211_s1 = sshll.u32 %s5595_s28, 4  ;;  %s235_s7 = sshll.u32 %s5596_s2, 4  ;;  %s212_s1 = int_to_ptr.vmem [resolvable:$true] %s211_s1  ;;  %s236_s7 = int_to_ptr.vmem [resolvable:$true] %s235_s7 }
  0x6d   :  { %s5299_s10 = scalar_lea.hbm %s5824_s19, 16 }
  0x6e   :  { %p5300_p0 = scmp.ne.s32.totalorder %s5824_s19, %s5299_s10  ;;  %p5303_p1 = scmp.lt.u32.totalorder %s5299_s10, %s5824_s19 }
  0x70   :  { %p5305_p2 = pnand %p5303_p1, %p5300_p0 }
  0x72   :  { %5308 = shalt.err (!%p5305_p2)
}
  0x73   :  { %s5309_s0 = scalar_lea.vmem %s212_s1, 16  ;;  %s5313_s11 = scalar_lea.vmem %s212_s1, 32 }
  0x74   :  { %p5310_p3 = scmp.ne.s32.totalorder %s212_s1, %s5309_s0  ;;  %p5314_p4 = scmp.lt.s32.totalorder %s212_s1, %s212_s1 }
  0x75   :  { %p5315_p5 = scmp.lt.s32.totalorder %s5313_s11, %s5309_s0 }
  0x77   :  { %p5316_p6 = por %p5315_p5, %p5314_p4 }
  0x79   :  { %p5317_p7 = pnand %p5316_p6, %p5310_p3 }
  0x7b   :  { %5320 = shalt.err (!%p5317_p7)
}
  0x7c   :  { %214 = dma.hbm_to_vmem [thread:$0]  %s5824_s19, 16, %s212_s1, [#allocation6]  }
  0x7d   :  { %s5321_s15 = scalar_lea.hbm %s5844_s24, 16 }
  0x7e   :  { %p5322_p8 = scmp.ne.s32.totalorder %s5844_s24, %s5321_s15  ;;  %p5325_p9 = scmp.lt.u32.totalorder %s5321_s15, %s5844_s24 }
  0x80   :  { %p5327_p10 = pnand %p5325_p9, %p5322_p8 }
  0x82   :  { %5330 = shalt.err (!%p5327_p10)
}
  0x83   :  { %s5331_s16 = scalar_lea.vmem %s236_s7, 16  ;;  %s5335_s18 = scalar_lea.vmem %s236_s7, 32 }
  0x84   :  { %p5332_p11 = scmp.ne.s32.totalorder %s236_s7, %s5331_s16  ;;  %p5336_p12 = scmp.lt.s32.totalorder %s236_s7, %s236_s7 }
  0x85   :  { %p5337_p13 = scmp.lt.s32.totalorder %s5335_s18, %s5331_s16 }
  0x87   :  { %p5338_p0 = por %p5337_p13, %p5336_p12 }
  0x89   :  { %p5339_p1 = pnand %p5338_p0, %p5332_p11 }
  0x8b   :  { %5342 = shalt.err (!%p5339_p1)
}
  0x8c   :  { %238 = dma.hbm_to_vmem [thread:$0]  %s5844_s24, 16, %s236_s7, [#allocation9]  }
  0x8d   :  { %s5597_s22 = smov [#allocation11]   ;;  %s5598_s23 = smov [#allocation14]  }
  0x8e   :  { %s255_s19 = sshll.u32 %s5597_s22, 4  ;;  %s277_s26 = sshll.u32 %s5598_s23, 4  ;;  %s256_s19 = int_to_ptr.vmem [resolvable:$true] %s255_s19  ;;  %s278_s26 = int_to_ptr.vmem [resolvable:$true] %s277_s26 }
  0x8f   :  { %s5343_s28 = scalar_lea.hbm %s5854_s13, 16 }
  0x90   :  { %p5344_p2 = scmp.ne.s32.totalorder %s5854_s13, %s5343_s28  ;;  %p5347_p3 = scmp.lt.u32.totalorder %s5343_s28, %s5854_s13 }
  0x92   :  { %p5349_p4 = pnand %p5347_p3, %p5344_p2 }
  0x94   :  { %5352 = shalt.err (!%p5349_p4)
}
  0x95   :  { %s5353_s1 = scalar_lea.vmem %s256_s19, 16  ;;  %s5357_s2 = scalar_lea.vmem %s256_s19, 32 }
  0x96   :  { %p5354_p5 = scmp.ne.s32.totalorder %s256_s19, %s5353_s1  ;;  %p5358_p6 = scmp.lt.s32.totalorder %s256_s19, %s256_s19 }
  0x97   :  { %p5359_p7 = scmp.lt.s32.totalorder %s5357_s2, %s5353_s1 }
  0x99   :  { %p5360_p8 = por %p5359_p7, %p5358_p6 }
  0x9b   :  { %p5361_p9 = pnand %p5360_p8, %p5354_p5 }
  0x9d   :  { %5364 = shalt.err (!%p5361_p9)
}
  0x9e   :  { %258 = dma.hbm_to_vmem [thread:$0]  %s5854_s13, 16, %s256_s19, [#allocation12]  }
  0x9f   :  { %s5365_s24 = scalar_lea.hbm %s5869_s4, 16 }
  0xa0   :  { %p5366_p10 = scmp.ne.s32.totalorder %s5869_s4, %s5365_s24  ;;  %p5369_p11 = scmp.lt.u32.totalorder %s5365_s24, %s5869_s4 }
  0xa2   :  { %p5371_p12 = pnand %p5369_p11, %p5366_p10 }
  0xa4   :  { %5374 = shalt.err (!%p5371_p12)
}
  0xa5   :  { %s5375_s7 = scalar_lea.vmem %s278_s26, 16  ;;  %s5379_s10 = scalar_lea.vmem %s278_s26, 32 }
  0xa6   :  { %p5376_p13 = scmp.ne.s32.totalorder %s278_s26, %s5375_s7  ;;  %p5380_p0 = scmp.lt.s32.totalorder %s278_s26, %s278_s26 }
  0xa7   :  { %p5381_p1 = scmp.lt.s32.totalorder %s5379_s10, %s5375_s7 }
  0xa9   :  { %p5382_p2 = por %p5381_p1, %p5380_p0 }
  0xab   :  { %p5383_p3 = pnand %p5382_p2, %p5376_p13 }
  0xad   :  { %5386 = shalt.err (!%p5383_p3)
}
  0xae   :  { %280 = dma.hbm_to_vmem [thread:$0]  %s5869_s4, 16, %s278_s26, [#allocation15]  }
  0xaf   :  { %s5599_s0 = smov [#allocation2]   ;;  %s5600_s11 = smov [#allocation7]  }
  0xb0   :  { %s201_s13 = sshll.u32 %s5599_s0, 4  ;;  %s223_s15 = sshll.u32 %s5600_s11, 4  ;;  %s202_s13 = int_to_ptr.vmem [resolvable:$true] %s201_s13  ;;  %s224_s15 = int_to_ptr.vmem [resolvable:$true] %s223_s15 }
  0xb1   :  { %s5387_s16 = scalar_lea.hbm %s5819_s12, 16 }
  0xb2   :  { %p5388_p4 = scmp.ne.s32.totalorder %s5819_s12, %s5387_s16  ;;  %p5391_p5 = scmp.lt.u32.totalorder %s5387_s16, %s5819_s12 }
  0xb4   :  { %p5393_p6 = pnand %p5391_p5, %p5388_p4 }
  0xb6   :  { %5396 = shalt.err (!%p5393_p6)
}
  0xb7   :  { %s5397_s18 = scalar_lea.vmem %s202_s13, 16  ;;  %s5401_s22 = scalar_lea.vmem %s202_s13, 32 }
  0xb8   :  { %p5398_p7 = scmp.ne.s32.totalorder %s202_s13, %s5397_s18  ;;  %p5402_p8 = scmp.lt.s32.totalorder %s202_s13, %s202_s13 }
  0xb9   :  { %p5403_p9 = scmp.lt.s32.totalorder %s5401_s22, %s5397_s18 }
  0xbb   :  { %p5404_p10 = por %p5403_p9, %p5402_p8 }
  0xbd   :  { %p5405_p11 = pnand %p5404_p10, %p5398_p7 }
  0xbf   :  { %5408 = shalt.err (!%p5405_p11)
}
  0xc0   :  { %204 = dma.hbm_to_vmem [thread:$0]  %s5819_s12, 16, %s202_s13, [#allocation3]  }
  0xc1   :  { %s5409_s4 = scalar_lea.hbm %s5834_s30, 16 }
  0xc2   :  { %p5410_p12 = scmp.ne.s32.totalorder %s5834_s30, %s5409_s4  ;;  %p5413_p13 = scmp.lt.u32.totalorder %s5409_s4, %s5834_s30 }
  0xc4   :  { %p5415_p0 = pnand %p5413_p13, %p5410_p12 }
  0xc6   :  { %5418 = shalt.err (!%p5415_p0)
}
  0xc7   :  { %s5419_s19 = scalar_lea.vmem %s224_s15, 16  ;;  %s5423_s23 = scalar_lea.vmem %s224_s15, 32 }
  0xc8   :  { %p5420_p1 = scmp.ne.s32.totalorder %s224_s15, %s5419_s19  ;;  %p5424_p2 = scmp.lt.s32.totalorder %s224_s15, %s224_s15 }
  0xc9   :  { %p5425_p3 = scmp.lt.s32.totalorder %s5423_s23, %s5419_s19 }
  0xcb   :  { %p5426_p4 = por %p5425_p3, %p5424_p2 }
  0xcd   :  { %p5427_p5 = pnand %p5426_p4, %p5420_p1 }
  0xcf   :  { %5430 = shalt.err (!%p5427_p5)
}
  0xd0   :  { %226 = dma.hbm_to_vmem [thread:$0]  %s5834_s30, 16, %s224_s15, [#allocation6]  }
  0xd1   :  { %s5601_s26 = smov [#allocation10]   ;;  %s5602_s28 = smov [#allocation13]  }
  0xd2   :  { %s245_s12 = sshll.u32 %s5601_s26, 4  ;;  %s267_s1 = sshll.u32 %s5602_s28, 4  ;;  %s246_s12 = int_to_ptr.vmem [resolvable:$true] %s245_s12  ;;  %s268_s1 = int_to_ptr.vmem [resolvable:$true] %s267_s1 }
  0xd3   :  { %s5431_s2 = scalar_lea.hbm %s5849_s6, 16 }
  0xd4   :  { %p5432_p6 = scmp.ne.s32.totalorder %s5849_s6, %s5431_s2  ;;  %p5435_p7 = scmp.lt.u32.totalorder %s5431_s2, %s5849_s6 }
  0xd6   :  { %p5437_p8 = pnand %p5435_p7, %p5432_p6 }
  0xd8   :  { %5440 = shalt.err (!%p5437_p8)
}
  0xd9   :  { %s5441_s24 = scalar_lea.vmem %s246_s12, 16  ;;  %s5445_s7 = scalar_lea.vmem %s246_s12, 32 }
  0xda   :  { %p5442_p9 = scmp.ne.s32.totalorder %s246_s12, %s5441_s24  ;;  %p5446_p10 = scmp.lt.s32.totalorder %s246_s12, %s246_s12 }
  0xdb   :  { %p5447_p11 = scmp.lt.s32.totalorder %s5445_s7, %s5441_s24 }
  0xdd   :  { %p5448_p12 = por %p5447_p11, %p5446_p10 }
  0xdf   :  { %p5449_p13 = pnand %p5448_p12, %p5442_p9 }
  0xe1   :  { %5452 = shalt.err (!%p5449_p13)
}
  0xe2   :  { %248 = dma.hbm_to_vmem [thread:$0]  %s5849_s6, 16, %s246_s12, [#allocation9]  }
  0xe3   :  { %s5453_s30 = scalar_lea.hbm %s5864_s9, 16 }
  0xe4   :  { %p5454_p0 = scmp.ne.s32.totalorder %s5864_s9, %s5453_s30  ;;  %p5457_p1 = scmp.lt.u32.totalorder %s5453_s30, %s5864_s9 }
  0xe6   :  { %p5459_p2 = pnand %p5457_p1, %p5454_p0 }
  0xe8   :  { %5462 = shalt.err (!%p5459_p2)
}
  0xe9   :  { %s5463_s10 = scalar_lea.vmem %s268_s1, 16  ;;  %s5467_s0 = scalar_lea.vmem %s268_s1, 32 }
  0xea   :  { %p5464_p3 = scmp.ne.s32.totalorder %s268_s1, %s5463_s10  ;;  %p5468_p4 = scmp.lt.s32.totalorder %s268_s1, %s268_s1 }
  0xeb   :  { %p5469_p5 = scmp.lt.s32.totalorder %s5467_s0, %s5463_s10 }
  0xed   :  { %p5470_p6 = por %p5469_p5, %p5468_p4 }
  0xef   :  { %p5471_p7 = pnand %p5470_p6, %p5464_p3 }
  0xf1   :  { %5474 = shalt.err (!%p5471_p7)
}
  0xf2   :  { %270 = dma.hbm_to_vmem [thread:$0]  %s5864_s9, 16, %s268_s1, [#allocation12]  }
  0xf3   :  { %s5603_s13 = smov [#allocation16]   ;;  %s5604_s11 = smov [#allocation17]  }
  0xf4   :  { %s287_s6 = sshll.u32 %s5603_s13, 4  ;;  %s297_s15 = sshll.u32 %s5604_s11, 4  ;;  %s288_s6 = int_to_ptr.vmem [resolvable:$true] %s287_s6  ;;  %s298_s15 = int_to_ptr.vmem [resolvable:$true] %s297_s15 }
  0xf5   :  { %s5475_s16 = scalar_lea.hbm %s5874_s17, 16 }
  0xf6   :  { %p5476_p8 = scmp.ne.s32.totalorder %s5874_s17, %s5475_s16  ;;  %p5479_p9 = scmp.lt.u32.totalorder %s5475_s16, %s5874_s17 }
  0xf8   :  { %p5481_p10 = pnand %p5479_p9, %p5476_p8 }
  0xfa   :  { %5484 = shalt.err (!%p5481_p10)
}
  0xfb   :  { %s5485_s18 = scalar_lea.vmem %s288_s6, 16  ;;  %s5489_s22 = scalar_lea.vmem %s288_s6, 32 }
  0xfc   :  { %p5486_p11 = scmp.ne.s32.totalorder %s288_s6, %s5485_s18  ;;  %p5490_p12 = scmp.lt.s32.totalorder %s288_s6, %s288_s6 }
  0xfd   :  { %p5491_p13 = scmp.lt.s32.totalorder %s5489_s22, %s5485_s18 }
  0xff   :  { %p5492_p0 = por %p5491_p13, %p5490_p12 }
 0x101   :  { %p5493_p1 = pnand %p5492_p0, %p5486_p11 }
 0x103   :  { %5496 = shalt.err (!%p5493_p1)
}
 0x104   :  { %290 = dma.hbm_to_vmem [thread:$0]  %s5874_s17, 16, %s288_s6, [#allocation15]  }
 0x105   :  { %s5497_s9 = scalar_lea.hbm %s5879_s21, 16 }
 0x106   :  { %p5498_p2 = scmp.ne.s32.totalorder %s5879_s21, %s5497_s9  ;;  %p5501_p3 = scmp.lt.u32.totalorder %s5497_s9, %s5879_s21 }
 0x108   :  { %p5503_p4 = pnand %p5501_p3, %p5498_p2 }
 0x10a   :  { %5506 = shalt.err (!%p5503_p4)
}
 0x10b   :  { %s5507_s4 = scalar_lea.vmem %s298_s15, 16  ;;  %s5511_s19 = scalar_lea.vmem %s298_s15, 32 }
 0x10c   :  { %p5508_p5 = scmp.ne.s32.totalorder %s298_s15, %s5507_s4  ;;  %p5512_p6 = scmp.lt.s32.totalorder %s298_s15, %s298_s15 }
 0x10d   :  { %p5513_p7 = scmp.lt.s32.totalorder %s5511_s19, %s5507_s4 }
 0x10f   :  { %p5514_p8 = por %p5513_p7, %p5512_p6 }
 0x111   :  { %p5515_p9 = pnand %p5514_p8, %p5508_p5 }
 0x113   :  { %5518 = shalt.err (!%p5515_p9)
}
 0x114   :  { %300 = dma.hbm_to_vmem [thread:$0]  %s5879_s21, 16, %s298_s15, [#allocation18]  }
 0x115   :  { %5529 = dma.done.wait [#allocation3], 16  }
 0x116   :  { %5530 = vsyncadd [#allocation3], 4294967280 }
 0x117   :  { %5531 = dma.done.wait [#allocation6], 32  }
 0x118   :  { %5532 = vsyncadd [#allocation6], 4294967264 }
 0x119   :  { %5533 = dma.done.wait [#allocation9], 32  }
 0x11a   :  { %5534 = vsyncadd [#allocation9], 4294967264 }
 0x11b   :  { %5535 = dma.done.wait [#allocation12], 32  }
 0x11c   :  { %5536 = vsyncadd [#allocation12], 4294967264 }
 0x11d   :  { %5537 = dma.done.wait [#allocation15], 32  }
 0x11e   :  { %5538 = vsyncadd [#allocation15], 4294967264 }
 0x11f   :  { %5539 = dma.done.wait [#allocation18], 16  }
 0x120   :  { %5540 = vsyncadd [#allocation18], 4294967280  ;;  %v5605_v0 = vmov 0   ;;  %v5606_v1 = vmov 0.0   ;;  %v437_v2 = vld [vmem:[%s5624_s5] sm:$0xff]  ;;  %v333_v4 = vld [vmem:[%s5649_s25 + $0x8] sm:$0xff]  ;;  %v438_v15 = vlaneseq }
 0x121   :  { %5109 = vset.pattern.permute.xlu0 %v5605_v0  ;;  %4584 = vmatprep.subr.bf16.mxu1 %v5606_v1  ;;  %v332_v3 = vld [vmem:[%s5649_s25] sm:$0xff]  ;;  %v334_v6 = vld [vmem:[%s5649_s25 + $0x10] sm:$0xff]  ;;  %v335_v7 = vld [vmem:[%s5649_s25 + $0x18] sm:$0xff]  ;;  %vm5607_vm0 = vmmov 0   ;;  %vm451_vm2 = vcmask 523264   ;;  %vm502_vm3 = vcmask 261120  }
 0x122   :  { %4610 = vmatprep.subr.bf16.mxu0 %v5606_v1  ;;  %5110 = vset.pattern.permute.xlu1 %v5605_v0  ;;  %v5933_v5 = vpack.c.bf16 %v333_v4, %v332_v3  ;;  %v336_v8 = vld [vmem:[%s5649_s25 + $0x20] sm:$0xff]  ;;  %v5939_v9 = vpack.c.bf16 %v335_v7, %v334_v6  ;;  %v337_v10 = vld [vmem:[%s5649_s25 + $0x28] sm:$0xff]  ;;  %v338_v11 = vld [vmem:[%s5649_s25 + $0x30] sm:$0xff]  ;;  %v5959_v16 = vand.u32 127, %v438_v15  ;;  %s6748_s17 = sld [smem:[#allocation36_spill]]  ;;  %s6749_s21 = sld [smem:[#allocation29_spill]] }
 0x123   :  { %441 = vperm.xlu0 %5109, %v437_v2   ;;  %4592 = vmatprep.mubr.msk.bf16.mxu1 %vm5607_vm0, %v5606_v1  ;;  %v339_v12 = vld [vmem:[%s5649_s25 + $0x38] sm:$0xff]  ;;  %v5950_v13 = vpack.c.bf16 %v337_v10, %v336_v8  ;;  %v340_v20 = vld [vmem:[%s5654_s29] sm:$0xff]  ;;  %v5112_v35 = vld [vmem:[%s5699_s20 + $0x8] sm:$0xff]   ;;  %s6704_s25 = smov 96   ;;  %vm600_vm4 = vcmask 130048   ;;  %v5995_v57 = vshrl.u32 %v438_v15, 7 }
 0x124   :  { %4585 = vmatpush3.bf16.msra.mxu1 %v5933_v5  ;;  %4612 = vmatprep.mubr.msk.bf16.mxu0 %vm5607_vm0, %v5606_v1  ;;  %v5954_v14 = vpack.c.bf16 %v339_v12, %v338_v11  ;;  %v4294_v22 = vld [vmem:[%s5659_s3] ss:$0 sm:$0xff]  ;;  %vm655_vm5 = vcmask 64512   ;;  %s6702_s23 = smov 80   ;;  %s6700_s26 = smov 64   ;;  %vm673_vm6 = vcmask 1043456  }
 0x125   :  { %4586 = vmatprep.subr.bf16.mxu1 %v5606_v1  ;;  %v5111_v34 = vld [vmem:[%s5699_s20] sm:$0xff]   ;;  %v5998_v59 = vsub.s32 0, %v5995_v57  ;;  %s6706_s12 = smov 112   ;;  %s6750_s28 = sld [smem:[#allocation37_spill]]  ;;  %vm1200_vm8 = vcmask 260096   ;;  %vm1230_vm10 = vcmp.le.s32.totalorder %v5959_v16, %v5995_v57  ;;  %vm1355_vm13 = vcmask 55296  }
 0x126   :  { %v4295_v40 = vld [vmem:[%s5664_s8] ss:$0 sm:$0xff]  ;;  %s6751_s1 = sld [smem:[#allocation27_spill]]  ;;  %s6698_s2 = smov 48   ;;  %vm1374_vm14 = vcmask 1042432   ;;  %vm1370_vm15 = vcmask 56320  }
 0x127   :  { %v4296_v42 = vld [vmem:[%s5669_s14] ss:$0 sm:$0xff]  ;;  %s6752_s24 = sld [smem:[#allocation38_spill]]  ;;  %s6753_s7 = sld [smem:[#allocation55_spill]] }
 0x128   :  { %4587 = vmatpush3.bf16.msra.mxu1 %v5939_v9  ;;  %v4297_v46 = vld [vmem:[%s6748_s17] ss:$0 sm:$0xff]  ;;  %s6754_s30 = sld [smem:[#allocation39_spill]]  ;;  %s6755_s10 = sld [smem:[#allocation40_spill]] }
 0x129   :  { %4588 = vmatprep.subr.bf16.mxu1 %v5606_v1  ;;  %v531_v55 = vld [vmem:[%s6749_s21] sm:$0x1]  ;;  %s6756_s0 = sld [smem:[#allocation31_spill]]  ;;  %s6757_s13 = sld [smem:[#allocation57_spill]] }
 0x12a   :  { %v532_v56 = vsub.f32 1.0, %v531_v55  ;;  %s6758_s6 = sld [smem:[#allocation56_spill]]  ;;  %s6760_s15 = sld [smem:[#allocation33_spill]] }
 0x12b   :  { %s6759_s11 = sld [smem:[#allocation32_spill]]  ;;  %s6761_s16 = sld [smem:[#allocation41_spill]] }
 0x12c   :  { %4589 = vmatpush3.bf16.msra.mxu1 %v5950_v13  ;;  %v533_v58 = vmul.f32 -1e+09, %v532_v56  ;;  %s6762_s18 = sld [smem:[#allocation34_spill]]  ;;  %s6763_s22 = sld [smem:[#allocation35_spill]] }
 0x12d   :  { %4590 = vmatprep.subr.bf16.mxu1 %v5606_v1  ;;  %s6764_s9 = sld [smem:[#allocation42_spill]]  ;;  %s6765_s4 = sld [smem:[#allocation30_spill]] }
 0x12e   :  { %v6001_v60 = vrot.slane %v533_v58, %v5998_v59  ;;  %s6766_s19 = sld [smem:[#allocation43_spill]]  ;;  %s6773_s27 = sld [smem:[#allocation46_spill]] }
 0x130   :  { %4591 = vmatpush3.bf16.msra.mxu1 %v5954_v14 }
 0x131   :  { %4596 = vmatprep.subr.bf16.mxu1 %v5606_v1 }
 0x1a2   :  { %v442_v17 = vpop.permute.xlu0 %441 }
 0x1a3   :  { %vm443_vm1 = vcmp.eq.s32.totalorder %v5959_v16, %v442_v17 }
 0x1a4   :  { %v4292_v18 = vsel %vm443_vm1, 1.0, %v5606_v1  ;;  %vm1842_vm1 = vcmask 63488  }
 0x1a5   :  { %v446_v19 = vpack.c.bf16 %v4292_v18, %v4292_v18 }
 0x1a7   :  { %4593 = vmatmul.mubr.msk.bf16.vlgmr.msra.gmra.mrb[0].mxu1 %vm451_vm2, %v446_v19 }
 0x1a8   :  { %4600 = vmatprep.mubr.msk.bf16.mxu1 %vm5607_vm0, %v5606_v1  ;;  %4597 = vmatpush3.bf16.msra.mxu1 %v5111_v34 }
 0x1a9   :  { %4598 = vmatprep.subr.bf16.mxu1 %v5606_v1 }
 0x1ac   :  { %4599 = vmatpush3.bf16.msra.mxu1 %v5112_v35 }
 0x1ad   :  { %4604 = vmatprep.subr.bf16.mxu1 %v5606_v1 }
 0x27a   :  { %v489_v21 = vpop.f32.mrb[0].mxu1 }
 0x27b   :  { %v490_v23 = vadd.f32 %v489_v21, %v340_v20  ;;  %v4594_v24 = vpop.f32.mrb[1].mxu1 }
 0x27c   :  { %v492_v25 = vpop.f32.mrb[2].mxu1 }
 0x27d   :  { %v4595_v26 = vpop.f32.mrb[3].mxu1  ;;  %v501_v27 = vadd.f32 %v4294_v22, %v490_v23  ;;  %v5113_v25 = vld [vmem:[%s6750_s28] sm:$0xff]  }
 0x27f   :  { %v503_v28 = vsel %vm502_vm3, %v501_v27, 0.0 }
 0x280   :  { %504 = vadd.xlane.f32.xlu0 %v503_v28 }
 0x30d   :  { %v505_v29 = vpop.xlane.xlu0 %504 }
 0x30e   :  { %v507_v30 = vmul.f32 0.03125, %v505_v29 }
 0x310   :  { %v508_v31 = vsub.f32 %v501_v27, %v507_v30 }
 0x312   :  { %v509_v32 = vmul.f32 %v508_v31, %v508_v31 }
 0x314   :  { %v510_v33 = vsel %vm502_vm3, %v509_v32, 0.0 }
 0x315   :  { %511 = vadd.xlane.f32.xlu1 %v510_v33 }
 0x3a2   :  { %v512_v36 = vpop.xlane.xlu1 %511 }
 0x3a3   :  { %v513_v37 = vmul.f32 0.03125, %v512_v36 }
 0x3a5   :  { %v514_v38 = vadd.f32 1e-12, %v513_v37 }
 0x3a7   :  { %5139 = vrsqrt.f32 %v514_v38  ;;  %v1138_v38 = vld [vmem:[%s6751_s1] sm:$0x7f] }
 0x3b1   :  { %v5140_v39 = vpop.eup %5139 }
 0x3b2   :  { %v516_v41 = vmul.f32 %v5140_v39, %v508_v31 }
 0x3b4   :  { %v523_v43 = vmul.f32 %v4295_v40, %v516_v41 }
 0x3b6   :  { %v5976_v44 = vadd.f32 %v4296_v42, %v523_v43 }
 0x3b8   :  { %v534_v45 = vpack.c.bf16 %v5976_v44, %v5976_v44 }
 0x3ba   :  { %4601 = vmatmul.mubr.msk.bf16.vlgmr.msra.gmra.mrb[4].mxu1 %vm502_vm3, %v534_v45 }
 0x3bb   :  { %4606 = vmatprep.mubr.msk.bf16.mxu1 %vm5607_vm0, %v5606_v1 }
 0x48d   :  { %v590_v47 = vpop.f32.mrb[4].mxu1 }
 0x48e   :  { %v591_v48 = vadd.f32 %v4297_v46, %v590_v47  ;;  %v4602_v49 = vpop.f32.mrb[5].mxu1  ;;  %v5114_v47 = vld [vmem:[%s6750_s28 + $0x8] sm:$0xff]  }
 0x48f   :  { %v593_v50 = vpop.f32.mrb[6].mxu1 }
 0x490   :  { %v5984_v51 = vpack.c.bf16 %v591_v48, %v591_v48  ;;  %v4603_v52 = vpop.f32.mrb[7].mxu1 }
 0x492   :  { %598 = vrot.lane.b32.xlu1 %v5984_v51, %s6704_s25 }
 0x504   :  { %v599_v53 = vpop.permute.xlu1 %598 }
 0x505   :  { %v605_v54 = vsel %vm600_vm4, %v599_v53, 0 }
 0x506   :  { %4605 = vmatpush3.bf16.xpose.msra.mxu1 %v605_v54 }
 0x507   :  { %4616 = vmatprep.subr.bf16.mxu1 %v5606_v1 }
 0x50d   :  { %4607 = vmatmul.mubr.msk.bf16.vlgmr.msra.gmra.mrb[8].mxu1 %vm600_vm4, %v5984_v51 }
 0x50e   :  { %4618 = vmatprep.mubr.msk.bf16.mxu1 %vm5607_vm0, %v5606_v1  ;;  %4617 = vmatpush3.bf16.msra.mxu1 %v5113_v25 }
 0x50f   :  { %4628 = vmatprep.subr.bf16.mxu1 %v5606_v1 }
 0x5e0   :  { %v641_v61 = vpop.f32.mrb[8].mxu1 }
 0x5e1   :  { %v647_v62 = vmul.f32 0.25, %v641_v61  ;;  %v4608_v63 = vpop.f32.mrb[9].mxu1 }
 0x5e2   :  { %v644_v2 = vpop.f32.mrb[10].mxu1 }
 0x5e3   :  { %v4609_v3 = vpop.f32.mrb[11].mxu1  ;;  %v654_v4 = vadd.f32 %v6001_v60, %v647_v62  ;;  %v4305_v2 = vld [vmem:[%s6752_s24] ss:$0 sm:$0xff] }
 0x5e5   :  { %v656_v6 = vsel %vm655_vm5, %v654_v4, -inf }
 0x5e6   :  { %657 = vmax.xlane.f32.xlu1 %v656_v6 }
 0x5f7   :  { %776 = vrot.lane.b32.xlu1 %v5984_v51, %s6702_s23 }
 0x673   :  { %v658_v7 = vpop.xlane.xlu1 %657 }
 0x674   :  { %v659_v8 = vsub.f32 %v654_v4, %v658_v7 }
 0x676   :  { %v660_v10 = vmul.f32 1.442695, %v659_v8 }
 0x677   :  { %v777_v21 = vpop.permute.xlu1 %776 }
 0x678   :  { %5141 = vpow2.f32 %v660_v10  ;;  %v782_v23 = vsel %vm600_vm4, %v777_v21, 0  ;;  %v5115_v21 = vld [vmem:[%s6753_s7] sm:$0xff]  }
 0x682   :  { %v5142_v11 = vpop.eup %5141 }
 0x683   :  { %v662_v12 = vsel %vm655_vm5, %v5142_v11, 0.0 }
 0x684   :  { %663 = vadd.xlane.f32.xlu0 %v662_v12 }
 0x69a   :  { %668 = vrot.lane.b32.xlu0 %v5984_v51, %s6700_s26 }
 0x69e   :  { %774 = vrot.lane.b32.xlu0 %v5984_v51, %s6706_s12 }
 0x711   :  { %v664_v15 = vpop.xlane.xlu0 %663 }
 0x712   :  { %5143 = vrcp.f32 %v664_v15 }
 0x715   :  { %v669_v17 = vpop.permute.xlu0 %668 }
 0x716   :  { %v675_v18 = vsel %vm673_vm6, %v669_v17, 0 }
 0x717   :  { %4611 = vmatpush3.bf16.msra.mxu0 %v675_v18 }
 0x718   :  { %4622 = vmatprep.subr.bf16.mxu0 %v5606_v1 }
 0x719   :  { %v775_v24 = vpop.permute.xlu0 %774 }
 0x71c   :  { %v5144_v19 = vpop.eup %5143 }
 0x71d   :  { %v666_v20 = vmul.f32 %v5144_v19, %v5142_v11 }
 0x71f   :  { %v667_v22 = vpack.c.bf16 %v666_v20, %v666_v20 }
 0x721   :  { %4613 = vmatmul.mubr.msk.bf16.vlgmr.msra.gmra.mrb[0].mxu0 %vm655_vm5, %v667_v22  ;;  %v5116_v22 = vld [vmem:[%s6753_s7 + $0x8] sm:$0xff]  }
 0x722   :  { %4623 = vmatpush3.bf16.xpose.msra.mxu0 %v782_v23  ;;  %4624 = vmatprep.mubr.msk.bf16.mxu0 %vm5607_vm0, %v5606_v1 }
 0x723   :  { %4634 = vmatprep.subr.bf16.mxu0 %v5606_v1 }
 0x729   :  { %4625 = vmatmul.mubr.msk.bf16.vlgmr.msra.gmra.mrb[4].mxu0 %vm600_vm4, %v775_v24 }
 0x72a   :  { %4636 = vmatprep.mubr.msk.bf16.mxu0 %vm5607_vm0, %v5606_v1  ;;  %4635 = vmatpush3.bf16.msra.mxu0 %v5114_v47 }
 0x72b   :  { %4648 = vmatprep.subr.bf16.mxu0 %v5606_v1 }
 0x7f4   :  { %v711_v26 = vpop.f32.mrb[0].mxu0 }
 0x7f5   :  { %v717_v27 = vpack.c.bf16 %v711_v26, %v711_v26  ;;  %v4614_v28 = vpop.f32.mrb[1].mxu0  ;;  %v4310_v26 = vld [vmem:[%s6754_s30] ss:$0 sm:$0xff] }
 0x7f6   :  { %v714_v29 = vpop.f32.mrb[2].mxu0  ;;  %v4311_v28 = vld [vmem:[%s6755_s10] ss:$0 sm:$0xff] }
 0x7f7   :  { %v4615_v30 = vpop.f32.mrb[3].mxu0  ;;  %4619 = vmatmul.mubr.msk.bf16.vlgmr.msra.gmra.mrb[12].mxu1 %vm600_vm4, %v717_v27 }
 0x7f8   :  { %4630 = vmatprep.mubr.msk.bf16.mxu1 %vm5607_vm0, %v5606_v1  ;;  %v344_v30 = vld [vmem:[%s6756_s0] sm:$0xff] }
 0x7fc   :  { %v818_v31 = vpop.f32.mrb[4].mxu0 }
 0x7fd   :  { %v824_v32 = vmul.f32 0.25, %v818_v31  ;;  %v4626_v33 = vpop.f32.mrb[5].mxu0  ;;  %v345_v31 = vld [vmem:[%s6756_s0 + $0x8] sm:$0xff] }
 0x7fe   :  { %v821_v34 = vpop.f32.mrb[6].mxu0  ;;  %v6057_v33 = vpack.c.bf16 %v345_v31, %v344_v30 }
 0x7ff   :  { %v4627_v35 = vpop.f32.mrb[7].mxu0  ;;  %v825_v36 = vadd.f32 %v824_v32, %v6001_v60 }
 0x800   :  { %v346_v35 = vld [vmem:[%s6756_s0 + $0x10] sm:$0xff] }
 0x801   :  { %v826_v37 = vsel %vm655_vm5, %v825_v36, -inf }
 0x802   :  { %827 = vmax.xlane.f32.xlu0 %v826_v37 }
 0x818   :  { %838 = vrot.lane.b32.xlu0 %v5984_v51, %s6698_s2 }
 0x81c   :  { %1140 = vperm.xlu0 %5109, %v1138_v38   ;;  %v348_v38 = vld [vmem:[%s6756_s0 + $0x20] sm:$0xff] }
 0x88f   :  { %v828_v39 = vpop.xlane.xlu0 %827 }
 0x890   :  { %v829_v40 = vsub.f32 %v825_v36, %v828_v39  ;;  %v347_v36 = vld [vmem:[%s6756_s0 + $0x18] sm:$0xff]  ;;  %v349_v39 = vld [vmem:[%s6756_s0 + $0x28] sm:$0xff] }
 0x891   :  { %v6065_v37 = vpack.c.bf16 %v347_v36, %v346_v35 }
 0x892   :  { %v830_v41 = vmul.f32 1.442695, %v829_v40 }
 0x893   :  { %v839_v42 = vpop.permute.xlu0 %838 }
 0x894   :  { %5145 = vpow2.f32 %v830_v41  ;;  %v844_v43 = vsel %vm673_vm6, %v839_v42, 0  ;;  %v6073_v41 = vpack.c.bf16 %v349_v39, %v348_v38  ;;  %v350_v42 = vld [vmem:[%s6756_s0 + $0x30] sm:$0xff] }
 0x895   :  { %4629 = vmatpush3.bf16.msra.mxu1 %v844_v43  ;;  %v351_v43 = vld [vmem:[%s6756_s0 + $0x38] sm:$0xff]  ;;  %s6767_s0 = sld [smem:[#allocation58_spill]] }
 0x896   :  { %4640 = vmatprep.subr.bf16.mxu1 %v5606_v1 }
 0x89b   :  { %v1141_v40 = vpop.permute.xlu0 %1140 }
 0x89c   :  { %vm1142_vm7 = vcmp.eq.s32.totalorder %v5959_v16, %v1141_v40  ;;  %v4327_v40 = vld [vmem:[%s6762_s18] ss:$0 sm:$0xff] }
 0x89e   :  { %v5146_v45 = vpop.eup %5145 }
 0x89f   :  { %v832_v46 = vsel %vm655_vm5, %v5146_v45, 0.0 }
 0x8a0   :  { %833 = vadd.xlane.f32.xlu1 %v832_v46  ;;  %v4324_v46 = vsel %vm1142_vm7, 1.0, %v5606_v1 }
 0x8a1   :  { %v1145_v47 = vpack.c.bf16 %v4324_v46, %v4324_v46 }
 0x8ca   :  { %v761_v48 = vpop.f32.mrb[12].mxu1 }
 0x8cb   :  { %v4620_v49 = vpop.f32.mrb[13].mxu1  ;;  %v773_v3 = vadd.f32 %v4305_v2, %v761_v48  ;;  %v5117_v48 = vld [vmem:[%s6757_s13] sm:$0xff]  }
 0x8cc   :  { %v764_v50 = vpop.f32.mrb[14].mxu1  ;;  %v5118_v49 = vld [vmem:[%s6757_s13 + $0x8] sm:$0xff]  }
 0x8cd   :  { %v4621_v51 = vpop.f32.mrb[15].mxu1  ;;  %v5119_v50 = vld [vmem:[%s6757_s13 + $0x10] sm:$0xff]  }
 0x8ce   :  { %v5120_v51 = vld [vmem:[%s6757_s13 + $0x18] sm:$0xff]  }
 0x92d   :  { %v834_v52 = vpop.xlane.xlu1 %833 }
 0x92e   :  { %5147 = vrcp.f32 %v834_v52  ;;  %v4312_v52 = vld [vmem:[%s6758_s6] ss:$0 sm:$0xff] }
 0x938   :  { %v5148_v53 = vpop.eup %5147 }
 0x939   :  { %v836_v54 = vmul.f32 %v5148_v53, %v5146_v45  ;;  %v6080_v45 = vpack.c.bf16 %v351_v43, %v350_v42  ;;  %v4328_v43 = vld [vmem:[%s6763_s22] ss:$0 sm:$0xff] }
 0x93b   :  { %v837_v55 = vpack.c.bf16 %v836_v54, %v836_v54 }
 0x93d   :  { %4631 = vmatmul.mubr.msk.bf16.vlgmr.msra.gmra.mrb[16].mxu1 %vm655_vm5, %v837_v55 }
 0x93e   :  { %4644 = vmatprep.mubr.msk.bf16.mxu1 %vm5607_vm0, %v5606_v1  ;;  %4641 = vmatpush3.bf16.msra.mxu1 %v5115_v21 }
 0x93f   :  { %4642 = vmatprep.subr.bf16.mxu1 %v5606_v1 }
 0x942   :  { %4643 = vmatpush3.bf16.msra.mxu1 %v5116_v22 }
 0x943   :  { %4660 = vmatprep.subr.bf16.mxu1 %v5606_v1 }
 0xa10   :  { %v880_v56 = vpop.f32.mrb[16].mxu1 }
 0xa11   :  { %v886_v58 = vpack.c.bf16 %v880_v56, %v880_v56  ;;  %v4632_v61 = vpop.f32.mrb[17].mxu1 }
 0xa12   :  { %v883_v62 = vpop.f32.mrb[18].mxu1 }
 0xa13   :  { %v4633_v63 = vpop.f32.mrb[19].mxu1  ;;  %4637 = vmatmul.mubr.msk.bf16.vlgmr.msra.gmra.mrb[8].mxu0 %vm600_vm4, %v886_v58 }
 0xa14   :  { %4656 = vmatprep.mubr.msk.bf16.mxu0 %vm5607_vm0, %v5606_v1  ;;  %4649 = vmatpush3.bf16.msra.mxu0 %v5117_v48 }
 0xa15   :  { %4650 = vmatprep.subr.bf16.mxu0 %v5606_v1 }
 0xa18   :  { %4651 = vmatpush3.bf16.msra.mxu0 %v5118_v49  ;;  %v4329_v49 = vld [vmem:[%s6764_s9] ss:$0 sm:$0xff] }
 0xa19   :  { %4652 = vmatprep.subr.bf16.mxu0 %v5606_v1 }
 0xa1c   :  { %4653 = vmatpush3.bf16.msra.mxu0 %v5119_v50 }
 0xa1d   :  { %4654 = vmatprep.subr.bf16.mxu0 %v5606_v1 }
 0xa20   :  { %4655 = vmatpush3.bf16.msra.mxu0 %v5120_v51 }
 0xa21   :  { %4672 = vmatprep.subr.bf16.mxu0 %v5606_v1 }
 0xae6   :  { %v930_v4 = vpop.f32.mrb[8].mxu0 }
 0xae7   :  { %v936_v6 = vadd.f32 %v930_v4, %v773_v3  ;;  %v4638_v7 = vpop.f32.mrb[9].mxu0  ;;  %v352_v4 = vld [vmem:[%s6759_s11] sm:$0x7f] }
 0xae8   :  { %v933_v8 = vpop.f32.mrb[10].mxu0  ;;  %v4326_v7 = vld [vmem:[%s6760_s15] ss:$0 sm:$0xff] }
 0xae9   :  { %v4639_v10 = vpop.f32.mrb[11].mxu0  ;;  %v937_v11 = vadd.f32 %v936_v6, %v5976_v44 }
 0xaeb   :  { %v938_v12 = vsel %vm502_vm3, %v937_v11, 0.0 }
 0xaec   :  { %939 = vadd.xlane.f32.xlu1 %v938_v12 }
 0xb79   :  { %v940_v15 = vpop.xlane.xlu1 %939 }
 0xb7a   :  { %v941_v17 = vmul.f32 0.03125, %v940_v15 }
 0xb7c   :  { %v942_v18 = vsub.f32 %v937_v11, %v941_v17 }
 0xb7e   :  { %v943_v19 = vmul.f32 %v942_v18, %v942_v18 }
 0xb80   :  { %v944_v20 = vsel %vm502_vm3, %v943_v19, 0.0 }
 0xb81   :  { %945 = vadd.xlane.f32.xlu1 %v944_v20 }
 0xc0e   :  { %v946_v44 = vpop.xlane.xlu1 %945 }
 0xc0f   :  { %v947_v23 = vmul.f32 0.03125, %v946_v44 }
 0xc11   :  { %v948_v24 = vadd.f32 1e-12, %v947_v23 }
 0xc13   :  { %5149 = vrsqrt.f32 %v948_v24 }
 0xc1d   :  { %v5150_v25 = vpop.eup %5149 }
 0xc1e   :  { %v950_v27 = vmul.f32 %v5150_v25, %v942_v18 }
 0xc20   :  { %v957_v29 = vmul.f32 %v4310_v26, %v950_v27  ;;  %v5121_v27 = vld [vmem:[%s6761_s16] sm:$0xff]  }
 0xc22   :  { %v6055_v32 = vadd.f32 %v4311_v28, %v957_v29  ;;  %v5122_v28 = vld [vmem:[%s6761_s16 + $0x8] sm:$0xff]  }
 0xc24   :  { %v965_v34 = vpack.c.bf16 %v6055_v32, %v6055_v32 }
 0xc26   :  { %4645 = vmatmul.mubr.msk.bf16.vlgmr.msra.gmra.mrb[20].mxu1 %vm502_vm3, %v965_v34 }
 0xc27   :  { %4661 = vmatpush3.bf16.msra.mxu1 %v6057_v33  ;;  %4668 = vmatprep.mubr.msk.bf16.mxu1 %vm5607_vm0, %v5606_v1 }
 0xc28   :  { %4662 = vmatprep.subr.bf16.mxu1 %v5606_v1 }
 0xc2b   :  { %4663 = vmatpush3.bf16.msra.mxu1 %v6065_v37 }
 0xc2c   :  { %4664 = vmatprep.subr.bf16.mxu1 %v5606_v1 }
 0xc2f   :  { %4665 = vmatpush3.bf16.msra.mxu1 %v6073_v41 }
 0xc30   :  { %4666 = vmatprep.subr.bf16.mxu1 %v5606_v1 }
 0xc33   :  { %4667 = vmatpush3.bf16.msra.mxu1 %v6080_v45 }
 0xc34   :  { %4680 = vmatprep.subr.bf16.mxu1 %v5606_v1 }
 0xc36   :  { %4669 = vmatmul.mubr.msk.bf16.vlgmr.msra.gmra.mrb[24].mxu1 %vm451_vm2, %v1145_v47 }
 0xc37   :  { %4682 = vmatprep.mubr.msk.bf16.mxu1 %vm5607_vm0, %v5606_v1 }
 0xcf9   :  { %v1021_v53 = vpop.f32.mrb[20].mxu1 }
 0xcfa   :  { %v1022_v54 = vadd.f32 %v4312_v52, %v1021_v53  ;;  %v4646_v55 = vpop.f32.mrb[21].mxu1 }
 0xcfb   :  { %v1024_v56 = vpop.f32.mrb[22].mxu1 }
 0xcfc   :  { %v1028_v58 = vmul.f32 0.044715, %v1022_v54  ;;  %v4647_v61 = vpop.f32.mrb[23].mxu1  ;;  %v1027_v19 = vmul.f32 0.5, %v1022_v54 }
 0xcfd   :  { %v1231_v61 = vld [vmem:[%s6765_s4] sm:$0x1] }
 0xcfe   :  { %v1029_v62 = vmul.f32 %v1028_v58, %v1022_v54  ;;  %vm1232_vm9 = vcmp.gt.f32.partialorder %v1231_v61, 0.5 }
 0xd00   :  { %v1030_v63 = vmul.f32 %v1029_v62, %v1022_v54  ;;  %v1233_v62 = vsel %vm1232_vm9, 1, %v5605_v0 }
 0xd02   :  { %v1031_v2 = vadd.f32 %v1030_v63, %v1022_v54  ;;  %v1237_v63 = vrot.slane %v1233_v62, %v5998_v59  ;;  %v4316_v62 = vld [vmem:[%s6767_s0] ss:$0 sm:$0xff]  ;;  %s6783_s0 = sld [smem:[#allocation60_spill]] }
 0xd04   :  { %v1032_v3 = vmul.f32 0.7978846, %v1031_v2  ;;  %vm1238_vm11 = vcmp.eq.s32.totalorder %v1237_v63, 1 }
 0xd05   :  { %vm1239_vm12 = vmand %vm1230_vm10, %vm1238_vm11 }
 0xd06   :  { %5151 = vtanh.f32 %v1032_v3  ;;  %v5613_v3 = vmov -1e+09  }
 0xd09   :  { %v1187_v6 = vpop.f32.mrb[24].mxu1 }
 0xd0a   :  { %v1188_v8 = vadd.f32 %v1187_v6, %v352_v4  ;;  %v4670_v10 = vpop.f32.mrb[25].mxu1  ;;  %v1240_v4 = vsel %vm1239_vm12, 0.0, %v5613_v3 }
 0xd0b   :  { %v1190_v11 = vpop.f32.mrb[26].mxu1 }
 0xd0c   :  { %v4671_v12 = vpop.f32.mrb[27].mxu1  ;;  %v1199_v15 = vadd.f32 %v4326_v7, %v1188_v8 }
 0xd0e   :  { %v1201_v17 = vsel %vm1200_vm8, %v1199_v15, 0.0 }
 0xd0f   :  { %1202 = vadd.xlane.f32.xlu1 %v1201_v17 }
 0xd10   :  { %v5152_v18 = vpop.eup %5151 }
 0xd11   :  { %v1034_v20 = vadd.f32 1.0, %v5152_v18 }
 0xd13   :  { %v1035_v21 = vmul.f32 %v1034_v20, %v1027_v19 }
 0xd15   :  { %v1036_v22 = vpack.c.bf16 %v1035_v21, %v1035_v21  ;;  %v5614_v21 = vmov 65535  }
 0xd17   :  { %4657 = vmatmul.mubr.msk.bf16.vlgmr.msra.gmra.mrb[12].mxu0 %vm451_vm2, %v1036_v22  ;;  %v1375_v22 = vsel %vm1374_vm14, 4294967295, %v5614_v21 }
 0xd18   :  { %4676 = vmatprep.mubr.msk.bf16.mxu0 %vm5607_vm0, %v5606_v1  ;;  %4673 = vmatpush3.bf16.msra.mxu0 %v5121_v27 }
 0xd19   :  { %4674 = vmatprep.subr.bf16.mxu0 %v5606_v1 }
 0xd1c   :  { %4675 = vmatpush3.bf16.msra.mxu0 %v5122_v28 }
 0xd1d   :  { %4686 = vmatprep.subr.bf16.mxu0 %v5606_v1 }
 0xd9c   :  { %v1203_v44 = vpop.xlane.xlu1 %1202 }
 0xd9d   :  { %v1204_v23 = vmul.f32 0.03125, %v1203_v44 }
 0xd9f   :  { %v1205_v24 = vsub.f32 %v1199_v15, %v1204_v23  ;;  %v6149_v23 = vsel %vm673_vm6, %v1375_v22, 0  ;;  %v5124_v22 = vld [vmem:[%s6766_s19 + $0x8] sm:$0xff]  }
 0xda1   :  { %v1206_v25 = vmul.f32 %v1205_v24, %v1205_v24 }
 0xda3   :  { %v1207_v26 = vsel %vm1200_vm8, %v1206_v25, 0.0 }
 0xda4   :  { %1208 = vadd.xlane.f32.xlu0 %v1207_v26 }
 0xdea   :  { %v6109_v29 = vpop.f32.mrb[12].mxu0 }
 0xdeb   :  { %v4658_v30 = vpop.f32.mrb[13].mxu0  ;;  %v1105_v63 = vadd.f32 %v4316_v62, %v6109_v29 }
 0xdec   :  { %v1107_v31 = vpop.f32.mrb[14].mxu0 }
 0xded   :  { %v4659_v34 = vpop.f32.mrb[15].mxu0 }
 0xe31   :  { %v1209_v35 = vpop.xlane.xlu0 %1208 }
 0xe32   :  { %v1210_v36 = vmul.f32 0.03125, %v1209_v35  ;;  %v5123_v35 = vld [vmem:[%s6766_s19] sm:$0xff]  }
 0xe34   :  { %v1211_v38 = vadd.f32 1e-12, %v1210_v36 }
 0xe36   :  { %5153 = vrsqrt.f32 %v1211_v38 }
 0xe40   :  { %v5154_v39 = vpop.eup %5153 }
 0xe41   :  { %v1213_v42 = vmul.f32 %v5154_v39, %v1205_v24 }
 0xe43   :  { %v1220_v46 = vmul.f32 %v4327_v40, %v1213_v42 }
 0xe45   :  { %v6113_v47 = vadd.f32 %v4328_v43, %v1220_v46 }
 0xe47   :  { %v1241_v48 = vpack.c.bf16 %v6113_v47, %v6113_v47 }
 0xe49   :  { %4677 = vmatmul.mubr.msk.bf16.vlgmr.msra.gmra.mrb[16].mxu0 %vm502_vm3, %v1241_v48 }
 0xe4a   :  { %4688 = vmatprep.mubr.msk.bf16.mxu0 %vm5607_vm0, %v5606_v1 }
 0xf1c   :  { %v1297_v50 = vpop.f32.mrb[16].mxu0 }
 0xf1d   :  { %v1298_v51 = vadd.f32 %v4329_v49, %v1297_v50  ;;  %v4678_v52 = vpop.f32.mrb[17].mxu0 }
 0xf1e   :  { %v1300_v53 = vpop.f32.mrb[18].mxu0 }
 0xf1f   :  { %v6121_v54 = vpack.c.bf16 %v1298_v51, %v1298_v51  ;;  %v4679_v55 = vpop.f32.mrb[19].mxu0 }
 0xf21   :  { %1305 = vrot.lane.b32.xlu1 %v6121_v54, %s6704_s25  ;;  %s6771_s25 = sld [smem:[#allocation50_spill]] }
 0xf93   :  { %v1306_v56 = vpop.permute.xlu1 %1305 }
 0xf94   :  { %v1311_v58 = vsel %vm600_vm4, %v1306_v56, 0 }
 0xf95   :  { %4681 = vmatpush3.bf16.xpose.msra.mxu1 %v1311_v58 }
 0xf96   :  { %4692 = vmatprep.subr.bf16.mxu1 %v5606_v1 }
 0xf9c   :  { %4683 = vmatmul.mubr.msk.bf16.vlgmr.msra.gmra.mrb[28].mxu1 %vm600_vm4, %v6121_v54 }
 0xf9d   :  { %4694 = vmatprep.mubr.msk.bf16.mxu1 %vm5607_vm0, %v5606_v1  ;;  %4693 = vmatpush3.bf16.msra.mxu1 %v5123_v35 }
 0xf9e   :  { %4704 = vmatprep.subr.bf16.mxu1 %v5606_v1 }
0x106f   :  { %v1347_v2 = vpop.f32.mrb[28].mxu1 }
0x1070   :  { %v1353_v6 = vmul.f32 0.25, %v1347_v2  ;;  %v4684_v7 = vpop.f32.mrb[29].mxu1 }
0x1071   :  { %v1350_v8 = vpop.f32.mrb[30].mxu1 }
0x1072   :  { %v4685_v10 = vpop.f32.mrb[31].mxu1  ;;  %v1354_v11 = vadd.f32 %v1353_v6, %v1240_v4  ;;  %v1110_v6 = vadd.f32 %v1105_v63, %v6055_v32 }
0x1074   :  { %v1356_v12 = vsel %vm1355_vm13, %v1354_v11, -inf }
0x1075   :  { %1357 = vmax.xlane.f32.xlu1 %v1356_v12 }
0x1086   :  { %1479 = vrot.lane.b32.xlu1 %v6121_v54, %s6702_s23  ;;  %s6770_s23 = sld [smem:[#allocation47_spill]] }
0x1102   :  { %v1358_v15 = vpop.xlane.xlu1 %1357 }
0x1103   :  { %v1359_v17 = vsub.f32 %v1354_v11, %v1358_v15 }
0x1105   :  { %v1360_v18 = vmul.f32 1.442695, %v1359_v17 }
0x1106   :  { %v1480_v28 = vpop.permute.xlu1 %1479 }
0x1107   :  { %5155 = vpow2.f32 %v1360_v18  ;;  %v1485_v31 = vsel %vm600_vm4, %v1480_v28, 0  ;;  %v4322_v28 = vld [vmem:[#allocation2] ss:$0 sm:$0xff] }
0x1111   :  { %v5156_v19 = vpop.eup %5155 }
0x1112   :  { %v1362_v20 = vsel %vm1355_vm13, %v5156_v19, 0.0 }
0x1113   :  { %1363 = vadd.xlane.f32.xlu0 %v1362_v20 }
0x1129   :  { %1368 = vrot.lane.b32.xlu0 %v6121_v54, %s6700_s26  ;;  %s6769_s26 = sld [smem:[#allocation44_spill]] }
0x112d   :  { %1477 = vrot.lane.b32.xlu0 %v6121_v54, %s6706_s12  ;;  %s6772_s12 = sld [smem:[#allocation45_spill]] }
0x11a0   :  { %v1364_v44 = vpop.xlane.xlu0 %1363 }
0x11a1   :  { %5157 = vrcp.f32 %v1364_v44 }
0x11a4   :  { %v1369_v24 = vpop.permute.xlu0 %1368 }
0x11a5   :  { %v1378_v25 = vand.u32 %v6149_v23, %v1369_v24 }
0x11a7   :  { %4687 = vmatpush3.bf16.msra.mxu0 %v1378_v25 }
0x11a8   :  { %4698 = vmatprep.subr.bf16.mxu0 %v5606_v1  ;;  %v1478_v34 = vpop.permute.xlu0 %1477 }
0x11ab   :  { %v5158_v26 = vpop.eup %5157 }
0x11ac   :  { %v1366_v27 = vmul.f32 %v5158_v26, %v5156_v19 }
0x11ae   :  { %v1367_v30 = vpack.c.bf16 %v1366_v27, %v1366_v27 }
0x11b0   :  { %4689 = vmatmul.mubr.msk.bf16.vlgmr.msra.gmra.mrb[20].mxu0 %vm1370_vm15, %v1367_v30 }
0x11b1   :  { %4699 = vmatpush3.bf16.xpose.msra.mxu0 %v1485_v31  ;;  %4700 = vmatprep.mubr.msk.bf16.mxu0 %vm5607_vm0, %v5606_v1 }
0x11b2   :  { %4710 = vmatprep.subr.bf16.mxu0 %v5606_v1 }
0x11b8   :  { %4701 = vmatmul.mubr.msk.bf16.vlgmr.msra.gmra.mrb[24].mxu0 %vm600_vm4, %v1478_v34 }
0x11b9   :  { %4712 = vmatprep.mubr.msk.bf16.mxu0 %vm5607_vm0, %v5606_v1  ;;  %4711 = vmatpush3.bf16.msra.mxu0 %v5124_v22 }
0x11ba   :  { %4724 = vmatprep.subr.bf16.mxu0 %v5606_v1 }
0x1283   :  { %v1414_v36 = vpop.f32.mrb[20].mxu0 }
0x1284   :  { %v1420_v38 = vpack.c.bf16 %v1414_v36, %v1414_v36  ;;  %v4690_v39 = vpop.f32.mrb[21].mxu0 }
0x1285   :  { %v1417_v40 = vpop.f32.mrb[22].mxu0  ;;  %v4323_v39 = vld [vmem:[#allocation5] ss:$0 sm:$0xff] }
0x1286   :  { %v4691_v42 = vpop.f32.mrb[23].mxu0  ;;  %4695 = vmatmul.mubr.msk.bf16.vlgmr.msra.gmra.mrb[32].mxu1 %vm600_vm4, %v1420_v38 }
0x1287   :  { %4706 = vmatprep.mubr.msk.bf16.mxu1 %vm5607_vm0, %v5606_v1 }
0x128b   :  { %v1521_v43 = vpop.f32.mrb[24].mxu0 }
0x128c   :  { %v1527_v46 = vmul.f32 0.25, %v1521_v43  ;;  %v4702_v48 = vpop.f32.mrb[25].mxu0 }
0x128d   :  { %v1524_v49 = vpop.f32.mrb[26].mxu0  ;;  %v4337_v48 = vld [vmem:[%s6769_s26] ss:$0 sm:$0xff]  ;;  %s6774_s26 = sld [smem:[#allocation48_spill]] }
0x128e   :  { %v4703_v50 = vpop.f32.mrb[27].mxu0  ;;  %v1528_v51 = vadd.f32 %v1527_v46, %v1240_v4 }
0x1290   :  { %v1529_v52 = vsel %vm1355_vm13, %v1528_v51, -inf }
0x1291   :  { %1530 = vmax.xlane.f32.xlu0 %v1529_v52 }
0x12a7   :  { %1541 = vrot.lane.b32.xlu0 %v6121_v54, %s6698_s2  ;;  %v1111_v54 = vsel %vm502_vm3, %v1110_v6, 0.0  ;;  %s6768_s2 = sld [smem:[#allocation49_spill]] }
0x12ad   :  { %v5125_v31 = vld [vmem:[%s6768_s2] sm:$0xff]   ;;  %v5126_v42 = vld [vmem:[%s6768_s2 + $0x8] sm:$0xff]   ;;  %s6779_s2 = sld [smem:[#allocation52_spill]] }
0x131e   :  { %v1531_v53 = vpop.xlane.xlu0 %1530 }
0x131f   :  { %v1532_v55 = vsub.f32 %v1528_v51, %v1531_v53 }
0x1321   :  { %v1533_v56 = vmul.f32 1.442695, %v1532_v55 }
0x1322   :  { %v1542_v58 = vpop.permute.xlu0 %1541 }
0x1323   :  { %5159 = vpow2.f32 %v1533_v56  ;;  %v1547_v61 = vand.u32 %v1542_v58, %v6149_v23 }
0x1325   :  { %4705 = vmatpush3.bf16.msra.mxu1 %v1547_v61 }
0x1326   :  { %4716 = vmatprep.subr.bf16.mxu1 %v5606_v1 }
0x132d   :  { %v5160_v2 = vpop.eup %5159 }
0x132e   :  { %v1535_v4 = vsel %vm1355_vm13, %v5160_v2, 0.0 }
0x132f   :  { %1536 = vadd.xlane.f32.xlu1 %v1535_v4 }
0x1333   :  { %1112 = vadd.xlane.f32.xlu1 %v1111_v54 }
0x1359   :  { %v1464_v7 = vpop.f32.mrb[32].mxu1 }
0x135a   :  { %v4696_v8 = vpop.f32.mrb[33].mxu1  ;;  %v1476_v49 = vadd.f32 %v4337_v48, %v1464_v7 }
0x135b   :  { %v1467_v10 = vpop.f32.mrb[34].mxu1 }
0x135c   :  { %v4697_v11 = vpop.f32.mrb[35].mxu1  ;;  %v5127_v10 = vld [vmem:[%s6770_s23] sm:$0xff]  }
0x13bc   :  { %v1537_v12 = vpop.xlane.xlu1 %1536 }
0x13bd   :  { %5161 = vrcp.f32 %v1537_v12 }
0x13c0   :  { %v1113_v15 = vpop.xlane.xlu1 %1112 }
0x13c1   :  { %v1114_v17 = vmul.f32 0.03125, %v1113_v15 }
0x13c3   :  { %v1115_v18 = vsub.f32 %v1110_v6, %v1114_v17  ;;  %v4348_v17 = vld [vmem:[%s6771_s25] ss:$0 sm:$0xff]  ;;  %s6775_s25 = smov 112  }
0x13c5   :  { %v1116_v29 = vmul.f32 %v1115_v18, %v1115_v18 }
0x13c7   :  { %v5162_v19 = vpop.eup %5161  ;;  %v1117_v20 = vsel %vm502_vm3, %v1116_v29, 0.0  ;;  %v4342_v29 = vld [vmem:[%s6772_s12] ss:$0 sm:$0xff]  ;;  %s6778_s12 = smov 80  }
0x13c8   :  { %v1539_v21 = vmul.f32 %v5162_v19, %v5160_v2  ;;  %1118 = vadd.xlane.f32.xlu0 %v1117_v20 }
0x13ca   :  { %v1540_v32 = vpack.c.bf16 %v1539_v21, %v1539_v21  ;;  %v4343_v21 = vld [vmem:[%s6773_s27] ss:$0 sm:$0xff]  ;;  %s6777_s27 = sld [smem:[#allocation51_spill]] }
0x13cc   :  { %4707 = vmatmul.mubr.msk.bf16.vlgmr.msra.gmra.mrb[36].mxu1 %vm1370_vm15, %v1540_v32 }
0x13cd   :  { %4720 = vmatprep.mubr.msk.bf16.mxu1 %vm5607_vm0, %v5606_v1  ;;  %4717 = vmatpush3.bf16.msra.mxu1 %v5127_v10 }
0x13ce   :  { %4718 = vmatprep.subr.bf16.mxu1 %v5606_v1 }
0x1455   :  { %v1119_v44 = vpop.xlane.xlu0 %1118 }
0x1456   :  { %v1120_v24 = vmul.f32 0.03125, %v1119_v44 }
0x1458   :  { %v1121_v25 = vadd.f32 1e-12, %v1120_v24 }
0x145a   :  { %5163 = vrsqrt.f32 %v1121_v25 }
0x1464   :  { %v5164_v26 = vpop.eup %5163 }
0x1465   :  { %v1123_v27 = vmul.f32 %v5164_v26, %v1115_v18  ;;  %v4344_v26 = vld [vmem:[%s6774_s26] ss:$0 sm:$0xff]  ;;  %s6776_s26 = smov 96  }
0x1467   :  { %v1130_v36 = vmul.f32 %v4322_v28, %v1123_v27 }
0x1469   :  { %v1137_v43 = vadd.f32 %v4323_v39, %v1130_v36 }
0x146b   :  { %v1730_v46 = vpack.c.bf16 %v1137_v43, %v1137_v43 }
0x149f   :  { %v1583_v30 = vpop.f32.mrb[36].mxu1 }
0x14a0   :  { %v1589_v34 = vpack.c.bf16 %v1583_v30, %v1583_v30  ;;  %v4708_v35 = vpop.f32.mrb[37].mxu1 }
0x14a1   :  { %v1586_v38 = vpop.f32.mrb[38].mxu1 }
0x14a2   :  { %v4709_v40 = vpop.f32.mrb[39].mxu1  ;;  %4713 = vmatmul.mubr.msk.bf16.vlgmr.msra.gmra.mrb[28].mxu0 %vm600_vm4, %v1589_v34 }
0x14a3   :  { %4725 = vmatpush3.bf16.msra.mxu0 %v5125_v31  ;;  %4728 = vmatprep.mubr.msk.bf16.mxu0 %vm5607_vm0, %v5606_v1 }
0x14a4   :  { %4726 = vmatprep.subr.bf16.mxu0 %v5606_v1 }
0x14a7   :  { %4727 = vmatpush3.bf16.msra.mxu0 %v5126_v42 }
0x14a8   :  { %4738 = vmatprep.subr.bf16.mxu0 %v5606_v1 }
0x14aa   :  { %4729 = vmatmul.mubr.msk.bf16.vlgmr.msra.gmra.mrb[32].mxu0 %vm502_vm3, %v1730_v46 }
0x14ab   :  { %4740 = vmatprep.mubr.msk.bf16.mxu0 %vm5607_vm0, %v5606_v1 }
0x1575   :  { %v1633_v50 = vpop.f32.mrb[28].mxu0 }
0x1576   :  { %v1639_v51 = vadd.f32 %v1633_v50, %v1476_v49  ;;  %v4714_v52 = vpop.f32.mrb[29].mxu0 }
0x1577   :  { %v1636_v53 = vpop.f32.mrb[30].mxu0 }
0x1578   :  { %v4715_v55 = vpop.f32.mrb[31].mxu0  ;;  %v1640_v56 = vadd.f32 %v1639_v51, %v6113_v47  ;;  %v5128_v47 = vld [vmem:[%s6770_s23 + $0x8] sm:$0xff]   ;;  %s6781_s23 = sld [smem:[#allocation53_spill]] }
0x1579   :  { %4719 = vmatpush3.bf16.msra.mxu1 %v5128_v47 }
0x157a   :  { %v1641_v58 = vsel %vm1200_vm8, %v1640_v56, 0.0  ;;  %4732 = vmatprep.subr.bf16.mxu1 %v5606_v1 }
0x157b   :  { %1642 = vadd.xlane.f32.xlu1 %v1641_v58 }
0x157d   :  { %v1786_v61 = vpop.f32.mrb[32].mxu0 }
0x157e   :  { %v4730_v62 = vpop.f32.mrb[33].mxu0  ;;  %v1787_v19 = vadd.f32 %v4348_v17, %v1786_v61 }
0x157f   :  { %v1789_v63 = vpop.f32.mrb[34].mxu0 }
0x1580   :  { %v4731_v2 = vpop.f32.mrb[35].mxu0  ;;  %v6203_v22 = vpack.c.bf16 %v1787_v19, %v1787_v19 }
0x1582   :  { %v1798_v25 = vsel %vm600_vm4, %v6203_v22, 0 }
0x1608   :  { %v1643_v4 = vpop.xlane.xlu1 %1642 }
0x1609   :  { %v1644_v6 = vmul.f32 0.03125, %v1643_v4 }
0x160b   :  { %v1645_v54 = vsub.f32 %v1640_v56, %v1644_v6  ;;  %v5129_v6 = vld [vmem:[%s6777_s27] sm:$0xff]  }
0x160d   :  { %v1646_v7 = vmul.f32 %v1645_v54, %v1645_v54 }
0x160f   :  { %v1647_v8 = vsel %vm1200_vm8, %v1646_v7, 0.0 }
0x1610   :  { %1648 = vadd.xlane.f32.xlu1 %v1647_v8 }
0x169d   :  { %v1649_v11 = vpop.xlane.xlu1 %1648 }
0x169e   :  { %v1650_v12 = vmul.f32 0.03125, %v1649_v11 }
0x16a0   :  { %v1651_v15 = vadd.f32 1e-12, %v1650_v12 }
0x16a2   :  { %5165 = vrsqrt.f32 %v1651_v15 }
0x16ac   :  { %v5166_v18 = vpop.eup %5165 }
0x16ad   :  { %v1653_v20 = vmul.f32 %v5166_v18, %v1645_v54 }
0x16af   :  { %v1660_v32 = vmul.f32 %v4342_v29, %v1653_v20 }
0x16b1   :  { %v6205_v44 = vadd.f32 %v4343_v21, %v1660_v32 }
0x16b3   :  { %v1668_v24 = vpack.c.bf16 %v6205_v44, %v6205_v44 }
0x16b5   :  { %4721 = vmatmul.mubr.msk.bf16.vlgmr.msra.gmra.mrb[40].mxu1 %vm502_vm3, %v1668_v24 }
0x16b6   :  { %4733 = vmatpush3.bf16.xpose.msra.mxu1 %v1798_v25  ;;  %4734 = vmatprep.mubr.msk.bf16.mxu1 %vm5607_vm0, %v5606_v1 }
0x16b7   :  { %4744 = vmatprep.subr.bf16.mxu1 %v5606_v1 }
0x1788   :  { %v1724_v27 = vpop.f32.mrb[40].mxu1 }
0x1789   :  { %v1725_v28 = vadd.f32 %v4344_v26, %v1724_v27  ;;  %v4722_v30 = vpop.f32.mrb[41].mxu1 }
0x178a   :  { %v1727_v31 = vpop.f32.mrb[42].mxu1 }
0x178b   :  { %v1792_v34 = vpack.c.bf16 %v1725_v28, %v1725_v28  ;;  %v4723_v35 = vpop.f32.mrb[43].mxu1 }
0x178d   :  { %1962 = vrot.lane.b32.xlu0 %v1792_v34, %s6775_s25  ;;  %4735 = vmatmul.mubr.msk.bf16.vlgmr.msra.gmra.mrb[44].mxu1 %vm600_vm4, %v1792_v34 }
0x178e   :  { %4746 = vmatprep.mubr.msk.bf16.mxu1 %vm5607_vm0, %v5606_v1  ;;  %4745 = vmatpush3.bf16.msra.mxu1 %v5129_v6 }
0x178f   :  { %4756 = vmatprep.subr.bf16.mxu1 %v5606_v1 }
0x17ff   :  { %v1963_v4 = vpop.permute.xlu0 %1962 }
0x1860   :  { %v1834_v36 = vpop.f32.mrb[44].mxu1 }
0x1861   :  { %v1840_v38 = vmul.f32 0.25, %v1834_v36  ;;  %v4736_v39 = vpop.f32.mrb[45].mxu1 }
0x1862   :  { %v1837_v40 = vpop.f32.mrb[46].mxu1 }
0x1863   :  { %v4737_v42 = vpop.f32.mrb[47].mxu1  ;;  %v1841_v43 = vadd.f32 %v1840_v38, %v6001_v60 }
0x1865   :  { %v1843_v46 = vsel %vm1842_vm1, %v1841_v43, -inf }
0x1866   :  { %1844 = vmax.xlane.f32.xlu1 %v1843_v46 }
0x1877   :  { %1856 = vrot.lane.b32.xlu1 %v6203_v22, %s6776_s26 }
0x18f3   :  { %v1845_v48 = vpop.xlane.xlu1 %1844 }
0x18f4   :  { %v1846_v49 = vsub.f32 %v1841_v43, %v1845_v48  ;;  %v4356_v48 = vld [vmem:[%s6779_s2] ss:$0 sm:$0xff]  ;;  %s6782_s2 = sld [smem:[#allocation54_spill]] }
0x18f6   :  { %v1847_v50 = vmul.f32 1.442695, %v1846_v49 }
0x18f7   :  { %v1857_v51 = vpop.permute.xlu1 %1856 }
0x18f8   :  { %5167 = vpow2.f32 %v1847_v50  ;;  %v1862_v52 = vsel %vm673_vm6, %v1857_v51, 0 }
0x18f9   :  { %4739 = vmatpush3.bf16.msra.mxu0 %v1862_v52 }
0x18fa   :  { %4750 = vmatprep.subr.bf16.mxu0 %v5606_v1 }
0x1902   :  { %v5168_v53 = vpop.eup %5167 }
0x1903   :  { %v1849_v55 = vsel %vm1842_vm1, %v5168_v53, 0.0 }
0x1904   :  { %1850 = vadd.xlane.f32.xlu1 %v1849_v55 }
0x1915   :  { %1964 = vrot.lane.b32.xlu1 %v6203_v22, %s6775_s25 }
0x1991   :  { %v1851_v56 = vpop.xlane.xlu1 %1850 }
0x1992   :  { %5169 = vrcp.f32 %v1851_v56 }
0x1995   :  { %v1965_v62 = vpop.permute.xlu1 %1964 }
0x1996   :  { %v1970_v2 = vsel %vm600_vm4, %v1965_v62, 0 }
0x199c   :  { %v5170_v58 = vpop.eup %5169 }
0x199d   :  { %v1853_v61 = vmul.f32 %v5170_v58, %v5168_v53 }
0x199f   :  { %v1854_v63 = vpack.c.bf16 %v1853_v61, %v1853_v61  ;;  %v4383_v61 = vld [vmem:[%s5624_s5 + $0x8] sm:$0xff]  ;;  %s6784_s5 = sld [smem:[#allocation61_spill]] }
0x19a1   :  { %4741 = vmatmul.mubr.msk.bf16.vlgmr.msra.gmra.mrb[36].mxu0 %vm655_vm5, %v1854_v63 }
0x19a2   :  { %4751 = vmatpush3.bf16.xpose.msra.mxu0 %v1970_v2  ;;  %4752 = vmatprep.mubr.msk.bf16.mxu0 %vm5607_vm0, %v5606_v1 }
0x19a3   :  { %4762 = vmatprep.subr.bf16.mxu0 %v5606_v1 }
0x19a9   :  { %4753 = vmatmul.mubr.msk.bf16.vlgmr.msra.gmra.mrb[40].mxu0 %vm600_vm4, %v1963_v4 }
0x19aa   :  { %4764 = vmatprep.mubr.msk.bf16.mxu0 %vm5607_vm0, %v5606_v1 }
0x1a74   :  { %v1898_v54 = vpop.f32.mrb[36].mxu0 }
0x1a75   :  { %v1904_v7 = vpack.c.bf16 %v1898_v54, %v1898_v54  ;;  %v4742_v8 = vpop.f32.mrb[37].mxu0 }
0x1a76   :  { %v1901_v10 = vpop.f32.mrb[38].mxu0 }
0x1a77   :  { %v4743_v47 = vpop.f32.mrb[39].mxu0  ;;  %4747 = vmatmul.mubr.msk.bf16.vlgmr.msra.gmra.mrb[48].mxu1 %vm600_vm4, %v1904_v7 }
0x1a78   :  { %4758 = vmatprep.mubr.msk.bf16.mxu1 %vm5607_vm0, %v5606_v1 }
0x1a7c   :  { %v2006_v11 = vpop.f32.mrb[40].mxu0 }
0x1a7d   :  { %v2012_v12 = vmul.f32 0.25, %v2006_v11  ;;  %v4754_v15 = vpop.f32.mrb[41].mxu0  ;;  %v4361_v11 = vld [vmem:[%s6781_s23] ss:$0 sm:$0xff] }
0x1a7e   :  { %v2009_v17 = vpop.f32.mrb[42].mxu0  ;;  %v4362_v15 = vld [vmem:[%s6782_s2] ss:$0 sm:$0xff] }
0x1a7f   :  { %v4755_v18 = vpop.f32.mrb[43].mxu0  ;;  %v2013_v29 = vadd.f32 %v2012_v12, %v6001_v60  ;;  %v5130_v60 = vld [vmem:[%s6777_s27 + $0x8] sm:$0xff]   ;;  %s6780_s27 = sld [smem:[#allocation59_spill]] }
0x1a80   :  { %4763 = vmatpush3.bf16.msra.mxu0 %v5130_v60 }
0x1a81   :  { %v2014_v19 = vsel %vm1842_vm1, %v2013_v29, -inf  ;;  %4776 = vmatprep.subr.bf16.mxu0 %v5606_v1 }
0x1a82   :  { %2015 = vmax.xlane.f32.xlu1 %v2014_v19  ;;  %v5133_v19 = vld [vmem:[%s6783_s0] sm:$0xff]  }
0x1a85   :  { %v5131_v54 = vld [vmem:[%s6780_s27] sm:$0xff]   ;;  %v5132_v7 = vld [vmem:[%s6780_s27 + $0x8] sm:$0xff]  }
0x1a93   :  { %2026 = vrot.lane.b32.xlu1 %v6203_v22, %s6778_s12 }
0x1b0f   :  { %v2016_v20 = vpop.xlane.xlu1 %2015 }
0x1b10   :  { %v2017_v21 = vsub.f32 %v2013_v29, %v2016_v20  ;;  %v5134_v20 = vld [vmem:[%s6783_s0 + $0x8] sm:$0xff]  }
0x1b12   :  { %v2018_v32 = vmul.f32 1.442695, %v2017_v21  ;;  %v5135_v21 = vld [vmem:[%s6783_s0 + $0x10] sm:$0xff]  }
0x1b13   :  { %v2027_v24 = vpop.permute.xlu1 %2026 }
0x1b14   :  { %5171 = vpow2.f32 %v2018_v32  ;;  %v2032_v25 = vsel %vm673_vm6, %v2027_v24, 0  ;;  %v5136_v32 = vld [vmem:[%s6783_s0 + $0x18] sm:$0xff]   ;;  %v4363_v24 = vld [vmem:[#allocation7] ss:$0 sm:$0xff] }
0x1b15   :  { %4757 = vmatpush3.bf16.msra.mxu1 %v2032_v25 }
0x1b16   :  { %4768 = vmatprep.subr.bf16.mxu1 %v5606_v1 }
0x1b1e   :  { %v5172_v26 = vpop.eup %5171 }
0x1b1f   :  { %v2020_v27 = vsel %vm1842_vm1, %v5172_v26, 0.0 }
0x1b20   :  { %2021 = vadd.xlane.f32.xlu0 %v2020_v27 }
0x1b4a   :  { %v1948_v28 = vpop.f32.mrb[48].mxu1 }
0x1b4b   :  { %v4748_v22 = vpop.f32.mrb[49].mxu1  ;;  %v1960_v49 = vadd.f32 %v4356_v48, %v1948_v28  ;;  %v5239_v48 = vld [vmem:[%s5699_s20] sm:$0xff]  }
0x1b4c   :  { %v1951_v30 = vpop.f32.mrb[50].mxu1 }
0x1b4d   :  { %v4749_v31 = vpop.f32.mrb[51].mxu1 }
0x1bad   :  { %v2022_v34 = vpop.xlane.xlu0 %2021 }
0x1bae   :  { %5173 = vrcp.f32 %v2022_v34 }
0x1bb8   :  { %v5174_v35 = vpop.eup %5173 }
0x1bb9   :  { %v2024_v36 = vmul.f32 %v5174_v35, %v5172_v26 }
0x1bbb   :  { %v2025_v38 = vpack.c.bf16 %v2024_v36, %v2024_v36 }
0x1bbd   :  { %4759 = vmatmul.mubr.msk.bf16.vlgmr.msra.gmra.mrb[52].mxu1 %vm655_vm5, %v2025_v38 }
0x1bbe   :  { %4772 = vmatprep.mubr.msk.bf16.mxu1 %vm5607_vm0, %v5606_v1  ;;  %4769 = vmatpush3.bf16.msra.mxu1 %v5131_v54 }
0x1bbf   :  { %4770 = vmatprep.subr.bf16.mxu1 %v5606_v1 }
0x1bc2   :  { %4771 = vmatpush3.bf16.msra.mxu1 %v5132_v7 }
0x1bc3   :  { %4788 = vmatprep.subr.bf16.mxu1 %v5606_v1 }
0x1c90   :  { %v2068_v39 = vpop.f32.mrb[52].mxu1 }
0x1c91   :  { %v2074_v40 = vpack.c.bf16 %v2068_v39, %v2068_v39  ;;  %v4760_v42 = vpop.f32.mrb[53].mxu1 }
0x1c92   :  { %v2071_v43 = vpop.f32.mrb[54].mxu1 }
0x1c93   :  { %v4761_v46 = vpop.f32.mrb[55].mxu1  ;;  %4765 = vmatmul.mubr.msk.bf16.vlgmr.msra.gmra.mrb[44].mxu0 %vm600_vm4, %v2074_v40 }
0x1c94   :  { %4784 = vmatprep.mubr.msk.bf16.mxu0 %vm5607_vm0, %v5606_v1  ;;  %4777 = vmatpush3.bf16.msra.mxu0 %v5133_v19 }
0x1c95   :  { %4778 = vmatprep.subr.bf16.mxu0 %v5606_v1 }
0x1c98   :  { %4779 = vmatpush3.bf16.msra.mxu0 %v5134_v20 }
0x1c99   :  { %4780 = vmatprep.subr.bf16.mxu0 %v5606_v1 }
0x1c9c   :  { %4781 = vmatpush3.bf16.msra.mxu0 %v5135_v21 }
0x1c9d   :  { %4782 = vmatprep.subr.bf16.mxu0 %v5606_v1 }
0x1ca0   :  { %4783 = vmatpush3.bf16.msra.mxu0 %v5136_v32 }
0x1ca1   :  { %4808 = vmatprep.subr.bf16.mxu0 %v5606_v1 }
0x1d66   :  { %v2118_v50 = vpop.f32.mrb[44].mxu0 }
0x1d67   :  { %v2124_v51 = vadd.f32 %v2118_v50, %v1960_v49  ;;  %v4766_v52 = vpop.f32.mrb[45].mxu0 }
0x1d68   :  { %v2121_v53 = vpop.f32.mrb[46].mxu0  ;;  %v5241_v52 = vld [vmem:[%s5654_s29] sm:$0xff]  ;;  %s6785_s29 = smov 64  }
0x1d69   :  { %v4767_v55 = vpop.f32.mrb[47].mxu0  ;;  %v2125_v56 = vadd.f32 %v2124_v51, %v6205_v44 }
0x1d6b   :  { %v2126_v58 = vsel %vm1200_vm8, %v2125_v56, 0.0 }
0x1d6c   :  { %2127 = vadd.xlane.f32.xlu0 %v2126_v58 }
0x1d82   :  { %2524 = vperm.xlu0 %5109, %v4383_v61   ;;  %v5242_v61 = vld [vmem:[%s5659_s3] ss:$0 sm:$0xff]  ;;  %s6786_s3 = smov 48  }
0x1df9   :  { %v2128_v62 = vpop.xlane.xlu0 %2127 }
0x1dfa   :  { %v2129_v63 = vmul.f32 0.03125, %v2128_v62 }
0x1dfc   :  { %v2130_v2 = vsub.f32 %v2125_v56, %v2129_v63 }
0x1dfe   :  { %v2131_v4 = vmul.f32 %v2130_v2, %v2130_v2 }
0x1e00   :  { %v2132_v6 = vsel %vm1200_vm8, %v2131_v4, 0.0 }
0x1e01   :  { %2133 = vadd.xlane.f32.xlu1 %v2132_v6  ;;  %v2525_v43 = vpop.permute.xlu0 %2524 }
0x1e02   :  { %vm2526_vm7 = vcmp.eq.s32.totalorder %v5959_v16, %v2525_v43 }
0x1e03   :  { %v4384_v46 = vsel %vm2526_vm7, 1.0, %v5606_v1 }
0x1e8e   :  { %v2134_v44 = vpop.xlane.xlu1 %2133 }
0x1e8f   :  { %v2135_v8 = vmul.f32 0.03125, %v2134_v44 }
0x1e91   :  { %v2136_v10 = vadd.f32 1e-12, %v2135_v8 }
0x1e93   :  { %5175 = vrsqrt.f32 %v2136_v10 }
0x1e9d   :  { %v5176_v47 = vpop.eup %5175 }
0x1e9e   :  { %v2138_v12 = vmul.f32 %v5176_v47, %v2130_v2  ;;  %v4367_v2 = vld [vmem:[#allocation8] ss:$0 sm:$0xff] }
0x1ea0   :  { %v2145_v17 = vmul.f32 %v4361_v11, %v2138_v12 }
0x1ea2   :  { %v6268_v18 = vadd.f32 %v4362_v15, %v2145_v17 }
0x1ea4   :  { %v2153_v29 = vpack.c.bf16 %v6268_v18, %v6268_v18 }
0x1ea6   :  { %4773 = vmatmul.mubr.msk.bf16.vlgmr.msra.gmra.mrb[56].mxu1 %vm502_vm3, %v2153_v29 }
0x1ea7   :  { %4792 = vmatprep.mubr.msk.bf16.mxu1 %vm5607_vm0, %v5606_v1 }
0x1f79   :  { %v2209_v25 = vpop.f32.mrb[56].mxu1 }
0x1f7a   :  { %v2210_v26 = vadd.f32 %v4363_v24, %v2209_v25  ;;  %v4774_v27 = vpop.f32.mrb[57].mxu1  ;;  %v5243_v24 = vld [vmem:[%s5664_s8] ss:$0 sm:$0xff]  ;;  %s6787_s8 = sld [smem:[#allocation58_spill]] }
0x1f7b   :  { %v2212_v60 = vpop.f32.mrb[58].mxu1 }
0x1f7c   :  { %v2216_v28 = vmul.f32 0.044715, %v2210_v26  ;;  %v4775_v22 = vpop.f32.mrb[59].mxu1  ;;  %v2215_v38 = vmul.f32 0.5, %v2210_v26 }
0x1f7d   :  { %v5138_v22 = vld [vmem:[%s6784_s5 + $0x8] sm:$0xff]  }
0x1f7e   :  { %v2217_v30 = vmul.f32 %v2216_v28, %v2210_v26  ;;  %v5137_v28 = vld [vmem:[%s6784_s5] sm:$0xff]  }
0x1f7f   :  { %4789 = vmatpush3.bf16.msra.mxu1 %v5137_v28 }
0x1f80   :  { %v2218_v31 = vmul.f32 %v2217_v30, %v2210_v26  ;;  %4790 = vmatprep.subr.bf16.mxu1 %v5606_v1 }
0x1f82   :  { %v2219_v34 = vadd.f32 %v2218_v31, %v2210_v26  ;;  %v5244_v26 = vld [vmem:[%s5669_s14] ss:$0 sm:$0xff]  ;;  %s6788_s14 = sld [smem:[#allocation47_spill]] }
0x1f83   :  { %4791 = vmatpush3.bf16.msra.mxu1 %v5138_v22 }
0x1f84   :  { %v2220_v35 = vmul.f32 0.7978846, %v2219_v34  ;;  %4796 = vmatprep.subr.bf16.mxu1 %v5606_v1 }
0x1f86   :  { %5177 = vtanh.f32 %v2220_v35 }
0x1f90   :  { %v5178_v36 = vpop.eup %5177 }
0x1f91   :  { %v2222_v39 = vadd.f32 1.0, %v5178_v36  ;;  %v4373_v36 = vld [vmem:[#allocation10] ss:$0 sm:$0xff] }
0x1f93   :  { %v2223_v40 = vmul.f32 %v2222_v39, %v2215_v38  ;;  %v4374_v39 = vld [vmem:[#allocation11] ss:$0 sm:$0xff] }
0x1f95   :  { %v2224_v42 = vpack.c.bf16 %v2223_v40, %v2223_v40 }
0x1f97   :  { %4785 = vmatmul.mubr.msk.bf16.vlgmr.msra.gmra.mrb[48].mxu0 %vm451_vm2, %v2224_v42 }
0x1f98   :  { %4809 = vmatpush3.bf16.msra.mxu0 %v5933_v5  ;;  %4816 = vmatprep.mubr.msk.bf16.mxu0 %vm5607_vm0, %v5606_v1  ;;  %v2529_v5 = vpack.c.bf16 %v4384_v46, %v4384_v46 }
0x1f99   :  { %4810 = vmatprep.subr.bf16.mxu0 %v5606_v1 }
0x1f9c   :  { %4811 = vmatpush3.bf16.msra.mxu0 %v5939_v9  ;;  %v5240_v9 = vld [vmem:[%s5699_s20 + $0x8] sm:$0xff]   ;;  %s6789_s20 = sld [smem:[#allocation49_spill]] }
0x1f9d   :  { %4812 = vmatprep.subr.bf16.mxu0 %v5606_v1 }
0x1fa0   :  { %4813 = vmatpush3.bf16.msra.mxu0 %v5950_v13 }
0x1fa1   :  { %4814 = vmatprep.subr.bf16.mxu0 %v5606_v1 }
0x1fa4   :  { %4815 = vmatpush3.bf16.msra.mxu0 %v5954_v14 }
0x1fa5   :  { %4820 = vmatprep.subr.bf16.mxu0 %v5606_v1 }
0x1fa7   :  { %4817 = vmatmul.mubr.msk.bf16.vlgmr.msra.gmra.mrb[52].mxu0 %vm451_vm2, %v2529_v5  ;;  %v5245_v5 = vld [vmem:[%s6748_s17] ss:$0 sm:$0xff]  ;;  %s6790_s17 = sld [smem:[#allocation44_spill]] }
0x1fa8   :  { %4821 = vmatpush3.bf16.msra.mxu0 %v5239_v48  ;;  %4824 = vmatprep.mubr.msk.bf16.mxu0 %vm5607_vm0, %v5606_v1 }
0x1fa9   :  { %4822 = vmatprep.subr.bf16.mxu0 %v5606_v1 }
0x1fac   :  { %4823 = vmatpush3.bf16.msra.mxu0 %v5240_v9 }
0x1fad   :  { %4828 = vmatprep.subr.bf16.mxu0 %v5606_v1 }
0x206a   :  { %v2292_v13 = vpop.f32.mrb[48].mxu0 }
0x206b   :  { %v4786_v14 = vpop.f32.mrb[49].mxu0  ;;  %v2293_v54 = vadd.f32 %v4367_v2, %v2292_v13 }
0x206c   :  { %v2295_v49 = vpop.f32.mrb[50].mxu0 }
0x206d   :  { %v4787_v50 = vpop.f32.mrb[51].mxu0  ;;  %v2298_v10 = vadd.f32 %v2293_v54, %v6268_v18 }
0x206f   :  { %v2299_v47 = vsel %vm1200_vm8, %v2298_v10, 0.0 }
0x207a   :  { %v2567_v51 = vpop.f32.mrb[52].mxu0 }
0x207b   :  { %v2568_v53 = vadd.f32 %v5241_v52, %v2567_v51  ;;  %v4818_v55 = vpop.f32.mrb[53].mxu0  ;;  %v5246_v52 = vld [vmem:[%s6750_s28] sm:$0xff]  }
0x207c   :  { %v2570_v56 = vpop.f32.mrb[54].mxu0 }
0x207d   :  { %v4819_v58 = vpop.f32.mrb[55].mxu0  ;;  %v2573_v62 = vadd.f32 %v5242_v61, %v2568_v53  ;;  %v4375_v53 = vld [vmem:[#allocation13] ss:$0 sm:$0xff] }
0x207f   :  { %v2574_v63 = vsel %vm502_vm3, %v2573_v62, 0.0 }
0x2080   :  { %2575 = vadd.xlane.f32.xlu0 %v2574_v63 }
0x210d   :  { %v2576_v4 = vpop.xlane.xlu0 %2575 }
0x210e   :  { %v2577_v6 = vmul.f32 0.03125, %v2576_v4 }
0x2110   :  { %v2578_v7 = vsub.f32 %v2573_v62, %v2577_v6 }
0x2112   :  { %v2579_v44 = vmul.f32 %v2578_v7, %v2578_v7 }
0x2114   :  { %v2580_v8 = vsel %vm502_vm3, %v2579_v44, 0.0 }
0x2115   :  { %2581 = vadd.xlane.f32.xlu1 %v2580_v8 }
0x2119   :  { %2300 = vadd.xlane.f32.xlu1 %v2299_v47 }
0x21a2   :  { %v2582_v11 = vpop.xlane.xlu1 %2581 }
0x21a3   :  { %v2583_v12 = vmul.f32 0.03125, %v2582_v11  ;;  %v6342_v11 = vsel %vm502_vm3, %v6057_v33, 0 }
0x21a5   :  { %v2584_v15 = vadd.f32 1e-12, %v2583_v12  ;;  %v4386_v12 = vld [vmem:[%s6749_s21 + $0x1] sm:$0x1]  ;;  %s6791_s21 = sld [smem:[#allocation45_spill]] }
0x21a6   :  { %v2301_v17 = vpop.xlane.xlu1 %2300 }
0x21a7   :  { %5179 = vrsqrt.f32 %v2584_v15  ;;  %v2302_v29 = vmul.f32 0.03125, %v2301_v17  ;;  %v2591_v15 = vsub.f32 1.0, %v4386_v12 }
0x21a9   :  { %v2303_v19 = vsub.f32 %v2298_v10, %v2302_v29  ;;  %v2592_v29 = vmul.f32 -1e+09, %v2591_v15 }
0x21ab   :  { %v2304_v20 = vmul.f32 %v2303_v19, %v2303_v19 }
0x21ad   :  { %v2305_v21 = vsel %vm1200_vm8, %v2304_v20, 0.0  ;;  %v6348_v20 = vrot.slane %v2592_v29, %v5998_v59 }
0x21ae   :  { %2306 = vadd.xlane.f32.xlu1 %v2305_v21 }
0x21b1   :  { %v5180_v18 = vpop.eup %5179 }
0x21b2   :  { %v2586_v32 = vmul.f32 %v5180_v18, %v2578_v7 }
0x21b4   :  { %v2587_v25 = vmul.f32 %v5243_v24, %v2586_v32 }
0x21b6   :  { %v6312_v27 = vadd.f32 %v5244_v26, %v2587_v25 }
0x21b8   :  { %v2593_v60 = vpack.c.bf16 %v6312_v27, %v6312_v27 }
0x21ba   :  { %4825 = vmatmul.mubr.msk.bf16.vlgmr.msra.gmra.mrb[56].mxu0 %vm502_vm3, %v2593_v60 }
0x21bb   :  { %4830 = vmatprep.mubr.msk.bf16.mxu0 %vm5607_vm0, %v5606_v1 }
0x223b   :  { %v2307_v30 = vpop.xlane.xlu1 %2306 }
0x223c   :  { %v2308_v31 = vmul.f32 0.03125, %v2307_v30 }
0x223e   :  { %v2309_v34 = vadd.f32 1e-12, %v2308_v31  ;;  %v6355_v31 = vsel %vm502_vm3, %v6065_v37, 0 }
0x2240   :  { %5181 = vrsqrt.f32 %v2309_v34  ;;  %v6361_v34 = vsel %vm502_vm3, %v6073_v41, 0 }
0x224a   :  { %v5182_v35 = vpop.eup %5181 }
0x224b   :  { %v2311_v38 = vmul.f32 %v5182_v35, %v2303_v19  ;;  %v6371_v35 = vsel %vm502_vm3, %v6080_v45, 0 }
0x224d   :  { %v2318_v40 = vmul.f32 %v4373_v36, %v2311_v38 }
0x224f   :  { %v2325_v42 = vadd.f32 %v4374_v39, %v2318_v40 }
0x2251   :  { %v2326_v43 = vpack.c.bf16 %v2325_v42, %v2325_v42 }
0x2253   :  { %4793 = vmatmul.mubr.msk.bf16.vlgmr.msra.gmra.mrb[60].mxu1 %vm502_vm3, %v2326_v43 }
0x2254   :  { %4804 = vmatprep.mubr.msk.bf16.mxu1 %vm5607_vm0, %v5606_v1  ;;  %4797 = vmatpush3.bf16.xpose.msra.mxu1 %v6342_v11 }
0x2255   :  { %4798 = vmatprep.subr.bf16.mxu1 %v5606_v1 }
0x225c   :  { %4799 = vmatpush3.bf16.xpose.msra.mxu1 %v6355_v31 }
0x225d   :  { %4800 = vmatprep.subr.bf16.mxu1 %v5606_v1 }
0x2264   :  { %4801 = vmatpush3.bf16.xpose.msra.mxu1 %v6361_v34 }
0x2265   :  { %4802 = vmatprep.subr.bf16.mxu1 %v5606_v1 }
0x226c   :  { %4803 = vmatpush3.bf16.xpose.msra.mxu1 %v6371_v35 }
0x226d   :  { %4834 = vmatprep.subr.bf16.mxu1 %v5606_v1 }
0x228d   :  { %v2631_v46 = vpop.f32.mrb[56].mxu0 }
0x228e   :  { %v2632_v48 = vadd.f32 %v5245_v5, %v2631_v46  ;;  %v4826_v9 = vpop.f32.mrb[57].mxu0 }
0x228f   :  { %v2634_v13 = vpop.f32.mrb[58].mxu0  ;;  %v4379_v9 = vld [vmem:[#allocation14] ss:$0 sm:$0xff] }
0x2290   :  { %v6327_v14 = vpack.c.bf16 %v2632_v48, %v2632_v48  ;;  %v4827_v49 = vpop.f32.mrb[59].mxu0 }
0x2291   :  { %v4380_v49 = vld [vmem:[#allocation16] ss:$0 sm:$0xff] }
0x2292   :  { %2639 = vrot.lane.b32.xlu1 %v6327_v14, %s6776_s26 }
0x2304   :  { %v2640_v50 = vpop.permute.xlu1 %2639 }
0x2305   :  { %v2645_v51 = vsel %vm600_vm4, %v2640_v50, 0 }
0x2306   :  { %4829 = vmatpush3.bf16.xpose.msra.mxu0 %v2645_v51 }
0x2307   :  { %4840 = vmatprep.subr.bf16.mxu0 %v5606_v1 }
0x230d   :  { %4831 = vmatmul.mubr.msk.bf16.vlgmr.msra.gmra.mrb[60].mxu0 %vm600_vm4, %v6327_v14 }
0x230e   :  { %4841 = vmatpush3.bf16.msra.mxu0 %v5246_v52  ;;  %4842 = vmatprep.mubr.msk.bf16.mxu0 %vm5607_vm0, %v5606_v1 }
0x230f   :  { %4852 = vmatprep.subr.bf16.mxu0 %v5606_v1 }
0x2326   :  { %v2382_v55 = vpop.f32.mrb[60].mxu1 }
0x2327   :  { %v2383_v56 = vadd.f32 %v4375_v53, %v2382_v55  ;;  %v4794_v58 = vpop.f32.mrb[61].mxu1 }
0x2328   :  { %v2385_v61 = vpop.f32.mrb[62].mxu1 }
0x2329   :  { %v2389_v62 = vmul.f32 0.044715, %v2383_v56  ;;  %v4795_v63 = vpop.f32.mrb[63].mxu1  ;;  %v2388_v44 = vmul.f32 0.5, %v2383_v56 }
0x232b   :  { %v2390_v2 = vmul.f32 %v2389_v62, %v2383_v56 }
0x232d   :  { %v2391_v4 = vmul.f32 %v2390_v2, %v2383_v56 }
0x232f   :  { %v2392_v6 = vadd.f32 %v2391_v4, %v2383_v56 }
0x2331   :  { %v2393_v54 = vmul.f32 0.7978846, %v2392_v6  ;;  %v5247_v6 = vld [vmem:[%s6750_s28 + $0x8] sm:$0xff]   ;;  %s6792_s28 = sld [smem:[#allocation46_spill]] }
0x2333   :  { %5183 = vtanh.f32 %v2393_v54 }
0x233d   :  { %v5184_v7 = vpop.eup %5183 }
0x233e   :  { %v2395_v8 = vadd.f32 1.0, %v5184_v7 }
0x2340   :  { %v2396_v10 = vmul.f32 %v2395_v8, %v2388_v44 }
0x2342   :  { %v2397_v47 = vsel %vm1200_vm8, %v2396_v10, 0.0 }
0x2343   :  { %2398 = vadd.xlane.f32.xlu0 %v2397_v47 }
0x23d0   :  { %v2399_v17 = vpop.xlane.xlu0 %2398 }
0x23d1   :  { %v2400_v19 = vmul.f32 0.03125, %v2399_v17 }
0x23d3   :  { %v2401_v18 = vsub.f32 %v2396_v10, %v2400_v19 }
0x23d5   :  { %v2402_v22 = vmul.f32 %v2401_v18, %v2401_v18 }
0x23d7   :  { %v2403_v30 = vsel %vm1200_vm8, %v2402_v22, 0.0 }
0x23e0   :  { %v2681_v21 = vpop.f32.mrb[60].mxu0 }
0x23e1   :  { %v2687_v32 = vmul.f32 0.25, %v2681_v21  ;;  %v4832_v24 = vpop.f32.mrb[61].mxu0 }
0x23e2   :  { %v2684_v25 = vpop.f32.mrb[62].mxu0 }
0x23e3   :  { %v4833_v26 = vpop.f32.mrb[63].mxu0  ;;  %v2694_v60 = vadd.f32 %v6348_v20, %v2687_v32 }
0x23e5   :  { %v2695_v28 = vsel %vm655_vm5, %v2694_v60, -inf }
0x23e6   :  { %2696 = vmax.xlane.f32.xlu0 %v2695_v28 }
0x23ea   :  { %2404 = vadd.xlane.f32.xlu0 %v2403_v30 }
0x2400   :  { %2707 = vrot.lane.b32.xlu0 %v6327_v14, %s6785_s29 }
0x2404   :  { %2802 = vrot.lane.b32.xlu0 %v6327_v14, %s6778_s12 }
0x2408   :  { %2800 = vrot.lane.b32.xlu0 %v6327_v14, %s6775_s25 }
0x2473   :  { %v2697_v36 = vpop.xlane.xlu0 %2696 }
0x2474   :  { %v2698_v38 = vsub.f32 %v2694_v60, %v2697_v36 }
0x2476   :  { %v2699_v39 = vmul.f32 1.442695, %v2698_v38 }
0x2477   :  { %v2405_v40 = vpop.xlane.xlu0 %2404 }
0x2478   :  { %5185 = vpow2.f32 %v2699_v39  ;;  %v2406_v42 = vmul.f32 0.03125, %v2405_v40 }
0x247a   :  { %v2407_v43 = vadd.f32 1e-12, %v2406_v42 }
0x247b   :  { %v2708_v52 = vpop.permute.xlu0 %2707 }
0x247c   :  { %5187 = vrsqrt.f32 %v2407_v43  ;;  %v2713_v55 = vsel %vm673_vm6, %v2708_v52, 0 }
0x247f   :  { %v2803_v62 = vpop.permute.xlu0 %2802 }
0x2480   :  { %v2808_v2 = vsel %vm600_vm4, %v2803_v62, 0  ;;  %v5254_v62 = vld [vmem:[%s6752_s24] ss:$0 sm:$0xff]  ;;  %s6794_s24 = sld [smem:[#allocation48_spill]] }
0x2482   :  { %v5186_v46 = vpop.eup %5185 }
0x2483   :  { %v2701_v5 = vsel %vm655_vm5, %v5186_v46, 0.0  ;;  %v2801_v4 = vpop.permute.xlu0 %2800 }
0x2484   :  { %2702 = vadd.xlane.f32.xlu1 %v2701_v5 }
0x2486   :  { %v5188_v48 = vpop.eup %5187 }
0x2487   :  { %v2409_v13 = vmul.f32 %v5188_v48, %v2401_v18 }
0x2489   :  { %v2416_v50 = vmul.f32 %v4379_v9, %v2409_v13  ;;  %v5249_v13 = vld [vmem:[%s6753_s7 + $0x8] sm:$0xff]  }
0x248b   :  { %v2423_v51 = vadd.f32 %v4380_v49, %v2416_v50 }
0x248d   :  { %v2424_v53 = vpack.c.bf16 %v2423_v51, %v2423_v51 }
0x248f   :  { %4805 = vmatmul.mubr.msk.bf16.vlgmr.msra.gmra.mrb[64].mxu1 %vm502_vm3, %v2424_v53 }
0x2490   :  { %4835 = vmatpush3.bf16.msra.mxu1 %v2713_v55  ;;  %4836 = vmatprep.mubr.msk.bf16.mxu1 %vm5607_vm0, %v5606_v1  ;;  %v5250_v55 = vld [vmem:[%s6757_s13] sm:$0xff]  }
0x2491   :  { %4846 = vmatprep.subr.bf16.mxu1 %v5606_v1 }
0x2511   :  { %v2703_v56 = vpop.xlane.xlu1 %2702 }
0x2512   :  { %5189 = vrcp.f32 %v2703_v56  ;;  %v5251_v56 = vld [vmem:[%s6757_s13 + $0x8] sm:$0xff]  }
0x251c   :  { %v5190_v58 = vpop.eup %5189 }
0x251d   :  { %v2705_v61 = vmul.f32 %v5190_v58, %v5186_v46  ;;  %v5252_v58 = vld [vmem:[%s6757_s13 + $0x10] sm:$0xff]  }
0x251f   :  { %v2706_v63 = vpack.c.bf16 %v2705_v61, %v2705_v61  ;;  %v5253_v61 = vld [vmem:[%s6757_s13 + $0x18] sm:$0xff]  }
0x2521   :  { %4837 = vmatmul.mubr.msk.bf16.vlgmr.msra.gmra.mrb[68].mxu1 %vm655_vm5, %v2706_v63 }
0x2522   :  { %4847 = vmatpush3.bf16.xpose.msra.mxu1 %v2808_v2  ;;  %4848 = vmatprep.mubr.msk.bf16.mxu1 %vm5607_vm0, %v5606_v1 }
0x2523   :  { %4858 = vmatprep.subr.bf16.mxu1 %v5606_v1 }
0x2529   :  { %4849 = vmatmul.mubr.msk.bf16.vlgmr.msra.gmra.mrb[72].mxu1 %vm600_vm4, %v2801_v4 }
0x252a   :  { %4859 = vmatpush3.bf16.msra.mxu1 %v5247_v6  ;;  %4860 = vmatprep.mubr.msk.bf16.mxu1 %vm5607_vm0, %v5606_v1 }
0x252b   :  { %4872 = vmatprep.subr.bf16.mxu1 %v5606_v1 }
0x2562   :  { %v6393_v54 = vpop.f32.mrb[64].mxu1 }
0x2563   :  { %v4806_v7 = vpop.f32.mrb[65].mxu1 }
0x2564   :  { %v2483_v44 = vpop.f32.mrb[66].mxu1 }
0x2565   :  { %v4807_v8 = vpop.f32.mrb[67].mxu1 }
0x25f4   :  { %v2749_v10 = vpop.f32.mrb[68].mxu1 }
0x25f5   :  { %v2755_v47 = vpack.c.bf16 %v2749_v10, %v2749_v10  ;;  %v4838_v12 = vpop.f32.mrb[69].mxu1 }
0x25f6   :  { %v2752_v15 = vpop.f32.mrb[70].mxu1 }
0x25f7   :  { %v4839_v17 = vpop.f32.mrb[71].mxu1  ;;  %4843 = vmatmul.mubr.msk.bf16.vlgmr.msra.gmra.mrb[64].mxu0 %vm600_vm4, %v2755_v47 }
0x25f8   :  { %4854 = vmatprep.mubr.msk.bf16.mxu0 %vm5607_vm0, %v5606_v1 }
0x25fc   :  { %v2844_v29 = vpop.f32.mrb[72].mxu1 }
0x25fd   :  { %v2850_v19 = vmul.f32 0.25, %v2844_v29  ;;  %v4850_v21 = vpop.f32.mrb[73].mxu1 }
0x25fe   :  { %v2847_v18 = vpop.f32.mrb[74].mxu1 }
0x25ff   :  { %v4851_v32 = vpop.f32.mrb[75].mxu1  ;;  %v2851_v24 = vadd.f32 %v2850_v19, %v6348_v20  ;;  %v4396_v19 = vld [vmem:[%s6751_s1 + $0x8] sm:$0x7f]  ;;  %s6793_s1 = sld [smem:[#allocation50_spill]] }
0x2601   :  { %v2852_v25 = vsel %vm655_vm5, %v2851_v24, -inf }
0x2602   :  { %2853 = vmax.xlane.f32.xlu0 %v2852_v25  ;;  %v5255_v25 = vld [vmem:[%s6754_s30] ss:$0 sm:$0xff] }
0x268f   :  { %v2854_v26 = vpop.xlane.xlu0 %2853 }
0x2690   :  { %v2855_v60 = vsub.f32 %v2851_v24, %v2854_v26 }
0x2692   :  { %v2856_v28 = vmul.f32 1.442695, %v2855_v60  ;;  %v5256_v60 = vld [vmem:[%s6755_s10] ss:$0 sm:$0xff] }
0x2694   :  { %5191 = vpow2.f32 %v2856_v28 }
0x269e   :  { %v5192_v22 = vpop.eup %5191 }
0x269f   :  { %v2858_v30 = vsel %vm655_vm5, %v5192_v22, 0.0 }
0x26a0   :  { %2859 = vadd.xlane.f32.xlu1 %v2858_v30 }
0x26b1   :  { %2864 = vrot.lane.b32.xlu1 %v6327_v14, %s6786_s3  ;;  %v5248_v14 = vld [vmem:[%s6753_s7] sm:$0xff]   ;;  %s6795_s7 = sld [smem:[#allocation51_spill]] }
0x26ca   :  { %v2793_v36 = vpop.f32.mrb[64].mxu0 }
0x26cb   :  { %v4844_v38 = vpop.f32.mrb[65].mxu0  ;;  %v2799_v63 = vadd.f32 %v5254_v62, %v2793_v36 }
0x26cc   :  { %v2796_v39 = vpop.f32.mrb[66].mxu0  ;;  %v5257_v38 = vld [vmem:[%s6758_s6] ss:$0 sm:$0xff] }
0x26cd   :  { %v4845_v40 = vpop.f32.mrb[67].mxu0 }
0x272d   :  { %v2860_v42 = vpop.xlane.xlu1 %2859 }
0x272e   :  { %5193 = vrcp.f32 %v2860_v42 }
0x2731   :  { %v2865_v43 = vpop.permute.xlu1 %2864 }
0x2732   :  { %v2870_v46 = vsel %vm673_vm6, %v2865_v43, 0 }
0x2733   :  { %4853 = vmatpush3.bf16.msra.mxu0 %v2870_v46 }
0x2734   :  { %4864 = vmatprep.subr.bf16.mxu0 %v5606_v1 }
0x2738   :  { %v5194_v5 = vpop.eup %5193 }
0x2739   :  { %v2862_v48 = vmul.f32 %v5194_v5, %v5192_v22 }
0x273b   :  { %v2863_v9 = vpack.c.bf16 %v2862_v48, %v2862_v48 }
0x273d   :  { %4855 = vmatmul.mubr.msk.bf16.vlgmr.msra.gmra.mrb[68].mxu0 %vm655_vm5, %v2863_v9 }
0x273e   :  { %4865 = vmatpush3.bf16.msra.mxu0 %v5248_v14  ;;  %4868 = vmatprep.mubr.msk.bf16.mxu0 %vm5607_vm0, %v5606_v1  ;;  %v5258_v14 = vld [vmem:[%s6759_s11] sm:$0x7f] }
0x273f   :  { %4866 = vmatprep.subr.bf16.mxu0 %v5606_v1 }
0x2742   :  { %4867 = vmatpush3.bf16.msra.mxu0 %v5249_v13 }
0x2743   :  { %4884 = vmatprep.subr.bf16.mxu0 %v5606_v1 }
0x2810   :  { %v2906_v49 = vpop.f32.mrb[68].mxu0 }
0x2811   :  { %v2912_v50 = vpack.c.bf16 %v2906_v49, %v2906_v49  ;;  %v4856_v51 = vpop.f32.mrb[69].mxu0 }
0x2812   :  { %v2909_v52 = vpop.f32.mrb[70].mxu0 }
0x2813   :  { %v4857_v53 = vpop.f32.mrb[71].mxu0  ;;  %4861 = vmatmul.mubr.msk.bf16.vlgmr.msra.gmra.mrb[76].mxu1 %vm600_vm4, %v2912_v50  ;;  %v5259_v52 = vld [vmem:[%s6760_s15] ss:$0 sm:$0xff] }
0x2814   :  { %4873 = vmatpush3.bf16.msra.mxu1 %v5250_v55  ;;  %4880 = vmatprep.mubr.msk.bf16.mxu1 %vm5607_vm0, %v5606_v1 }
0x2815   :  { %4874 = vmatprep.subr.bf16.mxu1 %v5606_v1 }
0x2818   :  { %4875 = vmatpush3.bf16.msra.mxu1 %v5251_v56 }
0x2819   :  { %4876 = vmatprep.subr.bf16.mxu1 %v5606_v1 }
0x281c   :  { %4877 = vmatpush3.bf16.msra.mxu1 %v5252_v58 }
0x281d   :  { %4878 = vmatprep.subr.bf16.mxu1 %v5606_v1 }
0x2820   :  { %4879 = vmatpush3.bf16.msra.mxu1 %v5253_v61 }
0x2821   :  { %4896 = vmatprep.subr.bf16.mxu1 %v5606_v1 }
0x28e6   :  { %v2950_v2 = vpop.f32.mrb[76].mxu1 }
0x28e7   :  { %v2956_v4 = vadd.f32 %v2950_v2, %v2799_v63  ;;  %v4862_v6 = vpop.f32.mrb[77].mxu1  ;;  %v5260_v2 = vld [vmem:[%s6761_s16] sm:$0xff]  }
0x28e8   :  { %v2953_v7 = vpop.f32.mrb[78].mxu1 }
0x28e9   :  { %v4863_v44 = vpop.f32.mrb[79].mxu1  ;;  %v2957_v8 = vadd.f32 %v2956_v4, %v6312_v27  ;;  %v5261_v4 = vld [vmem:[%s6761_s16 + $0x8] sm:$0xff]  }
0x28eb   :  { %v2958_v10 = vsel %vm502_vm3, %v2957_v8, 0.0 }
0x28ec   :  { %2959 = vadd.xlane.f32.xlu1 %v2958_v10 }
0x2979   :  { %v2960_v47 = vpop.xlane.xlu1 %2959 }
0x297a   :  { %v2961_v12 = vmul.f32 0.03125, %v2960_v47 }
0x297c   :  { %v2962_v15 = vsub.f32 %v2957_v8, %v2961_v12 }
0x297e   :  { %v2963_v17 = vmul.f32 %v2962_v15, %v2962_v15 }
0x2980   :  { %v2964_v29 = vsel %vm502_vm3, %v2963_v17, 0.0 }
0x2981   :  { %2965 = vadd.xlane.f32.xlu0 %v2964_v29 }
0x2997   :  { %3089 = vperm.xlu0 %5109, %v4396_v19  }
0x2a0e   :  { %v2966_v21 = vpop.xlane.xlu0 %2965 }
0x2a0f   :  { %v2967_v18 = vmul.f32 0.03125, %v2966_v21 }
0x2a11   :  { %v2968_v32 = vadd.f32 1e-12, %v2967_v18 }
0x2a13   :  { %5195 = vrsqrt.f32 %v2968_v32 }
0x2a16   :  { %v3090_v30 = vpop.permute.xlu0 %3089 }
0x2a17   :  { %vm3091_vm9 = vcmp.eq.s32.totalorder %v5959_v16, %v3090_v30  ;;  %v5264_v30 = vld [vmem:[%s6764_s9] ss:$0 sm:$0xff] }
0x2a18   :  { %v4397_v36 = vsel %vm3091_vm9, 1.0, %v5606_v1 }
0x2a1d   :  { %v5196_v24 = vpop.eup %5195 }
0x2a1e   :  { %v2970_v27 = vmul.f32 %v5196_v24, %v2962_v15  ;;  %v5262_v24 = vld [vmem:[%s6762_s18] ss:$0 sm:$0xff] }
0x2a20   :  { %v2971_v26 = vmul.f32 %v5255_v25, %v2970_v27  ;;  %v5263_v25 = vld [vmem:[%s6763_s22] ss:$0 sm:$0xff] }
0x2a22   :  { %v6430_v28 = vadd.f32 %v5256_v60, %v2971_v26 }
0x2a24   :  { %v2973_v22 = vpack.c.bf16 %v6430_v28, %v6430_v28 }
0x2a26   :  { %4869 = vmatmul.mubr.msk.bf16.vlgmr.msra.gmra.mrb[72].mxu0 %vm502_vm3, %v2973_v22 }
0x2a27   :  { %4885 = vmatpush3.bf16.msra.mxu0 %v6057_v33  ;;  %4892 = vmatprep.mubr.msk.bf16.mxu0 %vm5607_vm0, %v5606_v1  ;;  %v3094_v33 = vpack.c.bf16 %v4397_v36, %v4397_v36 }
0x2a28   :  { %4886 = vmatprep.subr.bf16.mxu0 %v5606_v1 }
0x2a2b   :  { %4887 = vmatpush3.bf16.msra.mxu0 %v6065_v37 }
0x2a2c   :  { %4888 = vmatprep.subr.bf16.mxu0 %v5606_v1 }
0x2a2f   :  { %4889 = vmatpush3.bf16.msra.mxu0 %v6073_v41 }
0x2a30   :  { %4890 = vmatprep.subr.bf16.mxu0 %v5606_v1 }
0x2a33   :  { %4891 = vmatpush3.bf16.msra.mxu0 %v6080_v45 }
0x2a34   :  { %4904 = vmatprep.subr.bf16.mxu0 %v5606_v1 }
0x2a36   :  { %4893 = vmatmul.mubr.msk.bf16.vlgmr.msra.gmra.mrb[76].mxu0 %vm451_vm2, %v3094_v33 }
0x2a37   :  { %4906 = vmatprep.mubr.msk.bf16.mxu0 %vm5607_vm0, %v5606_v1 }
0x2af9   :  { %v3011_v37 = vpop.f32.mrb[72].mxu0 }
0x2afa   :  { %v3012_v39 = vadd.f32 %v5257_v38, %v3011_v37  ;;  %v4870_v41 = vpop.f32.mrb[73].mxu0 }
0x2afb   :  { %v3014_v40 = vpop.f32.mrb[74].mxu0 }
0x2afc   :  { %v3018_v42 = vmul.f32 0.044715, %v3012_v39  ;;  %v4871_v43 = vpop.f32.mrb[75].mxu0  ;;  %v3017_v58 = vmul.f32 0.5, %v3012_v39 }
0x2afe   :  { %v3019_v46 = vmul.f32 %v3018_v42, %v3012_v39 }
0x2b00   :  { %v3020_v5 = vmul.f32 %v3019_v46, %v3012_v39  ;;  %v5265_v46 = vld [vmem:[%s6766_s19] sm:$0xff]  }
0x2b02   :  { %v3021_v45 = vadd.f32 %v3020_v5, %v3012_v39  ;;  %v4399_v5 = vld [vmem:[%s6765_s4 + $0x1] sm:$0x1] }
0x2b03   :  { %vm3156_vm11 = vcmp.gt.f32.partialorder %v4399_v5, 0.5 }
0x2b04   :  { %v3022_v48 = vmul.f32 0.7978846, %v3021_v45  ;;  %v3157_v45 = vsel %vm3156_vm11, 1, %v5605_v0 }
0x2b06   :  { %5197 = vtanh.f32 %v3022_v48  ;;  %v3161_v48 = vrot.slane %v3157_v45, %v5998_v59  ;;  %v5269_v45 = vld [vmem:[%s6788_s14 + $0x8] sm:$0xff]  }
0x2b08   :  { %vm3162_vm12 = vcmp.eq.s32.totalorder %v3161_v48, 1 }
0x2b09   :  { %v3132_v9 = vpop.f32.mrb[76].mxu0  ;;  %vm3163_vm14 = vmand %vm1230_vm10, %vm3162_vm12 }
0x2b0a   :  { %v3133_v13 = vadd.f32 %v5258_v14, %v3132_v9  ;;  %v4894_v49 = vpop.f32.mrb[77].mxu0  ;;  %v3164_v14 = vsel %vm3163_vm14, 0.0, %v5613_v3 }
0x2b0b   :  { %v3135_v50 = vpop.f32.mrb[78].mxu0 }
0x2b0c   :  { %v4895_v51 = vpop.f32.mrb[79].mxu0  ;;  %v3138_v53 = vadd.f32 %v5259_v52, %v3133_v13 }
0x2b0e   :  { %v3139_v55 = vsel %vm1200_vm8, %v3138_v53, 0.0 }
0x2b0f   :  { %3140 = vadd.xlane.f32.xlu0 %v3139_v55 }
0x2b10   :  { %v5198_v56 = vpop.eup %5197 }
0x2b11   :  { %v3024_v61 = vadd.f32 1.0, %v5198_v56 }
0x2b13   :  { %v3025_v62 = vmul.f32 %v3024_v61, %v3017_v58 }
0x2b15   :  { %v3026_v63 = vpack.c.bf16 %v3025_v62, %v3025_v62 }
0x2b17   :  { %4881 = vmatmul.mubr.msk.bf16.vlgmr.msra.gmra.mrb[80].mxu1 %vm451_vm2, %v3026_v63 }
0x2b18   :  { %4897 = vmatpush3.bf16.msra.mxu1 %v5260_v2  ;;  %4900 = vmatprep.mubr.msk.bf16.mxu1 %vm5607_vm0, %v5606_v1 }
0x2b19   :  { %4898 = vmatprep.subr.bf16.mxu1 %v5606_v1 }
0x2b1c   :  { %4899 = vmatpush3.bf16.msra.mxu1 %v5261_v4 }
0x2b1d   :  { %4910 = vmatprep.subr.bf16.mxu1 %v5606_v1 }
0x2b9c   :  { %v3141_v6 = vpop.xlane.xlu0 %3140 }
0x2b9d   :  { %v3142_v7 = vmul.f32 0.03125, %v3141_v6  ;;  %v5266_v6 = vld [vmem:[%s6766_s19 + $0x8] sm:$0xff]  }
0x2b9f   :  { %v3143_v44 = vsub.f32 %v3138_v53, %v3142_v7 }
0x2ba1   :  { %v3144_v8 = vmul.f32 %v3143_v44, %v3143_v44 }
0x2ba3   :  { %v3145_v10 = vsel %vm1200_vm8, %v3144_v8, 0.0 }
0x2ba4   :  { %3146 = vadd.xlane.f32.xlu1 %v3145_v10 }
0x2bea   :  { %v6462_v47 = vpop.f32.mrb[80].mxu1 }
0x2beb   :  { %v4882_v12 = vpop.f32.mrb[81].mxu1 }
0x2bec   :  { %v3067_v15 = vpop.f32.mrb[82].mxu1 }
0x2bed   :  { %v4883_v17 = vpop.f32.mrb[83].mxu1 }
0x2c31   :  { %v3147_v29 = vpop.xlane.xlu1 %3146 }
0x2c32   :  { %v3148_v19 = vmul.f32 0.03125, %v3147_v29 }
0x2c34   :  { %v3149_v21 = vadd.f32 1e-12, %v3148_v19 }
0x2c36   :  { %5199 = vrsqrt.f32 %v3149_v21 }
0x2c40   :  { %v5200_v18 = vpop.eup %5199 }
0x2c41   :  { %v3151_v32 = vmul.f32 %v5200_v18, %v3143_v44 }
0x2c43   :  { %v3152_v27 = vmul.f32 %v5262_v24, %v3151_v32  ;;  %v5267_v24 = vld [vmem:[%s6787_s8] ss:$0 sm:$0xff] }
0x2c45   :  { %v6466_v26 = vadd.f32 %v5263_v25, %v3152_v27  ;;  %v3065_v27 = vadd.f32 %v5267_v24, %v6462_v47 }
0x2c47   :  { %v3165_v60 = vpack.c.bf16 %v6466_v26, %v6466_v26  ;;  %v3070_v25 = vadd.f32 %v3065_v27, %v6430_v28 }
0x2c49   :  { %4901 = vmatmul.mubr.msk.bf16.vlgmr.msra.gmra.mrb[84].mxu1 %vm502_vm3, %v3165_v60  ;;  %v3071_v60 = vsel %vm502_vm3, %v3070_v25, 0.0 }
0x2c4a   :  { %4912 = vmatprep.mubr.msk.bf16.mxu1 %vm5607_vm0, %v5606_v1 }
0x2d1c   :  { %v3203_v22 = vpop.f32.mrb[84].mxu1 }
0x2d1d   :  { %v3204_v36 = vadd.f32 %v5264_v30, %v3203_v22  ;;  %v4902_v33 = vpop.f32.mrb[85].mxu1 }
0x2d1e   :  { %v3206_v37 = vpop.f32.mrb[86].mxu1 }
0x2d1f   :  { %v6474_v38 = vpack.c.bf16 %v3204_v36, %v3204_v36  ;;  %v4903_v39 = vpop.f32.mrb[87].mxu1 }
0x2d21   :  { %3273 = vrot.lane.b32.xlu0 %v6474_v38, %s6785_s29  ;;  %3211 = vrot.lane.b32.xlu1 %v6474_v38, %s6776_s26 }
0x2d93   :  { %v3274_v41 = vpop.permute.xlu0 %3273  ;;  %v3212_v40 = vpop.permute.xlu1 %3211 }
0x2d94   :  { %v3279_v42 = vand.u32 %v3274_v41, %v6149_v23  ;;  %v3217_v43 = vsel %vm600_vm4, %v3212_v40, 0 }
0x2d95   :  { %4905 = vmatpush3.bf16.xpose.msra.mxu0 %v3217_v43 }
0x2d96   :  { %4911 = vmatpush3.bf16.msra.mxu1 %v3279_v42  ;;  %4916 = vmatprep.subr.bf16.mxu0 %v5606_v1 }
0x2d97   :  { %4922 = vmatprep.subr.bf16.mxu1 %v5606_v1 }
0x2d9c   :  { %4907 = vmatmul.mubr.msk.bf16.vlgmr.msra.gmra.mrb[80].mxu0 %vm600_vm4, %v6474_v38 }
0x2d9d   :  { %4917 = vmatpush3.bf16.msra.mxu0 %v5265_v46  ;;  %4918 = vmatprep.mubr.msk.bf16.mxu0 %vm5607_vm0, %v5606_v1 }
0x2d9e   :  { %4928 = vmatprep.subr.bf16.mxu0 %v5606_v1 }
0x2e6f   :  { %v3253_v9 = vpop.f32.mrb[80].mxu0 }
0x2e70   :  { %v3259_v13 = vmul.f32 0.25, %v3253_v9  ;;  %v4908_v49 = vpop.f32.mrb[81].mxu0 }
0x2e71   :  { %v3256_v50 = vpop.f32.mrb[82].mxu0 }
0x2e72   :  { %v4909_v51 = vpop.f32.mrb[83].mxu0  ;;  %v3260_v52 = vadd.f32 %v3259_v13, %v3164_v14  ;;  %v5270_v50 = vld [vmem:[%s6789_s20] sm:$0xff]  }
0x2e73   :  { %v5271_v51 = vld [vmem:[%s6789_s20 + $0x8] sm:$0xff]  }
0x2e74   :  { %v3261_v53 = vsel %vm1355_vm13, %v3260_v52, -inf }
0x2e75   :  { %3262 = vmax.xlane.f32.xlu1 %v3261_v53 }
0x2f02   :  { %v3263_v55 = vpop.xlane.xlu1 %3262 }
0x2f03   :  { %v3264_v0 = vsub.f32 %v3260_v52, %v3263_v55  ;;  %v5272_v55 = vld [vmem:[%s6790_s17] ss:$0 sm:$0xff] }
0x2f05   :  { %v3265_v56 = vmul.f32 1.442695, %v3264_v0 }
0x2f07   :  { %5201 = vpow2.f32 %v3265_v56 }
0x2f11   :  { %v5202_v59 = vpop.eup %5201 }
0x2f12   :  { %v3267_v58 = vsel %vm1355_vm13, %v5202_v59, 0.0 }
0x2f13   :  { %3268 = vadd.xlane.f32.xlu0 %v3267_v58 }
0x2f29   :  { %3368 = vrot.lane.b32.xlu0 %v6474_v38, %s6778_s12 }
0x2f2d   :  { %3366 = vrot.lane.b32.xlu0 %v6474_v38, %s6775_s25 }
0x2fa0   :  { %v3269_v57 = vpop.xlane.xlu0 %3268 }
0x2fa1   :  { %5203 = vrcp.f32 %v3269_v57 }
0x2fa4   :  { %v3369_v62 = vpop.permute.xlu0 %3368 }
0x2fa5   :  { %v3374_v2 = vsel %vm600_vm4, %v3369_v62, 0 }
0x2fa8   :  { %v3367_v4 = vpop.permute.xlu0 %3366 }
0x2fab   :  { %v5204_v3 = vpop.eup %5203 }
0x2fac   :  { %v3271_v61 = vmul.f32 %v5204_v3, %v5202_v59 }
0x2fae   :  { %v3272_v63 = vpack.c.bf16 %v3271_v61, %v3271_v61 }
0x2fb0   :  { %4913 = vmatmul.mubr.msk.bf16.vlgmr.msra.gmra.mrb[88].mxu1 %vm1370_vm15, %v3272_v63 }
0x2fb1   :  { %4923 = vmatpush3.bf16.xpose.msra.mxu1 %v3374_v2  ;;  %4924 = vmatprep.mubr.msk.bf16.mxu1 %vm5607_vm0, %v5606_v1 }
0x2fb2   :  { %4934 = vmatprep.subr.bf16.mxu1 %v5606_v1 }
0x2fb8   :  { %4925 = vmatmul.mubr.msk.bf16.vlgmr.msra.gmra.mrb[92].mxu1 %vm600_vm4, %v3367_v4 }
0x2fb9   :  { %4935 = vmatpush3.bf16.msra.mxu1 %v5266_v6  ;;  %4936 = vmatprep.mubr.msk.bf16.mxu1 %vm5607_vm0, %v5606_v1 }
0x2fba   :  { %4948 = vmatprep.subr.bf16.mxu1 %v5606_v1 }
0x3083   :  { %v3315_v7 = vpop.f32.mrb[88].mxu1 }
0x3084   :  { %v3321_v44 = vpack.c.bf16 %v3315_v7, %v3315_v7  ;;  %v4914_v8 = vpop.f32.mrb[89].mxu1 }
0x3085   :  { %v3318_v10 = vpop.f32.mrb[90].mxu1 }
0x3086   :  { %v4915_v12 = vpop.f32.mrb[91].mxu1  ;;  %4919 = vmatmul.mubr.msk.bf16.vlgmr.msra.gmra.mrb[84].mxu0 %vm600_vm4, %v3321_v44 }
0x3087   :  { %4930 = vmatprep.mubr.msk.bf16.mxu0 %vm5607_vm0, %v5606_v1 }
0x308b   :  { %v3410_v15 = vpop.f32.mrb[92].mxu1 }
0x308c   :  { %v3416_v17 = vmul.f32 0.25, %v3410_v15  ;;  %v4926_v29 = vpop.f32.mrb[93].mxu1 }
0x308d   :  { %v3413_v19 = vpop.f32.mrb[94].mxu1 }
0x308e   :  { %v4927_v21 = vpop.f32.mrb[95].mxu1  ;;  %v3417_v18 = vadd.f32 %v3416_v17, %v3164_v14  ;;  %v5273_v19 = vld [vmem:[#allocation2] ss:$0 sm:$0xff] }
0x3090   :  { %v3418_v32 = vsel %vm1355_vm13, %v3417_v18, -inf }
0x3091   :  { %3419 = vmax.xlane.f32.xlu1 %v3418_v32 }
0x30a2   :  { %3430 = vrot.lane.b32.xlu1 %v6474_v38, %s6786_s3 }
0x30c6   :  { %3072 = vadd.xlane.f32.xlu1 %v3071_v60 }
0x311e   :  { %v3420_v22 = vpop.xlane.xlu1 %3419 }
0x311f   :  { %v3421_v30 = vsub.f32 %v3417_v18, %v3420_v22  ;;  %v5274_v18 = vld [vmem:[#allocation5] ss:$0 sm:$0xff] }
0x3121   :  { %v3422_v36 = vmul.f32 1.442695, %v3421_v30 }
0x3122   :  { %v3431_v33 = vpop.permute.xlu1 %3430 }
0x3123   :  { %5205 = vpow2.f32 %v3422_v36  ;;  %v3436_v37 = vand.u32 %v3431_v33, %v6149_v23  ;;  %v5268_v23 = vld [vmem:[%s6788_s14] sm:$0xff]  }
0x3124   :  { %v5275_v36 = vld [vmem:[%s6791_s21] ss:$0 sm:$0xff] }
0x3125   :  { %4929 = vmatpush3.bf16.msra.mxu0 %v3436_v37  ;;  %v5276_v37 = vld [vmem:[%s6792_s28] ss:$0 sm:$0xff] }
0x3126   :  { %4940 = vmatprep.subr.bf16.mxu0 %v5606_v1 }
0x312d   :  { %v5206_v38 = vpop.eup %5205 }
0x312e   :  { %v3424_v39 = vsel %vm1355_vm13, %v5206_v38, 0.0 }
0x312f   :  { %3425 = vadd.xlane.f32.xlu0 %v3424_v39 }
0x3153   :  { %v3073_v52 = vpop.xlane.xlu1 %3072 }
0x3154   :  { %v3074_v53 = vmul.f32 0.03125, %v3073_v52 }
0x3156   :  { %v3075_v59 = vsub.f32 %v3070_v25, %v3074_v53 }
0x3158   :  { %v3076_v2 = vmul.f32 %v3075_v59, %v3075_v59 }
0x3159   :  { %v3359_v28 = vpop.f32.mrb[84].mxu0 }
0x315a   :  { %v4920_v47 = vpop.f32.mrb[85].mxu0  ;;  %v3365_v0 = vadd.f32 %v5272_v55, %v3359_v28  ;;  %v3077_v4 = vsel %vm502_vm3, %v3076_v2, 0.0 }
0x315b   :  { %v3362_v41 = vpop.f32.mrb[86].mxu0  ;;  %v5277_v47 = vld [vmem:[%s6793_s1] ss:$0 sm:$0xff] }
0x315c   :  { %v4921_v40 = vpop.f32.mrb[87].mxu0 }
0x31bc   :  { %v3426_v42 = vpop.xlane.xlu0 %3425 }
0x31bd   :  { %5207 = vrcp.f32 %v3426_v42 }
0x31c7   :  { %v5208_v43 = vpop.eup %5207 }
0x31c8   :  { %v3428_v46 = vmul.f32 %v5208_v43, %v5206_v38 }
0x31ca   :  { %v3429_v5 = vpack.c.bf16 %v3428_v46, %v3428_v46 }
0x31cc   :  { %4931 = vmatmul.mubr.msk.bf16.vlgmr.msra.gmra.mrb[88].mxu0 %vm1370_vm15, %v3429_v5 }
0x31cd   :  { %4941 = vmatpush3.bf16.msra.mxu0 %v5268_v23  ;;  %4944 = vmatprep.mubr.msk.bf16.mxu0 %vm5607_vm0, %v5606_v1 }
0x31ce   :  { %4942 = vmatprep.subr.bf16.mxu0 %v5606_v1 }
0x31d1   :  { %4943 = vmatpush3.bf16.msra.mxu0 %v5269_v45  ;;  %v5278_v45 = vld [vmem:[%s6794_s24] ss:$0 sm:$0xff] }
0x31d2   :  { %4956 = vmatprep.subr.bf16.mxu0 %v5606_v1 }
0x329f   :  { %v3472_v48 = vpop.f32.mrb[88].mxu0 }
0x32a0   :  { %v3478_v9 = vpack.c.bf16 %v3472_v48, %v3472_v48  ;;  %v4932_v14 = vpop.f32.mrb[89].mxu0 }
0x32a1   :  { %v3475_v13 = vpop.f32.mrb[90].mxu0 }
0x32a2   :  { %v4933_v49 = vpop.f32.mrb[91].mxu0  ;;  %4937 = vmatmul.mubr.msk.bf16.vlgmr.msra.gmra.mrb[96].mxu1 %vm600_vm4, %v3478_v9 }
0x32a3   :  { %4949 = vmatpush3.bf16.msra.mxu1 %v5270_v50  ;;  %4952 = vmatprep.mubr.msk.bf16.mxu1 %vm5607_vm0, %v5606_v1  ;;  %v5279_v50 = vld [vmem:[%s6795_s7] sm:$0xff]  }
0x32a4   :  { %4950 = vmatprep.subr.bf16.mxu1 %v5606_v1 }
0x32a7   :  { %4951 = vmatpush3.bf16.msra.mxu1 %v5271_v51 }
0x32a8   :  { %4962 = vmatprep.subr.bf16.mxu1 %v5606_v1 }
0x3375   :  { %v3516_v56 = vpop.f32.mrb[96].mxu1 }
0x3376   :  { %v3522_v58 = vadd.f32 %v3516_v56, %v3365_v0  ;;  %v4938_v57 = vpop.f32.mrb[97].mxu1 }
0x3377   :  { %v3519_v3 = vpop.f32.mrb[98].mxu1 }
0x3378   :  { %v4939_v61 = vpop.f32.mrb[99].mxu1  ;;  %v3523_v62 = vadd.f32 %v3522_v58, %v6466_v26 }
0x337a   :  { %v3524_v63 = vsel %vm1200_vm8, %v3523_v62, 0.0 }
0x337b   :  { %3525 = vadd.xlane.f32.xlu0 %v3524_v63 }
0x337f   :  { %3078 = vadd.xlane.f32.xlu0 %v3077_v4 }
0x3408   :  { %v3526_v6 = vpop.xlane.xlu0 %3525 }
0x3409   :  { %v3527_v7 = vmul.f32 0.03125, %v3526_v6 }
0x340b   :  { %v3528_v44 = vsub.f32 %v3523_v62, %v3527_v7 }
0x340c   :  { %v3079_v8 = vpop.xlane.xlu0 %3078 }
0x340d   :  { %v3080_v10 = vmul.f32 0.03125, %v3079_v8  ;;  %v3529_v12 = vmul.f32 %v3528_v44, %v3528_v44 }
0x340f   :  { %v3081_v15 = vadd.f32 1e-12, %v3080_v10  ;;  %v3530_v17 = vsel %vm1200_vm8, %v3529_v12, 0.0 }
0x3410   :  { %3531 = vadd.xlane.f32.xlu0 %v3530_v17 }
0x3411   :  { %5209 = vrsqrt.f32 %v3081_v15  ;;  %v5280_v15 = vld [vmem:[%s6795_s7 + $0x8] sm:$0xff]  }
0x341b   :  { %v5210_v26 = vpop.eup %5209 }
0x341c   :  { %v3083_v29 = vmul.f32 %v5210_v26, %v3075_v59 }
0x341e   :  { %v3084_v21 = vmul.f32 %v5273_v19, %v3083_v29 }
0x3420   :  { %v3085_v32 = vadd.f32 %v5274_v18, %v3084_v21 }
0x3422   :  { %v3583_v24 = vpack.c.bf16 %v3085_v32, %v3085_v32 }
0x3424   :  { %4953 = vmatmul.mubr.msk.bf16.vlgmr.msra.gmra.mrb[100].mxu1 %vm502_vm3, %v3583_v24 }
0x3425   :  { %4964 = vmatprep.mubr.msk.bf16.mxu1 %vm5607_vm0, %v5606_v1 }
0x349d   :  { %v3532_v27 = vpop.xlane.xlu0 %3531 }
0x349e   :  { %v3533_v25 = vmul.f32 0.03125, %v3532_v27 }
0x34a0   :  { %v3534_v60 = vadd.f32 1e-12, %v3533_v25 }
0x34a2   :  { %5211 = vrsqrt.f32 %v3534_v60 }
0x34ac   :  { %v5212_v22 = vpop.eup %5211 }
0x34ad   :  { %v3536_v30 = vmul.f32 %v5212_v22, %v3528_v44 }
0x34af   :  { %v3537_v33 = vmul.f32 %v5275_v36, %v3536_v30 }
0x34b1   :  { %v6550_v38 = vadd.f32 %v5276_v37, %v3537_v33 }
0x34b3   :  { %v3539_v39 = vpack.c.bf16 %v6550_v38, %v6550_v38 }
0x34b5   :  { %4945 = vmatmul.mubr.msk.bf16.vlgmr.msra.gmra.mrb[92].mxu0 %vm502_vm3, %v3539_v39 }
0x34b6   :  { %4958 = vmatprep.mubr.msk.bf16.mxu0 %vm5607_vm0, %v5606_v1 }
0x34f7   :  { %v3621_v28 = vpop.f32.mrb[100].mxu1 }
0x34f8   :  { %v3622_v41 = vadd.f32 %v5277_v47, %v3621_v28  ;;  %v4954_v40 = vpop.f32.mrb[101].mxu1 }
0x34f9   :  { %v3624_v42 = vpop.f32.mrb[102].mxu1 }
0x34fa   :  { %v6558_v43 = vpack.c.bf16 %v3622_v41, %v3622_v41  ;;  %v4955_v46 = vpop.f32.mrb[103].mxu1 }
0x34fc   :  { %3786 = vrot.lane.b32.xlu1 %v6558_v43, %s6775_s25  ;;  %v3633_v5 = vsel %vm600_vm4, %v6558_v43, 0 }
0x34fd   :  { %4957 = vmatpush3.bf16.xpose.msra.mxu0 %v3633_v5 }
0x34fe   :  { %4968 = vmatprep.subr.bf16.mxu0 %v5606_v1 }
0x356e   :  { %v3787_v44 = vpop.permute.xlu1 %3786 }
0x356f   :  { %v3792_v10 = vsel %vm600_vm4, %v3787_v44, 0 }
0x3588   :  { %v3577_v23 = vpop.f32.mrb[92].mxu0 }
0x3589   :  { %v3578_v48 = vadd.f32 %v5278_v45, %v3577_v23  ;;  %v4946_v9 = vpop.f32.mrb[93].mxu0  ;;  %v5281_v45 = vld [vmem:[%s6780_s27] sm:$0xff]  }
0x358a   :  { %v3580_v14 = vpop.f32.mrb[94].mxu0 }
0x358b   :  { %v3627_v13 = vpack.c.bf16 %v3578_v48, %v3578_v48  ;;  %v4947_v49 = vpop.f32.mrb[95].mxu0  ;;  %v5282_v48 = vld [vmem:[%s6780_s27 + $0x8] sm:$0xff]   ;;  %s6797_s27 = sld [smem:[#allocation28_spill]] }
0x358d   :  { %3784 = vrot.lane.b32.xlu1 %v3627_v13, %s6775_s25  ;;  %4959 = vmatmul.mubr.msk.bf16.vlgmr.msra.gmra.mrb[96].mxu0 %vm600_vm4, %v3627_v13  ;;  %s6796_s25 = sld [smem:[#allocation52_spill]] }
0x358e   :  { %4969 = vmatpush3.bf16.msra.mxu0 %v5279_v50  ;;  %4970 = vmatprep.mubr.msk.bf16.mxu0 %vm5607_vm0, %v5606_v1 }
0x358f   :  { %4980 = vmatprep.subr.bf16.mxu0 %v5606_v1 }
0x35ff   :  { %v3785_v12 = vpop.permute.xlu1 %3784 }
0x3660   :  { %v3669_v51 = vpop.f32.mrb[96].mxu0 }
0x3661   :  { %v3675_v52 = vmul.f32 0.25, %v3669_v51  ;;  %v4960_v53 = vpop.f32.mrb[97].mxu0  ;;  %v5283_v51 = vld [vmem:[%s6783_s0] sm:$0xff]  }
0x3662   :  { %v3672_v55 = vpop.f32.mrb[98].mxu0  ;;  %v5285_v53 = vld [vmem:[%s6783_s0 + $0x10] sm:$0xff]  }
0x3663   :  { %v4961_v0 = vpop.f32.mrb[99].mxu0  ;;  %v3676_v56 = vadd.f32 %v3675_v52, %v6348_v20  ;;  %v5284_v52 = vld [vmem:[%s6783_s0 + $0x8] sm:$0xff]   ;;  %v5286_v55 = vld [vmem:[%s6783_s0 + $0x18] sm:$0xff]  }
0x3664   :  { %v5287_v0 = vld [vmem:[%s6796_s25] ss:$0 sm:$0xff] }
0x3665   :  { %v3677_v59 = vsel %vm1842_vm1, %v3676_v56, -inf }
0x3666   :  { %3678 = vmax.xlane.f32.xlu0 %v3677_v59 }
0x36f3   :  { %v3679_v58 = vpop.xlane.xlu0 %3678 }
0x36f4   :  { %v3680_v57 = vsub.f32 %v3676_v56, %v3679_v58 }
0x36f6   :  { %v3681_v3 = vmul.f32 1.442695, %v3680_v57 }
0x36f8   :  { %5213 = vpow2.f32 %v3681_v3 }
0x3702   :  { %v5214_v61 = vpop.eup %5213 }
0x3703   :  { %v3683_v62 = vsel %vm1842_vm1, %v5214_v61, 0.0 }
0x3704   :  { %3684 = vadd.xlane.f32.xlu0 %v3683_v62 }
0x371a   :  { %3690 = vrot.lane.b32.xlu0 %v6558_v43, %s6776_s26 }
0x3791   :  { %v3685_v63 = vpop.xlane.xlu0 %3684 }
0x3792   :  { %5215 = vrcp.f32 %v3685_v63 }
0x3795   :  { %v3691_v2 = vpop.permute.xlu0 %3690 }
0x3796   :  { %v3696_v4 = vsel %vm673_vm6, %v3691_v2, 0 }
0x3797   :  { %4963 = vmatpush3.bf16.msra.mxu1 %v3696_v4 }
0x3798   :  { %4974 = vmatprep.subr.bf16.mxu1 %v5606_v1 }
0x379c   :  { %v5216_v6 = vpop.eup %5215 }
0x379d   :  { %v3687_v7 = vmul.f32 %v5216_v6, %v5214_v61 }
0x379f   :  { %v3688_v8 = vpack.c.bf16 %v3687_v7, %v3687_v7 }
0x37a1   :  { %4965 = vmatmul.mubr.msk.bf16.vlgmr.msra.gmra.mrb[104].mxu1 %vm655_vm5, %v3688_v8 }
0x37a2   :  { %4975 = vmatpush3.bf16.xpose.msra.mxu1 %v3792_v10  ;;  %4976 = vmatprep.mubr.msk.bf16.mxu1 %vm5607_vm0, %v5606_v1 }
0x37a3   :  { %4986 = vmatprep.subr.bf16.mxu1 %v5606_v1 }
0x37a9   :  { %4977 = vmatmul.mubr.msk.bf16.vlgmr.msra.gmra.mrb[108].mxu1 %vm600_vm4, %v3785_v12 }
0x37aa   :  { %4987 = vmatpush3.bf16.msra.mxu1 %v5280_v15  ;;  %4988 = vmatprep.mubr.msk.bf16.mxu1 %vm5607_vm0, %v5606_v1 }
0x37ab   :  { %5000 = vmatprep.subr.bf16.mxu1 %v5606_v1 }
0x3874   :  { %v3732_v17 = vpop.f32.mrb[104].mxu1 }
0x3875   :  { %v3738_v26 = vpack.c.bf16 %v3732_v17, %v3732_v17  ;;  %v4966_v29 = vpop.f32.mrb[105].mxu1 }
0x3876   :  { %v3735_v19 = vpop.f32.mrb[106].mxu1  ;;  %v5289_v29 = vld [vmem:[%s6782_s2] ss:$0 sm:$0xff] }
0x3877   :  { %v4967_v21 = vpop.f32.mrb[107].mxu1  ;;  %4971 = vmatmul.mubr.msk.bf16.vlgmr.msra.gmra.mrb[100].mxu0 %vm600_vm4, %v3738_v26 }
0x3878   :  { %4982 = vmatprep.mubr.msk.bf16.mxu0 %vm5607_vm0, %v5606_v1 }
0x387c   :  { %v3828_v18 = vpop.f32.mrb[108].mxu1 }
0x387d   :  { %v3834_v32 = vmul.f32 0.25, %v3828_v18  ;;  %v4978_v24 = vpop.f32.mrb[109].mxu1  ;;  %v5290_v18 = vld [vmem:[%s6784_s5] sm:$0xff]  }
0x387e   :  { %v3831_v27 = vpop.f32.mrb[110].mxu1 }
0x387f   :  { %v4979_v25 = vpop.f32.mrb[111].mxu1  ;;  %v3835_v60 = vadd.f32 %v3834_v32, %v6348_v20  ;;  %v5291_v32 = vld [vmem:[%s6784_s5 + $0x8] sm:$0xff]   ;;  %v5292_v27 = vld [vmem:[#allocation7] ss:$0 sm:$0xff] }
0x3881   :  { %v3836_v22 = vsel %vm1842_vm1, %v3835_v60, -inf }
0x3882   :  { %3837 = vmax.xlane.f32.xlu0 %v3836_v22 }
0x3898   :  { %3848 = vrot.lane.b32.xlu0 %v6558_v43, %s6778_s12 }
0x390f   :  { %v3838_v30 = vpop.xlane.xlu0 %3837 }
0x3910   :  { %v3839_v36 = vsub.f32 %v3835_v60, %v3838_v30 }
0x3912   :  { %v3840_v33 = vmul.f32 1.442695, %v3839_v36 }
0x3913   :  { %v3849_v37 = vpop.permute.xlu0 %3848 }
0x3914   :  { %5217 = vpow2.f32 %v3840_v33  ;;  %v3854_v39 = vsel %vm673_vm6, %v3849_v37, 0 }
0x3915   :  { %4981 = vmatpush3.bf16.msra.mxu0 %v3854_v39 }
0x3916   :  { %4992 = vmatprep.subr.bf16.mxu0 %v5606_v1 }
0x391e   :  { %v5218_v28 = vpop.eup %5217 }
0x391f   :  { %v3842_v20 = vsel %vm1842_vm1, %v5218_v28, 0.0 }
0x3920   :  { %3843 = vadd.xlane.f32.xlu1 %v3842_v20 }
0x394a   :  { %v3776_v47 = vpop.f32.mrb[100].mxu0 }
0x394b   :  { %v4972_v41 = vpop.f32.mrb[101].mxu0  ;;  %v3782_v56 = vadd.f32 %v5287_v0, %v3776_v47 }
0x394c   :  { %v3779_v40 = vpop.f32.mrb[102].mxu0 }
0x394d   :  { %v4973_v42 = vpop.f32.mrb[103].mxu0 }
0x39ad   :  { %v3844_v43 = vpop.xlane.xlu1 %3843 }
0x39ae   :  { %5219 = vrcp.f32 %v3844_v43 }
0x39b8   :  { %v5220_v46 = vpop.eup %5219 }
0x39b9   :  { %v3846_v5 = vmul.f32 %v5220_v46, %v5218_v28  ;;  %v5293_v46 = vld [vmem:[#allocation8] ss:$0 sm:$0xff] }
0x39bb   :  { %v3847_v23 = vpack.c.bf16 %v3846_v5, %v3846_v5 }
0x39bd   :  { %4983 = vmatmul.mubr.msk.bf16.vlgmr.msra.gmra.mrb[104].mxu0 %vm655_vm5, %v3847_v23 }
0x39be   :  { %4993 = vmatpush3.bf16.msra.mxu0 %v5281_v45  ;;  %4996 = vmatprep.mubr.msk.bf16.mxu0 %vm5607_vm0, %v5606_v1 }
0x39bf   :  { %4994 = vmatprep.subr.bf16.mxu0 %v5606_v1 }
0x39c2   :  { %4995 = vmatpush3.bf16.msra.mxu0 %v5282_v48 }
0x39c3   :  { %5012 = vmatprep.subr.bf16.mxu0 %v5606_v1 }
0x3a90   :  { %v3890_v9 = vpop.f32.mrb[104].mxu0 }
0x3a91   :  { %v3896_v14 = vpack.c.bf16 %v3890_v9, %v3890_v9  ;;  %v4984_v13 = vpop.f32.mrb[105].mxu0 }
0x3a92   :  { %v3893_v49 = vpop.f32.mrb[106].mxu0 }
0x3a93   :  { %v4985_v50 = vpop.f32.mrb[107].mxu0  ;;  %4989 = vmatmul.mubr.msk.bf16.vlgmr.msra.gmra.mrb[112].mxu1 %vm600_vm4, %v3896_v14  ;;  %vm2509_vm4 = vcmask 6144  }
0x3a94   :  { %5001 = vmatpush3.bf16.msra.mxu1 %v5283_v51  ;;  %5008 = vmatprep.mubr.msk.bf16.mxu1 %vm5607_vm0, %v5606_v1 }
0x3a95   :  { %5002 = vmatprep.subr.bf16.mxu1 %v5606_v1 }
0x3a98   :  { %5003 = vmatpush3.bf16.msra.mxu1 %v5284_v52 }
0x3a99   :  { %5004 = vmatprep.subr.bf16.mxu1 %v5606_v1 }
0x3a9c   :  { %5005 = vmatpush3.bf16.msra.mxu1 %v5285_v53 }
0x3a9d   :  { %5006 = vmatprep.subr.bf16.mxu1 %v5606_v1 }
0x3aa0   :  { %5007 = vmatpush3.bf16.msra.mxu1 %v5286_v55 }
0x3b66   :  { %v3934_v59 = vpop.f32.mrb[112].mxu1 }
0x3b67   :  { %v3940_v58 = vadd.f32 %v3934_v59, %v3782_v56  ;;  %v4990_v57 = vpop.f32.mrb[113].mxu1 }
0x3b68   :  { %v3937_v3 = vpop.f32.mrb[114].mxu1 }
0x3b69   :  { %v4991_v61 = vpop.f32.mrb[115].mxu1  ;;  %v3941_v62 = vadd.f32 %v3940_v58, %v6550_v38  ;;  %v5288_v38 = vld [vmem:[%s6781_s23] ss:$0 sm:$0xff]  ;;  %v5294_v58 = vld [vmem:[#allocation10] ss:$0 sm:$0xff]  ;;  %s6798_s23 = sld [smem:[#allocation62_spill]] }
0x3b6a   :  { %v5295_v3 = vld [vmem:[#allocation11] ss:$0 sm:$0xff] }
0x3b6b   :  { %v3942_v63 = vsel %vm1200_vm8, %v3941_v62, 0.0 }
0x3b6c   :  { %3943 = vadd.xlane.f32.xlu1 %v3942_v63 }
0x3b6f   :  { %s5519_s10 = scalar_lea.hbm %s6798_s23, 16 }
0x3b70   :  { %p5520_p10 = scmp.ne.s32.totalorder %s6798_s23, %s5519_s10  ;;  %p5523_p11 = scmp.lt.u32.totalorder %s5519_s10, %s6798_s23 }
0x3b72   :  { %p5525_p12 = pnand %p5523_p11, %p5520_p10 }
0x3bf9   :  { %v3944_v2 = vpop.xlane.xlu1 %3943 }
0x3bfa   :  { %v3945_v4 = vmul.f32 0.03125, %v3944_v2  ;;  %v5296_v2 = vld [vmem:[#allocation13] ss:$0 sm:$0xff] }
0x3bfc   :  { %v3946_v6 = vsub.f32 %v3941_v62, %v3945_v4 }
0x3bfe   :  { %v3947_v7 = vmul.f32 %v3946_v6, %v3946_v6 }
0x3c00   :  { %v3948_v44 = vsel %vm1200_vm8, %v3947_v7, 0.0 }
0x3c01   :  { %3949 = vadd.xlane.f32.xlu1 %v3948_v44 }
0x3c8e   :  { %v3950_v8 = vpop.xlane.xlu1 %3949 }
0x3c8f   :  { %v3951_v10 = vmul.f32 0.03125, %v3950_v8 }
0x3c91   :  { %v3952_v12 = vadd.f32 1e-12, %v3951_v10 }
0x3c93   :  { %5221 = vrsqrt.f32 %v3952_v12 }
0x3c9d   :  { %v5222_v15 = vpop.eup %5221 }
0x3c9e   :  { %v3954_v17 = vmul.f32 %v5222_v15, %v3946_v6 }
0x3ca0   :  { %v3955_v26 = vmul.f32 %v5288_v38, %v3954_v17 }
0x3ca2   :  { %v3956_v19 = vadd.f32 %v5289_v29, %v3955_v26 }
0x3ca4   :  { %v3957_v21 = vpack.c.bf16 %v3956_v19, %v3956_v19 }
0x3ca6   :  { %4997 = vmatmul.mubr.msk.bf16.vlgmr.msra.gmra.mrb[108].mxu0 %vm502_vm3, %v3957_v21 }
0x3ca7   :  { %5013 = vmatpush3.bf16.msra.mxu0 %v5290_v18  ;;  %5016 = vmatprep.mubr.msk.bf16.mxu0 %vm5607_vm0, %v5606_v1 }
0x3ca8   :  { %5014 = vmatprep.subr.bf16.mxu0 %v5606_v1 }
0x3cab   :  { %5015 = vmatpush3.bf16.msra.mxu0 %v5291_v32 }
0x3cac   :  { %5020 = vmatprep.subr.bf16.mxu0 %v5606_v1 }
0x3d79   :  { %v3995_v24 = vpop.f32.mrb[108].mxu0 }
0x3d7a   :  { %v3996_v25 = vadd.f32 %v5292_v27, %v3995_v24  ;;  %v4998_v60 = vpop.f32.mrb[109].mxu0  ;;  %v2486_v27 = vld [vmem:[%s6797_s27] sm:$0x7f] }
0x3d7b   :  { %v3998_v22 = vpop.f32.mrb[110].mxu0 }
0x3d7c   :  { %v4002_v30 = vmul.f32 0.044715, %v3996_v25  ;;  %v4999_v36 = vpop.f32.mrb[111].mxu0  ;;  %v4001_v47 = vmul.f32 0.5, %v3996_v25 }
0x3d7e   :  { %v4003_v33 = vmul.f32 %v4002_v30, %v3996_v25 }
0x3d80   :  { %v4004_v37 = vmul.f32 %v4003_v33, %v3996_v25 }
0x3d82   :  { %v4005_v39 = vadd.f32 %v4004_v37, %v3996_v25 }
0x3d84   :  { %v4006_v28 = vmul.f32 0.7978846, %v4005_v39 }
0x3d86   :  { %5223 = vtanh.f32 %v4006_v28  ;;  %v5297_v28 = vld [vmem:[#allocation14] ss:$0 sm:$0xff] }
0x3d90   :  { %v5224_v20 = vpop.eup %5223 }
0x3d91   :  { %v4008_v41 = vadd.f32 1.0, %v5224_v20 }
0x3d93   :  { %v4009_v40 = vmul.f32 %v4008_v41, %v4001_v47 }
0x3d95   :  { %v4010_v42 = vpack.c.bf16 %v4009_v40, %v4009_v40  ;;  %v5298_v40 = vld [vmem:[#allocation16] ss:$0 sm:$0xff] }
0x3d97   :  { %5009 = vmatmul.mubr.msk.bf16.vlgmr.msra.gmra.mrb[116].mxu1 %vm451_vm2, %v4010_v42 }
0x3e6a   :  { %v4048_v43 = vpop.f32.mrb[116].mxu1 }
0x3e6b   :  { %v4049_v5 = vadd.f32 %v5293_v46, %v4048_v43  ;;  %v5010_v23 = vpop.f32.mrb[117].mxu1 }
0x3e6c   :  { %v4051_v45 = vpop.f32.mrb[118].mxu1 }
0x3e6d   :  { %v5011_v48 = vpop.f32.mrb[119].mxu1  ;;  %v4054_v9 = vadd.f32 %v4049_v5, %v3956_v19  ;;  %v4381_v19 = vld [vmem:[#allocation17] ss:$0 sm:$0xff] }
0x3e6e   :  { %v2481_v18 = vadd.f32 %v4381_v19, %v6393_v54 }
0x3e6f   :  { %v4055_v14 = vsel %vm1200_vm8, %v4054_v9, 0.0 }
0x3e70   :  { %4056 = vadd.xlane.f32.xlu1 %v4055_v14 }
0x3efd   :  { %v4057_v13 = vpop.xlane.xlu1 %4056 }
0x3efe   :  { %v4058_v49 = vmul.f32 0.03125, %v4057_v13 }
0x3f00   :  { %v4059_v50 = vsub.f32 %v4054_v9, %v4058_v49  ;;  %v4419_v49 = vld [vmem:[%s6797_s27 + $0x8] sm:$0x7f] }
0x3f02   :  { %v4060_v51 = vmul.f32 %v4059_v50, %v4059_v50 }
0x3f04   :  { %v4061_v52 = vsel %vm1200_vm8, %v4060_v51, 0.0 }
0x3f05   :  { %4062 = vadd.xlane.f32.xlu1 %v4061_v52 }
0x3f92   :  { %v4063_v53 = vpop.xlane.xlu1 %4062 }
0x3f93   :  { %v4064_v55 = vmul.f32 0.03125, %v4063_v53 }
0x3f95   :  { %v4065_v0 = vadd.f32 1e-12, %v4064_v55 }
0x3f97   :  { %5225 = vrsqrt.f32 %v4065_v0 }
0x3fa1   :  { %v5226_v56 = vpop.eup %5225 }
0x3fa2   :  { %v4067_v59 = vmul.f32 %v5226_v56, %v4059_v50 }
0x3fa4   :  { %v4068_v57 = vmul.f32 %v5294_v58, %v4067_v59 }
0x3fa6   :  { %v4069_v61 = vadd.f32 %v5295_v3, %v4068_v57 }
0x3fa8   :  { %v4070_v62 = vpack.c.bf16 %v4069_v61, %v4069_v61 }
0x3faa   :  { %5017 = vmatmul.mubr.msk.bf16.vlgmr.msra.gmra.mrb[112].mxu0 %vm502_vm3, %v4070_v62 }
0x3fab   :  { %5021 = vmatpush3.bf16.xpose.msra.mxu0 %v6342_v11  ;;  %5028 = vmatprep.mubr.msk.bf16.mxu0 %vm5607_vm0, %v5606_v1  ;;  %vm2487_vm0 = vcmask 522240  }
0x3fac   :  { %5022 = vmatprep.subr.bf16.mxu0 %v5606_v1  ;;  %v2488_v24 = vsel %vm2487_vm0, %v2481_v18, -inf }
0x3fb3   :  { %5023 = vmatpush3.bf16.xpose.msra.mxu0 %v6355_v31 }
0x3fb4   :  { %5024 = vmatprep.subr.bf16.mxu0 %v5606_v1 }
0x3fbb   :  { %5025 = vmatpush3.bf16.xpose.msra.mxu0 %v6361_v34 }
0x3fbc   :  { %5026 = vmatprep.subr.bf16.mxu0 %v5606_v1 }
0x3fc3   :  { %5027 = vmatpush3.bf16.xpose.msra.mxu0 %v6371_v35 }
0x407d   :  { %v4108_v63 = vpop.f32.mrb[112].mxu0 }
0x407e   :  { %v4109_v4 = vadd.f32 %v5296_v2, %v4108_v63  ;;  %v5018_v6 = vpop.f32.mrb[113].mxu0 }
0x407f   :  { %v4111_v11 = vpop.f32.mrb[114].mxu0 }
0x4080   :  { %v4115_v7 = vmul.f32 0.044715, %v4109_v4  ;;  %v5019_v44 = vpop.f32.mrb[115].mxu0  ;;  %v4114_v17 = vmul.f32 0.5, %v4109_v4 }
0x4082   :  { %v4116_v8 = vmul.f32 %v4115_v7, %v4109_v4 }
0x4084   :  { %v4117_v10 = vmul.f32 %v4116_v8, %v4109_v4 }
0x4086   :  { %v4118_v12 = vadd.f32 %v4117_v10, %v4109_v4 }
0x4088   :  { %v4119_v15 = vmul.f32 0.7978846, %v4118_v12 }
0x408a   :  { %5227 = vtanh.f32 %v4119_v15 }
0x4094   :  { %v5228_v31 = vpop.eup %5227 }
0x4095   :  { %v4121_v34 = vadd.f32 1.0, %v5228_v31 }
0x4097   :  { %v4122_v38 = vmul.f32 %v4121_v34, %v4114_v17 }
0x4099   :  { %v4123_v1 = vsel %vm1200_vm8, %v4122_v38, 0.0 }
0x409a   :  { %4124 = vadd.xlane.f32.xlu0 %v4123_v1 }
0x4127   :  { %v4125_v35 = vpop.xlane.xlu0 %4124 }
0x4128   :  { %v4126_v26 = vmul.f32 0.03125, %v4125_v35 }
0x412a   :  { %v4127_v29 = vsub.f32 %v4122_v38, %v4126_v26 }
0x412c   :  { %v4128_v21 = vmul.f32 %v4127_v29, %v4127_v29 }
0x412e   :  { %v4129_v32 = vsel %vm1200_vm8, %v4128_v21, 0.0 }
0x412f   :  { %4130 = vadd.xlane.f32.xlu1 %v4129_v32 }
0x4133   :  { %2489 = vmax.xlane.f32.xlu1 %v2488_v24 }
0x4144   :  { %2501 = vperm.xlu1 %5110, %v2486_v27  }
0x41bc   :  { %v4131_v25 = vpop.xlane.xlu1 %4130 }
0x41bd   :  { %v4132_v60 = vmul.f32 0.03125, %v4131_v25 }
0x41bf   :  { %v4133_v22 = vadd.f32 1e-12, %v4132_v60 }
0x41c0   :  { %v2490_v30 = vpop.xlane.xlu1 %2489 }
0x41c1   :  { %5229 = vrsqrt.f32 %v4133_v22  ;;  %v2491_v36 = vsub.f32 %v2481_v18, %v2490_v30 }
0x41c3   :  { %v2492_v33 = vmul.f32 1.442695, %v2491_v36 }
0x41c4   :  { %v2502_v39 = vpop.permute.xlu1 %2501 }
0x41c5   :  { %5231 = vpow2.f32 %v2492_v33  ;;  %vm2503_vm2 = vcmp.eq.s32.totalorder %v5959_v16, %v2502_v39 }
0x41c6   :  { %v2504_v43 = vsel %vm2503_vm2, %v2481_v18, 0.0 }
0x41c7   :  { %v2505_v5 = vsel %vm2487_vm0, %v2504_v43, 0.0 }
0x41cb   :  { %v5230_v37 = vpop.eup %5229 }
0x41cc   :  { %v4135_v54 = vmul.f32 %v5230_v37, %v4127_v29 }
0x41ce   :  { %v4136_v20 = vmul.f32 %v5297_v28, %v4135_v54 }
0x41cf   :  { %v5232_v47 = vpop.eup %5231 }
0x41d0   :  { %v2494_v41 = vsel %vm2487_vm0, %v5232_v47, 0.0  ;;  %v4137_v42 = vadd.f32 %v5298_v40, %v4136_v20 }
0x41d1   :  { %2495 = vadd.xlane.f32.xlu0 %v2494_v41 }
0x41d2   :  { %v4138_v46 = vpack.c.bf16 %v4137_v42, %v4137_v42 }
0x41d4   :  { %5029 = vmatmul.mubr.msk.bf16.vlgmr.msra.gmra.mrb[116].mxu0 %vm502_vm3, %v4138_v46 }
0x41d5   :  { %2506 = vadd.xlane.f32.xlu0 %v2505_v5 }
0x425e   :  { %v2496_v50 = vpop.xlane.xlu0 %2495 }
0x425f   :  { %5233 = vlog2.f32 %v2496_v50 }
0x4262   :  { %v2507_v58 = vpop.xlane.xlu0 %2506 }
0x4269   :  { %v5234_v51 = vpop.eup %5233 }
0x426a   :  { %v2498_v52 = vmul.f32 0.6931472, %v5234_v51 }
0x426c   :  { %v2499_v0 = vadd.f32 %v2498_v52, %v2490_v30 }
0x426e   :  { %v2508_v3 = vsub.f32 %v2499_v0, %v2507_v58 }
0x4270   :  { %v2510_v62 = vsel %vm2509_vm4, %v2508_v3, 0.0 }
0x42a7   :  { %v4176_v23 = vpop.f32.mrb[116].mxu0 }
0x42a8   :  { %v4177_v45 = vadd.f32 %v4381_v19, %v4176_v23  ;;  %v5030_v48 = vpop.f32.mrb[117].mxu0 }
0x42a9   :  { %v4179_v9 = vpop.f32.mrb[118].mxu0 }
0x42aa   :  { %v5031_v14 = vpop.f32.mrb[119].mxu0  ;;  %v4184_v13 = vsel %vm2487_vm0, %v4177_v45, -inf }
0x42ab   :  { %4185 = vmax.xlane.f32.xlu1 %v4184_v13 }
0x42bc   :  { %4197 = vperm.xlu1 %5110, %v4419_v49  }
0x4338   :  { %v4186_v53 = vpop.xlane.xlu1 %4185 }
0x4339   :  { %v4187_v55 = vsub.f32 %v4177_v45, %v4186_v53 }
0x433b   :  { %v4188_v56 = vmul.f32 1.442695, %v4187_v55 }
0x433c   :  { %v4198_v59 = vpop.permute.xlu1 %4197 }
0x433d   :  { %5235 = vpow2.f32 %v4188_v56  ;;  %vm4199_vm3 = vcmp.eq.s32.totalorder %v5959_v16, %v4198_v59 }
0x433e   :  { %v4200_v57 = vsel %vm4199_vm3, %v4177_v45, 0.0 }
0x433f   :  { %v4201_v61 = vsel %vm2487_vm0, %v4200_v57, 0.0 }
0x4340   :  { %4202 = vadd.xlane.f32.xlu0 %v4201_v61 }
0x4344   :  { %2511 = vadd.xlane.f32.xlu0 %v2510_v62 }
0x4347   :  { %v5236_v63 = vpop.eup %5235 }
0x4348   :  { %v4190_v2 = vsel %vm2487_vm0, %v5236_v63, 0.0 }
0x4349   :  { %4191 = vadd.xlane.f32.xlu1 %v4190_v2 }
0x43cd   :  { %v4203_v4 = vpop.xlane.xlu0 %4202 }
0x43d1   :  { %v2512_v6 = vpop.xlane.xlu0 %2511 }
0x43d2   :  { %v2513_v11 = vrot.slane %v2512_v6, 4 }
0x43d4   :  { %v2514_v7 = vadd.f32 %v2513_v11, %v2512_v6 }
0x43d6   :  { %v2515_v44 = vrot.slane %v2514_v7, 2  ;;  %v4192_v16 = vpop.xlane.xlu1 %4191 }
0x43d7   :  { %5237 = vlog2.f32 %v4192_v16 }
0x43d8   :  { %v2516_v8 = vadd.f32 %v2515_v44, %v2514_v7 }
0x43da   :  { %v2517_v10 = vrot.slane %v2516_v8, 1 }
0x43dc   :  { %v2518_v12 = vadd.f32 %v2517_v10, %v2516_v8 }
0x43de   :  { %5032 = vpush %v2518_v12 }
0x43e1   :  { %v5238_v15 = vpop.eup %5237 }
0x43e2   :  { %v4194_v31 = vmul.f32 0.6931472, %v5238_v15 }
0x43e4   :  { %v4195_v17 = vadd.f32 %v4194_v31, %v4186_v53 }
0x43e6   :  { %v4204_v34 = vsub.f32 %v4195_v17, %v4203_v4 }
0x43e8   :  { %v4205_v38 = vsel %vm2509_vm4, %v4204_v34, 0.0 }
0x43e9   :  { %4206 = vadd.xlane.f32.xlu0 %v4205_v38 }
0x440f   :  { %s5033_s26 = spop %5032 }
0x4476   :  { %v4207_v1 = vpop.xlane.xlu0 %4206 }
0x4477   :  { %v4208_v35 = vrot.slane %v4207_v1, 4 }
0x4479   :  { %v4209_v26 = vadd.f32 %v4208_v35, %v4207_v1 }
0x447b   :  { %v4210_v29 = vrot.slane %v4209_v26, 2 }
0x447d   :  { %v4211_v19 = vadd.f32 %v4210_v29, %v4209_v26 }
0x447f   :  { %v4212_v21 = vrot.slane %v4211_v19, 1 }
0x4481   :  { %v4213_v18 = vadd.f32 %v4212_v21, %v4211_v19 }
0x4483   :  { %5034 = vpush %v4213_v18 }
0x44b4   :  { %s5035_s12 = spop %5034 }
0x44b5   :  { %s4215_s2 = sadd.f32 %s5035_s12, %s5033_s26 }
0x44b7   :  { %s4218_s30 = smul.f32 0.071428575, %s4215_s2 }
0x44b9   :  { %4220 = sst [smem:[#allocation19]] %s4218_s30 }
0x44ba   :  { %5528 = shalt.err (!%p5525_p12)
}
0x44bb   :  { %s5615_s13 = smov [#allocation19]  }
0x44bc   :  { %4228 = dma.smem_to_hbm %s5615_s13, 16, %s6798_s23, [#allocation4]  }
0x44bd   :  { %5541 = dma.done.wait [#allocation4], 16  }
0x44be   :  { %5542 = vsyncadd [#allocation4], 4294967280 }
0x44bf   :  { %4232 = sfence }
0x44c0   :  { %4233 = vsyncpa [#allocation3], 1 }
0x44c1   :  { %4234 = vsyncpa [#allocation6], 1 }
0x44c2   :  { %4235 = vsyncpa [#allocation9], 1 }
0x44c3   :  { %4236 = vsyncpa [#allocation12], 1 }
0x44c4   :  { %4237 = vsyncpa [#allocation15], 1 }
0x44c5   :  { %4238 = vsyncpa [#allocation18], 1 }
0x44c6   :  { %4239 = vsyncpa [#allocation4], 1 }

</bundles_post_ra>
